<compile_context>
chip_gen: v7x
topology: tpu7x:2x2x1
jax: 0.10.0
libtpu: 0.0.40
codegen_flags: <defaults>
</compile_context>

<pallas_src>
import jax
import jax.numpy as jnp
from jax.experimental import pallas as pl
from jax.experimental.pallas import tpu as pltpu


def _round_up(x, m):
    return (x + m - 1) // m * m


def _cdiv(a, b):
    return (a + b - 1) // b


def _make_kernel(KH, KW, Wp, n_blocks, block_rows, apply_relu):
    """Conv+bias(+ReLU) kernel for static shapes.

    The conv is expressed as KH*KW shifted matmuls over a row-flattened input:
    output row r (= h*Wp + w) accumulates x[r + kh*Wp + kw, :] @ W[kh,kw].
    """
    shifts = tuple(kh * Wp + kw for kh in range(KH) for kw in range(KW))

    def kernel(x_ref, w_ref, b_ref, y_ref):
        # x_ref: (x_rows, Cin_p)        bf16 -- flattened, spatially padded rows
        # w_ref: (KH*KW, Cin_p, Cout_p) bf16 -- BN-folded weights, VMEM resident
        # b_ref: (1, Cout_p)            f32  -- BN-folded bias
        # y_ref: (n_rows_out, Cout_p)   f32  -- lane-dense output block
        bias = b_ref[...]
        for rb in range(n_blocks):                 # static unroll: row blocks
            r0 = rb * block_rows
            acc = None
            for idx, s in enumerate(shifts):       # static unroll: KH*KW
                lhs = x_ref[pl.ds(r0 + s, block_rows), :]          # static view
                part = jnp.dot(lhs, w_ref[idx],
                               preferred_element_type=jnp.float32)  # MXU, f32 acc
                acc = part if acc is None else acc + part
            out = acc + bias
            if apply_relu:
                out = jnp.maximum(out, 0.0)
            y_ref[pl.ds(r0, block_rows), :] = out.astype(y_ref.dtype)  # 1 store/block

    return kernel


def basic_conv_forward(x, conv_w, conv_b=None, bn_params=None, *,
                       stride=1, padding=0, dilation=1, groups=1,
                       relu=True, eps=1e-5, row_block_target=256,
                       compute_dtype=jnp.bfloat16):
    """BasicConv forward (eval-mode BN folded into the conv).

    x:       (B, C_in, H, W)  NCHW (PyTorch layout)
    conv_w:  (C_out, C_in, KH, KW)  OIHW
    conv_b:  (C_out,) or None
    bn_params: (gamma, beta, running_mean, running_var) or None
    Returns (B, C_out, H_out, W_out) float32.
    """
    assert stride == 1 and dilation == 1 and groups == 1, (
        "TODO(synk): only stride=1, dilation=1, groups=1 supported in-kernel")

    B, C_in, H, W = x.shape
    C_out, C_in_w, KH, KW = conv_w.shape
    assert C_in_w == C_in, "conv weight C_in mismatch"

    H_out = H + 2 * padding - KH + 1
    W_out = W + 2 * padding - KW + 1
    assert H_out > 0 and W_out > 0

    # ---- Fold BatchNorm (eval mode) into conv weight / bias, in f32 ----
    w = conv_w.astype(jnp.float32)
    b = (jnp.zeros((C_out,), jnp.float32) if conv_b is None
         else conv_b.astype(jnp.float32))
    if bn_params is not None:
        gamma, beta, mean, var = (p.astype(jnp.float32) for p in bn_params)
        scale = gamma * jax.lax.rsqrt(var + eps)
        w = w * scale[:, None, None, None]
        b = (b - mean) * scale + beta

    # ---- Lane-dense channel padding (256 for wide layers on v6e/v7x MXU) ----
    Cin_p = _round_up(C_in, 256 if C_in > 128 else 128)
    Cout_p = _round_up(C_out, 256 if C_out > 128 else 128)

    Hp, Wp = H + 2 * padding, W + 2 * padding
    K2 = KH * KW
    s_max = (KH - 1) * Wp + (KW - 1)

    # ---- Row blocking of the flattened output (register accumulation) ----
    n_needed = H_out * Wp
    n_blocks = max(1, _cdiv(n_needed, row_block_target))
    block_rows = _round_up(_cdiv(n_needed, n_blocks), 8)
    n_rows_out = block_rows * n_blocks
    # Input rows must cover the largest shifted read; pad extra zero rows.
    Hp_extra = _cdiv(n_rows_out + s_max, Wp)
    x_rows = Hp_extra * Wp

    # ---- NCHW -> NHWC, zero-pad spatial/bottom/channels, flatten rows ----
    x_nhwc = jnp.transpose(x, (0, 2, 3, 1))
    x_pad = jnp.pad(
        x_nhwc,
        ((0, 0),
         (padding, padding + (Hp_extra - Hp)),
         (padding, padding),
         (0, Cin_p - C_in)))
    x_flat = x_pad.reshape(B, x_rows, Cin_p).astype(compute_dtype)

    # OIHW -> (KH*KW, Cin_p, Cout_p), bf16, zero-padded channels.
    w_k = jnp.transpose(w, (2, 3, 1, 0)).reshape(K2, C_in, C_out)
    w_p = jnp.pad(w_k, ((0, 0), (0, Cin_p - C_in),
                        (0, Cout_p - C_out))).astype(compute_dtype)
    b_p = jnp.pad(b, (0, Cout_p - C_out)).reshape(1, Cout_p)  # stays f32

    kernel = _make_kernel(KH, KW, Wp, n_blocks, block_rows, relu)

    # ---- VMEM budget derived from actual tile bytes (double-buffered) ----
    itm = jnp.dtype(compute_dtype).itemsize
    xb = x_rows * Cin_p * itm
    yb = n_rows_out * Cout_p * 4
    wb = K2 * Cin_p * Cout_p * itm
    vmem_limit = int(min(100 << 20,
                         max(32 << 20, 2 * (xb + yb + wb) + (2 << 20))))

    y3 = pl.pallas_call(
        kernel,
        out_shape=jax.ShapeDtypeStruct((B, n_rows_out, Cout_p), jnp.float32),
        grid=(B,),
        in_specs=[
            # x: one batch element per grid step (pipelined).
            pl.BlockSpec((None, x_rows, Cin_p), lambda bi: (bi, 0, 0)),
            # weights / bias: constant index_map -> DMA'd once, VMEM resident.
            pl.BlockSpec((K2, Cin_p, Cout_p), lambda bi: (0, 0, 0)),
            pl.BlockSpec((1, Cout_p), lambda bi: (0, 0)),
        ],
        out_specs=pl.BlockSpec((None, n_rows_out, Cout_p),
                               lambda bi: (bi, 0, 0)),
        compiler_params=pltpu.CompilerParams(
            dimension_semantics=("parallel",),
            vmem_limit_bytes=vmem_limit),
    )(x_flat, w_p, b_p)

    # Slice off padded rows (w >= W_out / h >= H_out) and channels, back to NCHW.
    y = y3[:, :H_out * Wp, :].reshape(B, H_out, Wp, Cout_p)[:, :, :W_out, :C_out]
    return jnp.transpose(y, (0, 3, 1, 2))


def basic_conv_reference(x, conv_w, conv_b, bn_params, *,
                         stride=1, padding=0, relu=True, eps=1e-5):
    """Pure-JAX reference matching the PyTorch BasicConv forward (eval mode)."""
    y = jax.lax.conv_general_dilated(
        x, conv_w, window_strides=(stride, stride),
        padding=((padding, padding), (padding, padding)),
        dimension_numbers=("NCHW", "OIHW", "NCHW"))
    if conv_b is not None:
        y = y + conv_b[None, :, None, None]
    if bn_params is not None:
        gamma, beta, mean, var = bn_params
        scale = (gamma * jax.lax.rsqrt(var + eps))[None, :, None, None]
        y = (y - mean[None, :, None, None]) * scale + beta[None, :, None, None]
    if relu:
        y = jnp.maximum(y, 0.0)
    return y


if __name__ == "__main__":
    key = jax.random.PRNGKey(0)
    kx, kw, kg, kb, km, kv = jax.random.split(key, 6)

    # Small BasicConv: in_planes=4, out_planes=32, kernel_size=3, padding=1.
    B, C_in, H, W = 2, 4, 16, 16
    C_out, K, padding = 32, 3, 1

    x = jax.random.normal(kx, (B, C_in, H, W), jnp.float32)
    conv_w = 0.1 * jax.random.normal(kw, (C_out, C_in, K, K), jnp.float32)
    bn = (
        1.0 + 0.1 * jax.random.normal(kg, (C_out,), jnp.float32),   # gamma
        0.1 * jax.random.normal(kb, (C_out,), jnp.float32),          # beta
        0.05 * jax.random.normal(km, (C_out,), jnp.float32),         # running_mean
        1.0 + 0.1 * jax.random.uniform(kv, (C_out,), jnp.float32),   # running_var
    )

    y = basic_conv_forward(x, conv_w, conv_b=None, bn_params=bn,
                           stride=1, padding=padding, relu=True)
    y = jax.block_until_ready(y)

    y_ref = basic_conv_reference(x, conv_w, None, bn,
                                 stride=1, padding=padding, relu=True)
    assert y.shape == (B, C_out, H, W)
    max_err = float(jnp.max(jnp.abs(y - y_ref)))
    # bf16 operands / f32 accumulation -> slightly relaxed tolerance.
    assert bool(jnp.allclose(y, y_ref, atol=2e-2, rtol=2e-2)), max_err
    print("KERNEL_OK")
</pallas_src>

<mosaic_0001>
module attributes {stable_mosaic.version = 11 : i64} {
  func.func @kernel(%arg0: i32, %arg1: memref<1x342x128xbf16, #tpu.memory_space<vmem>>, %arg2: memref<9x128x128xbf16, #tpu.memory_space<vmem>>, %arg3: memref<1x128xf32, #tpu.memory_space<vmem>>, %arg4: memref<1x288x128xf32, #tpu.memory_space<vmem>>) attributes {dimension_semantics = [#tpu.dimension_semantics<parallel>], iteration_bounds = array<i64: 2>, scalar_prefetch = 0 : i64, scratch_operands = 0 : i64, tpu.core_type = #tpu.core_type<tc>, window_params = [{transform_indices = @transform_0, window_bounds = array<i64: 1, 342, 128>}, {pipeline_mode = #tpu.pipeline_mode<synchronous>, transform_indices = @transform_1, window_bounds = array<i64: 9, 128, 128>}, {pipeline_mode = #tpu.pipeline_mode<synchronous>, transform_indices = @transform_2, window_bounds = array<i64: 1, 128>}, {transform_indices = @transform_3, window_bounds = array<i64: 1, 288, 128>}]} {
    %c0 = arith.constant 0 : index
    %c0_0 = arith.constant 0 : index
    %0 = vector.load %arg3[%c0, %c0_0] : memref<1x128xf32, #tpu.memory_space<vmem>>, vector<1x128xf32>
    %c0_1 = arith.constant 0 : index
    %c0_2 = arith.constant 0 : index
    %c0_3 = arith.constant 0 : index
    %1 = vector.load %arg1[%c0_1, %c0_2, %c0_3] : memref<1x342x128xbf16, #tpu.memory_space<vmem>>, vector<1x144x128xbf16>
    %2 = vector.shape_cast %1 : vector<1x144x128xbf16> to vector<144x128xbf16>
    %c0_4 = arith.constant 0 : index
    %c0_5 = arith.constant 0 : index
    %c0_6 = arith.constant 0 : index
    %3 = vector.load %arg2[%c0_4, %c0_5, %c0_6] : memref<9x128x128xbf16, #tpu.memory_space<vmem>>, vector<1x128x128xbf16>
    %4 = vector.shape_cast %3 : vector<1x128x128xbf16> to vector<128x128xbf16>
    %cst = arith.constant dense<0.000000e+00> : vector<144x128xf32>
    %5 = tpu.matmul %2, %4, %cst {dimension_numbers = #tpu.dot_dimension_numbers<[1], [0], [0], [1], [0, 0, 1, 1], [], []>} : vector<144x128xbf16>, vector<128x128xbf16>, vector<144x128xf32> -> vector<144x128xf32>
    %c0_7 = arith.constant 0 : index
    %c1 = arith.constant 1 : index
    %c0_8 = arith.constant 0 : index
    %6 = vector.load %arg1[%c0_7, %c1, %c0_8] : memref<1x342x128xbf16, #tpu.memory_space<vmem>>, vector<1x144x128xbf16>
    %7 = vector.shape_cast %6 : vector<1x144x128xbf16> to vector<144x128xbf16>
    %c1_9 = arith.constant 1 : index
    %c0_10 = arith.constant 0 : index
    %c0_11 = arith.constant 0 : index
    %8 = vector.load %arg2[%c1_9, %c0_10, %c0_11] : memref<9x128x128xbf16, #tpu.memory_space<vmem>>, vector<1x128x128xbf16>
    %9 = vector.shape_cast %8 : vector<1x128x128xbf16> to vector<128x128xbf16>
    %cst_12 = arith.constant dense<0.000000e+00> : vector<144x128xf32>
    %10 = tpu.matmul %7, %9, %cst_12 {dimension_numbers = #tpu.dot_dimension_numbers<[1], [0], [0], [1], [0, 0, 1, 1], [], []>} : vector<144x128xbf16>, vector<128x128xbf16>, vector<144x128xf32> -> vector<144x128xf32>
    %11 = arith.addf %5, %10 : vector<144x128xf32>
    %c0_13 = arith.constant 0 : index
    %c2 = arith.constant 2 : index
    %c0_14 = arith.constant 0 : index
    %12 = vector.load %arg1[%c0_13, %c2, %c0_14] : memref<1x342x128xbf16, #tpu.memory_space<vmem>>, vector<1x144x128xbf16>
    %13 = vector.shape_cast %12 : vector<1x144x128xbf16> to vector<144x128xbf16>
    %c2_15 = arith.constant 2 : index
    %c0_16 = arith.constant 0 : index
    %c0_17 = arith.constant 0 : index
    %14 = vector.load %arg2[%c2_15, %c0_16, %c0_17] : memref<9x128x128xbf16, #tpu.memory_space<vmem>>, vector<1x128x128xbf16>
    %15 = vector.shape_cast %14 : vector<1x128x128xbf16> to vector<128x128xbf16>
    %cst_18 = arith.constant dense<0.000000e+00> : vector<144x128xf32>
    %16 = tpu.matmul %13, %15, %cst_18 {dimension_numbers = #tpu.dot_dimension_numbers<[1], [0], [0], [1], [0, 0, 1, 1], [], []>} : vector<144x128xbf16>, vector<128x128xbf16>, vector<144x128xf32> -> vector<144x128xf32>
    %17 = arith.addf %11, %16 : vector<144x128xf32>
    %c0_19 = arith.constant 0 : index
    %c18 = arith.constant 18 : index
    %c0_20 = arith.constant 0 : index
    %18 = vector.load %arg1[%c0_19, %c18, %c0_20] : memref<1x342x128xbf16, #tpu.memory_space<vmem>>, vector<1x144x128xbf16>
    %19 = vector.shape_cast %18 : vector<1x144x128xbf16> to vector<144x128xbf16>
    %c3 = arith.constant 3 : index
    %c0_21 = arith.constant 0 : index
    %c0_22 = arith.constant 0 : index
    %20 = vector.load %arg2[%c3, %c0_21, %c0_22] : memref<9x128x128xbf16, #tpu.memory_space<vmem>>, vector<1x128x128xbf16>
    %21 = vector.shape_cast %20 : vector<1x128x128xbf16> to vector<128x128xbf16>
    %cst_23 = arith.constant dense<0.000000e+00> : vector<144x128xf32>
    %22 = tpu.matmul %19, %21, %cst_23 {dimension_numbers = #tpu.dot_dimension_numbers<[1], [0], [0], [1], [0, 0, 1, 1], [], []>} : vector<144x128xbf16>, vector<128x128xbf16>, vector<144x128xf32> -> vector<144x128xf32>
    %23 = arith.addf %17, %22 : vector<144x128xf32>
    %c0_24 = arith.constant 0 : index
    %c19 = arith.constant 19 : index
    %c0_25 = arith.constant 0 : index
    %24 = vector.load %arg1[%c0_24, %c19, %c0_25] : memref<1x342x128xbf16, #tpu.memory_space<vmem>>, vector<1x144x128xbf16>
    %25 = vector.shape_cast %24 : vector<1x144x128xbf16> to vector<144x128xbf16>
    %c4 = arith.constant 4 : index
    %c0_26 = arith.constant 0 : index
    %c0_27 = arith.constant 0 : index
    %26 = vector.load %arg2[%c4, %c0_26, %c0_27] : memref<9x128x128xbf16, #tpu.memory_space<vmem>>, vector<1x128x128xbf16>
    %27 = vector.shape_cast %26 : vector<1x128x128xbf16> to vector<128x128xbf16>
    %cst_28 = arith.constant dense<0.000000e+00> : vector<144x128xf32>
    %28 = tpu.matmul %25, %27, %cst_28 {dimension_numbers = #tpu.dot_dimension_numbers<[1], [0], [0], [1], [0, 0, 1, 1], [], []>} : vector<144x128xbf16>, vector<128x128xbf16>, vector<144x128xf32> -> vector<144x128xf32>
    %29 = arith.addf %23, %28 : vector<144x128xf32>
    %c0_29 = arith.constant 0 : index
    %c20 = arith.constant 20 : index
    %c0_30 = arith.constant 0 : index
    %30 = vector.load %arg1[%c0_29, %c20, %c0_30] : memref<1x342x128xbf16, #tpu.memory_space<vmem>>, vector<1x144x128xbf16>
    %31 = vector.shape_cast %30 : vector<1x144x128xbf16> to vector<144x128xbf16>
    %c5 = arith.constant 5 : index
    %c0_31 = arith.constant 0 : index
    %c0_32 = arith.constant 0 : index
    %32 = vector.load %arg2[%c5, %c0_31, %c0_32] : memref<9x128x128xbf16, #tpu.memory_space<vmem>>, vector<1x128x128xbf16>
    %33 = vector.shape_cast %32 : vector<1x128x128xbf16> to vector<128x128xbf16>
    %cst_33 = arith.constant dense<0.000000e+00> : vector<144x128xf32>
    %34 = tpu.matmul %31, %33, %cst_33 {dimension_numbers = #tpu.dot_dimension_numbers<[1], [0], [0], [1], [0, 0, 1, 1], [], []>} : vector<144x128xbf16>, vector<128x128xbf16>, vector<144x128xf32> -> vector<144x128xf32>
    %35 = arith.addf %29, %34 : vector<144x128xf32>
    %c0_34 = arith.constant 0 : index
    %c36 = arith.constant 36 : index
    %c0_35 = arith.constant 0 : index
    %36 = vector.load %arg1[%c0_34, %c36, %c0_35] : memref<1x342x128xbf16, #tpu.memory_space<vmem>>, vector<1x144x128xbf16>
    %37 = vector.shape_cast %36 : vector<1x144x128xbf16> to vector<144x128xbf16>
    %c6 = arith.constant 6 : index
    %c0_36 = arith.constant 0 : index
    %c0_37 = arith.constant 0 : index
    %38 = vector.load %arg2[%c6, %c0_36, %c0_37] : memref<9x128x128xbf16, #tpu.memory_space<vmem>>, vector<1x128x128xbf16>
    %39 = vector.shape_cast %38 : vector<1x128x128xbf16> to vector<128x128xbf16>
    %cst_38 = arith.constant dense<0.000000e+00> : vector<144x128xf32>
    %40 = tpu.matmul %37, %39, %cst_38 {dimension_numbers = #tpu.dot_dimension_numbers<[1], [0], [0], [1], [0, 0, 1, 1], [], []>} : vector<144x128xbf16>, vector<128x128xbf16>, vector<144x128xf32> -> vector<144x128xf32>
    %41 = arith.addf %35, %40 : vector<144x128xf32>
    %c0_39 = arith.constant 0 : index
    %c37 = arith.constant 37 : index
    %c0_40 = arith.constant 0 : index
    %42 = vector.load %arg1[%c0_39, %c37, %c0_40] : memref<1x342x128xbf16, #tpu.memory_space<vmem>>, vector<1x144x128xbf16>
    %43 = vector.shape_cast %42 : vector<1x144x128xbf16> to vector<144x128xbf16>
    %c7 = arith.constant 7 : index
    %c0_41 = arith.constant 0 : index
    %c0_42 = arith.constant 0 : index
    %44 = vector.load %arg2[%c7, %c0_41, %c0_42] : memref<9x128x128xbf16, #tpu.memory_space<vmem>>, vector<1x128x128xbf16>
    %45 = vector.shape_cast %44 : vector<1x128x128xbf16> to vector<128x128xbf16>
    %cst_43 = arith.constant dense<0.000000e+00> : vector<144x128xf32>
    %46 = tpu.matmul %43, %45, %cst_43 {dimension_numbers = #tpu.dot_dimension_numbers<[1], [0], [0], [1], [0, 0, 1, 1], [], []>} : vector<144x128xbf16>, vector<128x128xbf16>, vector<144x128xf32> -> vector<144x128xf32>
    %47 = arith.addf %41, %46 : vector<144x128xf32>
    %c0_44 = arith.constant 0 : index
    %c38 = arith.constant 38 : index
    %c0_45 = arith.constant 0 : index
    %48 = vector.load %arg1[%c0_44, %c38, %c0_45] : memref<1x342x128xbf16, #tpu.memory_space<vmem>>, vector<1x144x128xbf16>
    %49 = vector.shape_cast %48 : vector<1x144x128xbf16> to vector<144x128xbf16>
    %c8 = arith.constant 8 : index
    %c0_46 = arith.constant 0 : index
    %c0_47 = arith.constant 0 : index
    %50 = vector.load %arg2[%c8, %c0_46, %c0_47] : memref<9x128x128xbf16, #tpu.memory_space<vmem>>, vector<1x128x128xbf16>
    %51 = vector.shape_cast %50 : vector<1x128x128xbf16> to vector<128x128xbf16>
    %cst_48 = arith.constant dense<0.000000e+00> : vector<144x128xf32>
    %52 = tpu.matmul %49, %51, %cst_48 {dimension_numbers = #tpu.dot_dimension_numbers<[1], [0], [0], [1], [0, 0, 1, 1], [], []>} : vector<144x128xbf16>, vector<128x128xbf16>, vector<144x128xf32> -> vector<144x128xf32>
    %53 = arith.addf %47, %52 : vector<144x128xf32>
    %54 = vector.broadcast %0 : vector<1x128xf32> to vector<144x128xf32>
    %55 = arith.addf %53, %54 : vector<144x128xf32>
    %cst_49 = arith.constant 0.000000e+00 : f32
    %56 = vector.broadcast %cst_49 : f32 to vector<144x128xf32>
    %57 = arith.maximumf %55, %56 : vector<144x128xf32>
    %c0_50 = arith.constant 0 : index
    %c0_51 = arith.constant 0 : index
    %c0_52 = arith.constant 0 : index
    %58 = vector.load %arg4[%c0_50, %c0_51, %c0_52] : memref<1x288x128xf32, #tpu.memory_space<vmem>>, vector<1x144x128xf32>
    %59 = vector.shape_cast %58 : vector<1x144x128xf32> to vector<144x128xf32>
    %60 = vector.shape_cast %57 : vector<144x128xf32> to vector<1x144x128xf32>
    tpu.vector_store %arg4[%c0_50, %c0_51, %c0_52], %60 {strides = array<i32>} : memref<1x288x128xf32, #tpu.memory_space<vmem>>, vector<1x144x128xf32>,
    %c0_53 = arith.constant 0 : index
    %c144 = arith.constant 144 : index
    %c0_54 = arith.constant 0 : index
    %61 = vector.load %arg1[%c0_53, %c144, %c0_54] : memref<1x342x128xbf16, #tpu.memory_space<vmem>>, vector<1x144x128xbf16>
    %62 = vector.shape_cast %61 : vector<1x144x128xbf16> to vector<144x128xbf16>
    %c0_55 = arith.constant 0 : index
    %c0_56 = arith.constant 0 : index
    %c0_57 = arith.constant 0 : index
    %63 = vector.load %arg2[%c0_55, %c0_56, %c0_57] : memref<9x128x128xbf16, #tpu.memory_space<vmem>>, vector<1x128x128xbf16>
    %64 = vector.shape_cast %63 : vector<1x128x128xbf16> to vector<128x128xbf16>
    %cst_58 = arith.constant dense<0.000000e+00> : vector<144x128xf32>
    %65 = tpu.matmul %62, %64, %cst_58 {dimension_numbers = #tpu.dot_dimension_numbers<[1], [0], [0], [1], [0, 0, 1, 1], [], []>} : vector<144x128xbf16>, vector<128x128xbf16>, vector<144x128xf32> -> vector<144x128xf32>
    %c0_59 = arith.constant 0 : index
    %c145 = arith.constant 145 : index
    %c0_60 = arith.constant 0 : index
    %66 = vector.load %arg1[%c0_59, %c145, %c0_60] : memref<1x342x128xbf16, #tpu.memory_space<vmem>>, vector<1x144x128xbf16>
    %67 = vector.shape_cast %66 : vector<1x144x128xbf16> to vector<144x128xbf16>
    %c1_61 = arith.constant 1 : index
    %c0_62 = arith.constant 0 : index
    %c0_63 = arith.constant 0 : index
    %68 = vector.load %arg2[%c1_61, %c0_62, %c0_63] : memref<9x128x128xbf16, #tpu.memory_space<vmem>>, vector<1x128x128xbf16>
    %69 = vector.shape_cast %68 : vector<1x128x128xbf16> to vector<128x128xbf16>
    %cst_64 = arith.constant dense<0.000000e+00> : vector<144x128xf32>
    %70 = tpu.matmul %67, %69, %cst_64 {dimension_numbers = #tpu.dot_dimension_numbers<[1], [0], [0], [1], [0, 0, 1, 1], [], []>} : vector<144x128xbf16>, vector<128x128xbf16>, vector<144x128xf32> -> vector<144x128xf32>
    %71 = arith.addf %65, %70 : vector<144x128xf32>
    %c0_65 = arith.constant 0 : index
    %c146 = arith.constant 146 : index
    %c0_66 = arith.constant 0 : index
    %72 = vector.load %arg1[%c0_65, %c146, %c0_66] : memref<1x342x128xbf16, #tpu.memory_space<vmem>>, vector<1x144x128xbf16>
    %73 = vector.shape_cast %72 : vector<1x144x128xbf16> to vector<144x128xbf16>
    %c2_67 = arith.constant 2 : index
    %c0_68 = arith.constant 0 : index
    %c0_69 = arith.constant 0 : index
    %74 = vector.load %arg2[%c2_67, %c0_68, %c0_69] : memref<9x128x128xbf16, #tpu.memory_space<vmem>>, vector<1x128x128xbf16>
    %75 = vector.shape_cast %74 : vector<1x128x128xbf16> to vector<128x128xbf16>
    %cst_70 = arith.constant dense<0.000000e+00> : vector<144x128xf32>
    %76 = tpu.matmul %73, %75, %cst_70 {dimension_numbers = #tpu.dot_dimension_numbers<[1], [0], [0], [1], [0, 0, 1, 1], [], []>} : vector<144x128xbf16>, vector<128x128xbf16>, vector<144x128xf32> -> vector<144x128xf32>
    %77 = arith.addf %71, %76 : vector<144x128xf32>
    %c0_71 = arith.constant 0 : index
    %c162 = arith.constant 162 : index
    %c0_72 = arith.constant 0 : index
    %78 = vector.load %arg1[%c0_71, %c162, %c0_72] : memref<1x342x128xbf16, #tpu.memory_space<vmem>>, vector<1x144x128xbf16>
    %79 = vector.shape_cast %78 : vector<1x144x128xbf16> to vector<144x128xbf16>
    %c3_73 = arith.constant 3 : index
    %c0_74 = arith.constant 0 : index
    %c0_75 = arith.constant 0 : index
    %80 = vector.load %arg2[%c3_73, %c0_74, %c0_75] : memref<9x128x128xbf16, #tpu.memory_space<vmem>>, vector<1x128x128xbf16>
    %81 = vector.shape_cast %80 : vector<1x128x128xbf16> to vector<128x128xbf16>
    %cst_76 = arith.constant dense<0.000000e+00> : vector<144x128xf32>
    %82 = tpu.matmul %79, %81, %cst_76 {dimension_numbers = #tpu.dot_dimension_numbers<[1], [0], [0], [1], [0, 0, 1, 1], [], []>} : vector<144x128xbf16>, vector<128x128xbf16>, vector<144x128xf32> -> vector<144x128xf32>
    %83 = arith.addf %77, %82 : vector<144x128xf32>
    %c0_77 = arith.constant 0 : index
    %c163 = arith.constant 163 : index
    %c0_78 = arith.constant 0 : index
    %84 = vector.load %arg1[%c0_77, %c163, %c0_78] : memref<1x342x128xbf16, #tpu.memory_space<vmem>>, vector<1x144x128xbf16>
    %85 = vector.shape_cast %84 : vector<1x144x128xbf16> to vector<144x128xbf16>
    %c4_79 = arith.constant 4 : index
    %c0_80 = arith.constant 0 : index
    %c0_81 = arith.constant 0 : index
    %86 = vector.load %arg2[%c4_79, %c0_80, %c0_81] : memref<9x128x128xbf16, #tpu.memory_space<vmem>>, vector<1x128x128xbf16>
    %87 = vector.shape_cast %86 : vector<1x128x128xbf16> to vector<128x128xbf16>
    %cst_82 = arith.constant dense<0.000000e+00> : vector<144x128xf32>
    %88 = tpu.matmul %85, %87, %cst_82 {dimension_numbers = #tpu.dot_dimension_numbers<[1], [0], [0], [1], [0, 0, 1, 1], [], []>} : vector<144x128xbf16>, vector<128x128xbf16>, vector<144x128xf32> -> vector<144x128xf32>
    %89 = arith.addf %83, %88 : vector<144x128xf32>
    %c0_83 = arith.constant 0 : index
    %c164 = arith.constant 164 : index
    %c0_84 = arith.constant 0 : index
    %90 = vector.load %arg1[%c0_83, %c164, %c0_84] : memref<1x342x128xbf16, #tpu.memory_space<vmem>>, vector<1x144x128xbf16>
    %91 = vector.shape_cast %90 : vector<1x144x128xbf16> to vector<144x128xbf16>
    %c5_85 = arith.constant 5 : index
    %c0_86 = arith.constant 0 : index
    %c0_87 = arith.constant 0 : index
    %92 = vector.load %arg2[%c5_85, %c0_86, %c0_87] : memref<9x128x128xbf16, #tpu.memory_space<vmem>>, vector<1x128x128xbf16>
    %93 = vector.shape_cast %92 : vector<1x128x128xbf16> to vector<128x128xbf16>
    %cst_88 = arith.constant dense<0.000000e+00> : vector<144x128xf32>
    %94 = tpu.matmul %91, %93, %cst_88 {dimension_numbers = #tpu.dot_dimension_numbers<[1], [0], [0], [1], [0, 0, 1, 1], [], []>} : vector<144x128xbf16>, vector<128x128xbf16>, vector<144x128xf32> -> vector<144x128xf32>
    %95 = arith.addf %89, %94 : vector<144x128xf32>
    %c0_89 = arith.constant 0 : index
    %c180 = arith.constant 180 : index
    %c0_90 = arith.constant 0 : index
    %96 = vector.load %arg1[%c0_89, %c180, %c0_90] : memref<1x342x128xbf16, #tpu.memory_space<vmem>>, vector<1x144x128xbf16>
    %97 = vector.shape_cast %96 : vector<1x144x128xbf16> to vector<144x128xbf16>
    %c6_91 = arith.constant 6 : index
    %c0_92 = arith.constant 0 : index
    %c0_93 = arith.constant 0 : index
    %98 = vector.load %arg2[%c6_91, %c0_92, %c0_93] : memref<9x128x128xbf16, #tpu.memory_space<vmem>>, vector<1x128x128xbf16>
    %99 = vector.shape_cast %98 : vector<1x128x128xbf16> to vector<128x128xbf16>
    %cst_94 = arith.constant dense<0.000000e+00> : vector<144x128xf32>
    %100 = tpu.matmul %97, %99, %cst_94 {dimension_numbers = #tpu.dot_dimension_numbers<[1], [0], [0], [1], [0, 0, 1, 1], [], []>} : vector<144x128xbf16>, vector<128x128xbf16>, vector<144x128xf32> -> vector<144x128xf32>
    %101 = arith.addf %95, %100 : vector<144x128xf32>
    %c0_95 = arith.constant 0 : index
    %c181 = arith.constant 181 : index
    %c0_96 = arith.constant 0 : index
    %102 = vector.load %arg1[%c0_95, %c181, %c0_96] : memref<1x342x128xbf16, #tpu.memory_space<vmem>>, vector<1x144x128xbf16>
    %103 = vector.shape_cast %102 : vector<1x144x128xbf16> to vector<144x128xbf16>
    %c7_97 = arith.constant 7 : index
    %c0_98 = arith.constant 0 : index
    %c0_99 = arith.constant 0 : index
    %104 = vector.load %arg2[%c7_97, %c0_98, %c0_99] : memref<9x128x128xbf16, #tpu.memory_space<vmem>>, vector<1x128x128xbf16>
    %105 = vector.shape_cast %104 : vector<1x128x128xbf16> to vector<128x128xbf16>
    %cst_100 = arith.constant dense<0.000000e+00> : vector<144x128xf32>
    %106 = tpu.matmul %103, %105, %cst_100 {dimension_numbers = #tpu.dot_dimension_numbers<[1], [0], [0], [1], [0, 0, 1, 1], [], []>} : vector<144x128xbf16>, vector<128x128xbf16>, vector<144x128xf32> -> vector<144x128xf32>
    %107 = arith.addf %101, %106 : vector<144x128xf32>
    %c0_101 = arith.constant 0 : index
    %c182 = arith.constant 182 : index
    %c0_102 = arith.constant 0 : index
    %108 = vector.load %arg1[%c0_101, %c182, %c0_102] : memref<1x342x128xbf16, #tpu.memory_space<vmem>>, vector<1x144x128xbf16>
    %109 = vector.shape_cast %108 : vector<1x144x128xbf16> to vector<144x128xbf16>
    %c8_103 = arith.constant 8 : index
    %c0_104 = arith.constant 0 : index
    %c0_105 = arith.constant 0 : index
    %110 = vector.load %arg2[%c8_103, %c0_104, %c0_105] : memref<9x128x128xbf16, #tpu.memory_space<vmem>>, vector<1x128x128xbf16>
    %111 = vector.shape_cast %110 : vector<1x128x128xbf16> to vector<128x128xbf16>
    %cst_106 = arith.constant dense<0.000000e+00> : vector<144x128xf32>
    %112 = tpu.matmul %109, %111, %cst_106 {dimension_numbers = #tpu.dot_dimension_numbers<[1], [0], [0], [1], [0, 0, 1, 1], [], []>} : vector<144x128xbf16>, vector<128x128xbf16>, vector<144x128xf32> -> vector<144x128xf32>
    %113 = arith.addf %107, %112 : vector<144x128xf32>
    %114 = vector.broadcast %0 : vector<1x128xf32> to vector<144x128xf32>
    %115 = arith.addf %113, %114 : vector<144x128xf32>
    %cst_107 = arith.constant 0.000000e+00 : f32
    %116 = vector.broadcast %cst_107 : f32 to vector<144x128xf32>
    %117 = arith.maximumf %115, %116 : vector<144x128xf32>
    %c0_108 = arith.constant 0 : index
    %c144_109 = arith.constant 144 : index
    %c0_110 = arith.constant 0 : index
    %118 = vector.load %arg4[%c0_108, %c144_109, %c0_110] : memref<1x288x128xf32, #tpu.memory_space<vmem>>, vector<1x144x128xf32>
    %119 = vector.shape_cast %118 : vector<1x144x128xf32> to vector<144x128xf32>
    %120 = vector.shape_cast %117 : vector<144x128xf32> to vector<1x144x128xf32>
    tpu.vector_store %arg4[%c0_108, %c144_109, %c0_110], %120 {strides = array<i32>} : memref<1x288x128xf32, #tpu.memory_space<vmem>>, vector<1x144x128xf32>,
    return
  }
  func.func @transform_0(%arg0: i32) -> (i32, i32, i32) {
    %c0_i32 = arith.constant 0 : i32
    %c0_i32_0 = arith.constant 0 : i32
    %c0_i32_1 = arith.constant 0 : i32
    return %arg0, %c0_i32, %c0_i32_0 : i32, i32, i32
  }
  func.func @transform_1(%arg0: i32) -> (i32, i32, i32) {
    %c0_i32 = arith.constant 0 : i32
    %c0_i32_0 = arith.constant 0 : i32
    %c0_i32_1 = arith.constant 0 : i32
    %c0_i32_2 = arith.constant 0 : i32
    return %c0_i32, %c0_i32_0, %c0_i32_1 : i32, i32, i32
  }
  func.func @transform_2(%arg0: i32) -> (i32, i32) {
    %c0_i32 = arith.constant 0 : i32
    %c0_i32_0 = arith.constant 0 : i32
    %c0_i32_1 = arith.constant 0 : i32
    return %c0_i32, %c0_i32_0 : i32, i32
  }
  func.func @transform_3(%arg0: i32) -> (i32, i32, i32) {
    %c0_i32 = arith.constant 0 : i32
    %c0_i32_0 = arith.constant 0 : i32
    %c0_i32_1 = arith.constant 0 : i32
    return %arg0, %c0_i32, %c0_i32_0 : i32, i32, i32
  }
}

</mosaic_0001>

<bundles_post_ra>
// kernel: tpu_custom_call.1
= control target key start
LH: loop header
LB: loop body
LE: loop exit
PB: predicated region body
PF: predicated region fallthrough
CT: control target
= control target key end

     0   :  { %8 = vsyncpa [#allocation3], 0  ;;  %s9212_s0 = inlined_call_operand.vmem [shape: bf16[2,342,128], index: 0, kind: input, shape index: {}]   ;;  %s9213_s1 = inlined_call_operand.vmem [shape: bf16[9,128,128], index: 1, kind: input, shape index: {}]   ;;  %s9214_s2 = inlined_call_operand.vmem [shape: f32[1,128], index: 2, kind: input, shape index: {}]   ;;  %s9215_s3 = inlined_call_operand.hbm [shape: f32[2,288,128], index: 3, kind: output, shape index: {}]  }
   0x1   :  { %10 = vsyncpa [#allocation3 + $0x1], 0  ;;  %s7042_s12 = smov 0   ;;  %s7044_s13 = smov 0  }
   0x2   :  { %s7046_s14 = smov 0   ;;  %s7048_s15 = smov 0  }
   0x3 LB: > { %s7063_s16 = sadd.s32 4294967295, %s7015_s15   ;;  %s4971_s17 = sadd.s32 4294967294, %s7015_s15   ;;  %s7015_s15 = sphi %s7048_s15, %s9221_s15   ;;  %s7011_s14 = sphi %s7046_s14, %s9220_s14   ;;  %s7007_s13 = sphi %s7044_s13, %s9219_s13   ;;  %s7003_s12 = sphi %s7042_s12, %s9218_s12  }
   0x4   : > { %s7067_s18 = sadd.s32 1, %s7015_s15   ;;  %s91_s19 = sadd.s32 1, %s7011_s14 }
   0x5   : > { %s88_s20 = ssub.s32 %s7015_s15, %s7067_s18  ;;  %p101_p0 = scmp.ne.s32.totalorder %s7011_s14, %s7007_s13 }
   0x6   : > { %p89_p1 = scmp.eq.s32.totalorder %s88_s20, 0  ;;  %p102_p2 = scmp.eq.s32.totalorder %s7063_s16, 1 }
   0x7   : > { %p107_p3 = scmp.ne.s32.totalorder %s7007_s13, %s7003_s12  ;;  %p108_p4 = scmp.eq.s32.totalorder %s4971_s17, 1 }
   0x8   : > { %s7078_s21 = scalar_select %p89_p1, %s7011_s14, %s91_s19  }
   0x9   : > { %p7080_p5 = por %p102_p2, %p101_p0  ;;  %p7084_p6 = por %p108_p4, %p107_p3 }
   0xa   : > { %p4974_p7 = scmp.ge.s32.totalorder %s7015_s15, 1  ;;  %p140_p8 = scmp.lt.s32.totalorder %s7015_s15, 3 }
   0xc   : > { %p141_p9 = pnand %p4974_p7, %p140_p8 }
   0xd   : > { %v6738_v0 = vld [vmem:[%s9213_s1 + $0x40] sm:$0xff] (!%p141_p9)   ;;  %v7017_v1 = vmov (!%p141_p9), 0.0   ;;  %v6740_v3 = vld [vmem:[%s9213_s1 + $0x48] sm:$0xff] (!%p141_p9)   ;;  %vm7018_vm0 = vmmov (!%p141_p9), 0   ;;  %p164_p10 = scmp.lt.s32.totalorder (!%p141_p9), %s7063_s16, 1  ;;  %v6742_v5 = vld [vmem:[%s9213_s1 + $0x50] sm:$0xff] (!%p141_p9)  }
   0xe   : > { %144 = sbr.rel (%p141_p9) target bundleno = 923 (0x39b), region = 32  ;;  %5756 = vmatprep.subr.bf16.mxu0 (!%p141_p9), %v7017_v1  ;;  %5808 = vmatprep.subr.bf16.mxu1 (!%p141_p9), %v7017_v1  ;;  %v6739_v2 = vld [vmem:[%s9213_s1] sm:$0xff] (!%p141_p9)   ;;  %v6741_v4 = vld [vmem:[%s9213_s1 + $0x8] sm:$0xff] (!%p141_p9)   ;;  %v6743_v6 = vld [vmem:[%s9213_s1 + $0x10] sm:$0xff] (!%p141_p9)   ;;  %vm271_vm1 = vsmask.f32 (!%p141_p9), 7424 }
   0xf   : > { %5757 = vmatpush3.bf16.msra.mxu0 (!%p141_p9), %v6738_v0  ;;  %5772 = vmatprep.mubr.msk.bf16.mxu0 (!%p141_p9), %vm7018_vm0, %v7017_v1  ;;  %v6744_v7 = vld [vmem:[%s9213_s1 + $0x58] sm:$0xff] (!%p141_p9)   ;;  %v6746_v9 = vld [vmem:[%s9213_s1 + $0x60] sm:$0xff] (!%p141_p9)   ;;  %v6748_v13 = vld [vmem:[%s9213_s1 + $0x68] sm:$0xff] (!%p141_p9)   ;;  %vm693_vm2 = vcmask (!%p141_p9), 1046528   ;;  %vm1197_vm3 = vsmask.f32 (!%p141_p9), 6400 }
  0x10   : > { %5809 = vmatpush3.bf16.msra.mxu1 (!%p141_p9), %v6739_v2  ;;  %5758 = vmatprep.subr.bf16.mxu0 (!%p141_p9), %v7017_v1  ;;  %v6745_v8 = vld [vmem:[%s9213_s1 + $0x18] sm:$0xff] (!%p141_p9)   ;;  %v6747_v10 = vld [vmem:[%s9213_s1 + $0x20] sm:$0xff] (!%p141_p9)   ;;  %v6749_v16 = vld [vmem:[%s9213_s1 + $0x28] sm:$0xff] (!%p141_p9)   ;;  %vm1488_vm4 = vcmask (!%p141_p9), 1045504   ;;  %vm1992_vm5 = vsmask.f32 (!%p141_p9), 5376 }
  0x11   : > { %5810 = vmatprep.subr.bf16.mxu1 (!%p141_p9), %v7017_v1  ;;  %5824 = vmatprep.mubr.msk.bf16.mxu1 (!%p141_p9), %vm7018_vm0, %v7017_v1  ;;  %v6750_v18 = vld [vmem:[%s9213_s1 + $0x70] sm:$0xff] (!%p141_p9)   ;;  %v6752_v23 = vld [vmem:[%s9213_s1 + $0x78] sm:$0xff] (!%p141_p9)   ;;  %v6756_v28 = vld [vmem:[%s9213_s1 + $0x80] sm:$0xff] (!%p141_p9)   ;;  %vm2283_vm6 = vcmask (!%p141_p9), 1044480   ;;  %s161_s29 = sand.u32 (!%p141_p9), 1, %s7007_s13   ;;  %s6694_s9 = smul.u32 (!%p141_p9), 4608, %s7063_s16 }
  0x12   : > { %v6751_v22 = vld [vmem:[%s9213_s1 + $0x30] sm:$0xff] (!%p141_p9)   ;;  %v6753_v24 = vld [vmem:[%s9213_s1 + $0x38] sm:$0xff] (!%p141_p9)   ;;  %v6757_v32 = vld [vmem:[%s9213_s1 + $0xc0] sm:$0xff] (!%p141_p9)   ;;  %s6692_s30 = smul.u32 (!%p141_p9), 288, %s161_s29  ;;  %s7019_s25 = smov (!%p141_p9), [#allocation2]  }
  0x13   : > { %5759 = vmatpush3.bf16.msra.mxu0 (!%p141_p9), %v6740_v3  ;;  %v6759_v33 = vld [vmem:[%s9213_s1 + $0x88] sm:$0xff] (!%p141_p9)   ;;  %v6762_v41 = vld [vmem:[%s9213_s1 + $0x90] sm:$0xff] (!%p141_p9)   ;;  %v6765_v47 = vld [vmem:[%s9213_s1 + $0x98] sm:$0xff] (!%p141_p9)   ;;  %s9163_s20 = scalar_lea.hbm (!%p141_p9), %s9215_s3, %s6694_s9  ;;  %s6957_s27 = sshll.u32 (!%p141_p9), %s7019_s25, 4  ;;  %s6958_s27 = int_to_ptr.vmem [resolvable:$false] %s6957_s27 }
  0x14   : > { %5811 = vmatpush3.bf16.msra.mxu1 (!%p141_p9), %v6741_v4  ;;  %5760 = vmatprep.subr.bf16.mxu0 (!%p141_p9), %v7017_v1  ;;  %v6760_v37 = vld [vmem:[%s9213_s1 + $0xc8] sm:$0xff] (!%p141_p9)   ;;  %v6763_v42 = vld [vmem:[%s9213_s1 + $0xd0] sm:$0xff] (!%p141_p9)   ;;  %v6766_v50 = vld [vmem:[%s9213_s1 + $0xd8] sm:$0xff] (!%p141_p9)   ;;  %s8638_s17 = scalar_lea.vmem (!%p141_p9), [#allocation2], %s6692_s30  ;;  %s6959_s28 = scalar_lea.vmem (!%p141_p9), %s6958_s27, 9216 }
  0x15   : > { %s165_s5 = scalar_select %p164_p10, %s7063_s16, 1  ;;  %5812 = vmatprep.subr.bf16.mxu1 %v7017_v1  ;;  %v6768_v56 = vld [vmem:[%s9213_s1 + $0xa0] sm:$0xff]   ;;  %v6771_v2 = vld [vmem:[%s9213_s1 + $0xa8] sm:$0xff]  }
  0x16   : > { %v6769_v58 = vld [vmem:[%s9213_s1 + $0xe0] sm:$0xff]   ;;  %s9171_s16 = scalar_lea.sflag [#allocation3], %s161_s29 }
  0x17   : > { %s6693_s10 = smul.u32 172, %s165_s5  ;;  %5761 = vmatpush3.bf16.msra.mxu0 %v6742_v5 }
  0x18   : > { %5813 = vmatpush3.bf16.msra.mxu1 %v6743_v6  ;;  %5762 = vmatprep.subr.bf16.mxu0 %v7017_v1 }
  0x19   : > { %5814 = vmatprep.subr.bf16.mxu1 %v7017_v1  ;;  %s7131_s26 = scalar_lea.vmem %s9212_s0, %s6693_s10  ;;  %s4909_s10 = sshll.u32 %s8638_s17, 4  ;;  %s9165_s10 = int_to_ptr.vmem [resolvable:$true] %s4909_s10 }
  0x1a   : > { %v171_v11 = vld [vmem:[%s7131_s26] sm:$0xf]  ;;  %v7143_v12 = vld [vmem:[%s7131_s26 + $0x4] sm:$0xf]  ;;  %v7150_v15 = vld [vmem:[%s7131_s26 + $0x8] sm:$0xff]   ;;  %s6953_s24 = scalar_lea.vmem %s9165_s10, 4608  ;;  %p6960_p0 = scmp.lt.s32.totalorder %s9165_s10, %s6958_s27 }
  0x1b   : > { %5763 = vmatpush3.bf16.msra.mxu0 %v6744_v7  ;;  %v4992_v14 = vcombine.low %v171_v11, %v7143_v12  ;;  %v280_v21 = vshll.u32 %v7150_v15, 16  ;;  %v7173_v27 = vld [vmem:[%s7131_s26 + $0x10] sm:$0xff]   ;;  %v284_v30 = vshrl.u32 %v7150_v15, 16  ;;  %v7192_v36 = vld [vmem:[%s7131_s26 + $0x18] sm:$0xff]   ;;  %v7215_v43 = vld [vmem:[%s7131_s26 + $0x20] sm:$0xff]   ;;  %v695_v49 = vrot.slane %v7150_v15, 1  ;;  %p6954_p11 = scmp.ne.s32.totalorder %s9165_s10, %s6953_s24  ;;  %p6961_p1 = scmp.lt.s32.totalorder %s6959_s28, %s6953_s24 }
  0x1c   : > { %5815 = vmatpush3.bf16.msra.mxu1 %v6745_v8  ;;  %5764 = vmatprep.subr.bf16.mxu0 %v7017_v1  ;;  %v288_v31 = vshll.u32 %v7173_v27, 16  ;;  %v292_v39 = vshrl.u32 %v7173_v27, 16  ;;  %v296_v40 = vshll.u32 %v7192_v36, 16  ;;  %v672_v46 = vld [vmem:[%s7131_s26] sm:$0xe]  ;;  %v304_v51 = vshll.u32 %v7215_v43, 16 }
  0x1d   : > { %5816 = vmatprep.subr.bf16.mxu1 %v7017_v1  ;;  %v275_v17 = vshll.u32 %v4992_v14, 16  ;;  %v273_v19 = vshrl.u32 %v4992_v14, 16  ;;  %v282_v26 = vrot.slane %v280_v21, 1  ;;  %v5034_v48 = vcombine.low %v672_v46, %v7143_v12  ;;  %v7237_v55 = vld [vmem:[%s7131_s26 + $0x28] sm:$0xff]   ;;  %v7252_v61 = vld [vmem:[%s7131_s26 + $0x30] sm:$0xff]   ;;  %v7269_v5 = vld [vmem:[%s7131_s26 + $0x38] sm:$0xff]   ;;  %p6955_p12 = pnand %p6954_p11, %p7080_p5  ;;  %p6962_p2 = por %p6961_p1, %p6960_p0 }
  0x1e   : > { %v290_v35 = vrot.slane %v288_v31, 1  ;;  %v298_v45 = vrot.slane %v296_v40, 1  ;;  %v300_v54 = vshrl.u32 %v7192_v36, 16  ;;  %v697_v57 = vrot.slane %v7173_v27, 1  ;;  %v6773_v8 = vld [vmem:[%s9213_s1 + $0xe8] sm:$0xff]   ;;  %v7284_v11 = vld [vmem:[%s7131_s26 + $0x40] sm:$0xff]  }
  0x1f   : > { %5765 = vmatpush3.bf16.msra.mxu0 %v6746_v9  ;;  %v277_v20 = vrot.slane %v275_v17, 1  ;;  %v286_v34 = vor.u32 %v284_v30, %v282_v26  ;;  %v694_v52 = vrot.slane %v5034_v48, 1  ;;  %v699_v60 = vrot.slane %v7192_v36, 1  ;;  %v7287_v12 = vld [vmem:[%s7131_s26 + $0x48] ss:$0 sps:$4 sm:$0x11]   ;;  %p6956_p13 = pneg %p6955_p12 }
  0x20   : > { %5817 = vmatpush3.bf16.msra.mxu1 %v6747_v10  ;;  %5766 = vmatprep.subr.bf16.mxu0 %v7017_v1  ;;  %v294_v44 = vor.u32 %v292_v39, %v290_v35  ;;  %v7255_v62 = vsel %vm693_vm2, %v695_v49, %v697_v57  ;;  %v701_v63 = vrot.slane %v7215_v43, 1  ;;  %v306_v0 = vrot.slane %v304_v51, 1  ;;  %v894_v21 = vld [vmem:[%s7131_s26 + $0xc] sm:$0xf]  ;;  %v6778_v30 = vld [vmem:[%s9213_s1 + $0xb8] sm:$0xff]  }
  0x21   : > { %5818 = vmatprep.subr.bf16.mxu1 %v7017_v1  ;;  %v278_v25 = vor.u32 %v277_v20, %v273_v19  ;;  %v291_v38 = vsel %vm271_vm1, %v286_v34, %v290_v35  ;;  %v7247_v59 = vsel %vm693_vm2, %v694_v52, %v695_v49  ;;  %v7263_v3 = vsel %vm693_vm2, %v697_v57, %v699_v60  ;;  %v6774_v19 = vld [vmem:[%s9213_s1 + $0xb0] sm:$0xff]   ;;  %v6779_v31 = vld [vmem:[%s9213_s1 + $0xf8] sm:$0xff]   ;;  %p6963_p3 = pnand %p6962_p2, %p6956_p13 }
  0x22   : > { %v299_v53 = vsel %vm271_vm1, %v294_v44, %v298_v45  ;;  %v302_v4 = vor.u32 %v300_v54, %v298_v45  ;;  %v7272_v6 = vsel %vm693_vm2, %v699_v60, %v701_v63  ;;  %v703_v7 = vrot.slane %v7237_v55, 1  ;;  %v7355_v48 = vld [vmem:[%s7131_s26 + $0x18] sm:$0xff]  }
  0x23   : > { %5767 = vmatpush3.bf16.msra.mxu0 %v6748_v13  ;;  %v283_v29 = vsel %vm271_vm1, %v278_v25, %v282_v26  ;;  %v705_v9 = vrot.slane %v7252_v61, 1  ;;  %v308_v10 = vshrl.u32 %v7215_v43, 16  ;;  %v707_v17 = vrot.slane %v7269_v5, 1 }
  0x24   : > { %5819 = vmatpush3.bf16.msra.mxu1 %v6749_v16  ;;  %5768 = vmatprep.subr.bf16.mxu0 %v7017_v1  ;;  %v7290_v13 = vsel %vm693_vm2, %v701_v63, %v703_v7  ;;  %v709_v20 = vrot.slane %v7284_v11, 1  ;;  %v711_v25 = vrot.slane %v7287_v12, 1  ;;  %v328_v45 = vshll.u32 %v7269_v5, 16 }
  0x25   : > { %5820 = vmatprep.subr.bf16.mxu1 %v7017_v1  ;;  %v7296_v16 = vsel %vm693_vm2, %v703_v7, %v705_v9  ;;  %v310_v26 = vor.u32 %v308_v10, %v306_v0  ;;  %v1216_v57 = vshrl.u32 %v7355_v48, 16  ;;  %v1219_v63 = vshll.u32 %v7355_v48, 16 }
  0x26   : > { %v330_v52 = vrot.slane %v328_v45, 1 }
  0x27   : > { %5769 = vmatpush3.bf16.msra.mxu0 %v6750_v18  ;;  %v307_v18 = vsel %vm271_vm1, %v302_v4, %v306_v0  ;;  %v1492_v0 = vrot.slane %v7355_v48, 2  ;;  %v7367_v4 = vld [vmem:[%s7131_s26 + $0x28] sm:$0xff]   ;;  %v1221_v10 = vrot.slane %v1219_v63, 2 }
  0x28   : > { %5821 = vmatpush3.bf16.msra.mxu1 %v6751_v22  ;;  %5770 = vmatprep.subr.bf16.mxu0 %v7017_v1  ;;  %v7306_v22 = vsel %vm693_vm2, %v705_v9, %v707_v17 }
  0x29   : > { %5822 = vmatprep.subr.bf16.mxu1 %v7017_v1 }
  0x2b   : > { %5771 = vmatpush3.bf16.msra.mxu0 %v6752_v23  ;;  %v6776_v23 = vld [vmem:[%s9213_s1 + $0xf0] sm:$0xff]  }
  0x2c   : > { %5823 = vmatpush3.bf16.msra.mxu1 %v6753_v24  ;;  %5860 = vmatprep.subr.bf16.mxu0 %v7017_v1  ;;  %v7313_v24 = vsel %vm693_vm2, %v707_v17, %v709_v20  ;;  %v332_v17 = vshrl.u32 %v7269_v5, 16 }
  0x2d   : > { %5912 = vmatprep.subr.bf16.mxu1 %v7017_v1 }
  0x2e   : > { %5773 = vmatmul.mubr.bf16.vlgmr.msra.gmra.mrb[0].mxu0 %v283_v29  ;;  %v7323_v29 = vsel %vm693_vm2, %v709_v20, %v711_v25  ;;  %v7390_v25 = vld [vmem:[%s7131_s26 + $0x30] sm:$0xff]  }
  0x2f   : > { %5825 = vmatmul.mubr.bf16.vlgmr.msra.gmra.mrb[0].mxu1 %v4992_v14  ;;  %5861 = vmatpush3.bf16.msra.mxu0 %v6756_v28  ;;  %v312_v14 = vshll.u32 %v7237_v55, 16 }
  0x30   : > { %5913 = vmatpush3.bf16.msra.mxu1 %v6757_v32  ;;  %5776 = vmatprep.mubr.msk.bf16.mxu0 %vm7018_vm0, %v7017_v1 }
  0x31   : > { %5828 = vmatprep.mubr.msk.bf16.mxu1 %vm7018_vm0, %v7017_v1  ;;  %5862 = vmatprep.subr.bf16.mxu0 %v7017_v1 }
  0x32   : > { %5914 = vmatprep.subr.bf16.mxu1 %v7017_v1 }
  0x33   : > { %5863 = vmatpush3.bf16.msra.mxu0 %v6759_v33  ;;  %v316_v33 = vshrl.u32 %v7237_v55, 16 }
  0x34   : > { %5915 = vmatpush3.bf16.msra.mxu1 %v6760_v37  ;;  %5864 = vmatprep.subr.bf16.mxu0 %v7017_v1  ;;  %v7341_v37 = vld [vmem:[%s7131_s26 + $0x10] sm:$0xff]  }
  0x35   : > { %5916 = vmatprep.subr.bf16.mxu1 %v7017_v1  ;;  %v1207_v39 = vshrl.u32 %v7341_v37, 16  ;;  %v1490_v54 = vrot.slane %v7341_v37, 2 }
  0x36   : > { %5777 = vmatmul.mubr.bf16.gmra.mrb[4].mxu0 %v291_v38 }
  0x37   : > { %5829 = vmatmul.mubr.bf16.gmra.mrb[4].mxu1 %v7150_v15  ;;  %5780 = vmatprep.mubr.msk.bf16.mxu0 %vm7018_vm0, %v7017_v1  ;;  %v893_v15 = vld [vmem:[%s7131_s26 + $0x8] sm:$0xe]  ;;  %v1209_v46 = vrot.slane %v1207_v39, 1 }
  0x38   : > { %5832 = vmatprep.mubr.msk.bf16.mxu1 %vm7018_vm0, %v7017_v1  ;;  %5865 = vmatpush3.bf16.msra.mxu0 %v6762_v41  ;;  %v7320_v28 = vcombine.low %v893_v15, %v894_v21  ;;  %v1210_v41 = vshll.u32 %v7341_v37, 16 }
  0x39   : > { %5917 = vmatpush3.bf16.msra.mxu1 %v6763_v42  ;;  %5866 = vmatprep.subr.bf16.mxu0 %v7017_v1 }
  0x3a   : > { %5918 = vmatprep.subr.bf16.mxu1 %v7017_v1  ;;  %v1199_v32 = vshrl.u32 %v7320_v28, 16  ;;  %v1202_v34 = vshll.u32 %v7320_v28, 16 }
  0x3c   : > { %5867 = vmatpush3.bf16.msra.mxu0 %v6765_v47  ;;  %v1201_v38 = vrot.slane %v1199_v32, 1  ;;  %v1204_v40 = vrot.slane %v1202_v34, 2  ;;  %v324_v47 = vshrl.u32 %v7252_v61, 16 }
  0x3d   : > { %5919 = vmatpush3.bf16.msra.mxu1 %v6766_v50  ;;  %5868 = vmatprep.subr.bf16.mxu0 %v7017_v1  ;;  %v1467_v50 = vld [vmem:[%s7131_s26 + $0x8] sm:$0xc] }
  0x3e   : > { %5781 = vmatmul.mubr.bf16.gmra.mrb[8].mxu0 %v299_v53  ;;  %5920 = vmatprep.subr.bf16.mxu1 %v7017_v1  ;;  %v1205_v49 = vor.u32 %v1204_v40, %v1201_v38  ;;  %v5118_v53 = vcombine.low %v1467_v50, %v894_v21  ;;  %v1243_v40 = vshrl.u32 %v7390_v25, 16 }
  0x3f   : > { %5833 = vmatmul.mubr.bf16.gmra.mrb[8].mxu1 %v7173_v27  ;;  %5784 = vmatprep.mubr.msk.bf16.mxu0 %vm7018_vm0, %v7017_v1  ;;  %v314_v27 = vrot.slane %v312_v14, 1  ;;  %v7379_v14 = vsel %vm1488_vm4, %v1490_v54, %v1492_v0 }
  0x40   : > { %5836 = vmatprep.mubr.msk.bf16.mxu1 %vm7018_vm0, %v7017_v1  ;;  %5869 = vmatpush3.bf16.msra.mxu0 %v6768_v56  ;;  %v1489_v60 = vrot.slane %v5118_v53, 2  ;;  %v344_v53 = vshll.u32 %v7287_v12, 16 }
  0x41   : > { %5921 = vmatpush3.bf16.msra.mxu1 %v6769_v58  ;;  %5870 = vmatprep.subr.bf16.mxu0 %v7017_v1  ;;  %v315_v35 = vsel %vm271_vm1, %v310_v26, %v314_v27  ;;  %v318_v42 = vor.u32 %v316_v33, %v314_v27  ;;  %v7362_v58 = vld [vmem:[%s7131_s26 + $0x20] sm:$0xff]   ;;  %v340_v33 = vshrl.u32 %v7284_v11, 16 }
  0x42   : > { %5922 = vmatprep.subr.bf16.mxu1 %v7017_v1  ;;  %v7376_v9 = vsel %vm1488_vm4, %v1489_v60, %v1490_v54  ;;  %v1225_v15 = vshrl.u32 %v7362_v58, 16 }
  0x44   : > { %5871 = vmatpush3.bf16.msra.mxu0 %v6771_v2  ;;  %v1227_v21 = vrot.slane %v1225_v15, 1 }
  0x45   : > { %5923 = vmatpush3.bf16.msra.mxu1 %v6773_v8  ;;  %5872 = vmatprep.subr.bf16.mxu0 %v7017_v1  ;;  %v1218_v8 = vrot.slane %v1216_v57, 1 }
  0x46   : > { %5785 = vmatmul.mubr.bf16.gmra.mrb[12].mxu0 %v307_v18  ;;  %5924 = vmatprep.subr.bf16.mxu1 %v7017_v1  ;;  %v336_v18 = vshll.u32 %v7284_v11, 16 }
  0x47   : > { %5837 = vmatmul.mubr.bf16.gmra.mrb[12].mxu1 %v7192_v36  ;;  %5788 = vmatprep.mubr.msk.bf16.mxu0 %vm7018_vm0, %v7017_v1  ;;  %v320_v36 = vshll.u32 %v7252_v61, 16  ;;  %v1222_v20 = vor.u32 %v1221_v10, %v1218_v8 }
  0x48   : > { %5840 = vmatprep.mubr.msk.bf16.mxu1 %vm7018_vm0, %v7017_v1  ;;  %5873 = vmatpush3.bf16.msra.mxu0 %v6774_v19  ;;  %v1494_v19 = vrot.slane %v7362_v58, 2 }
  0x49   : > { %5925 = vmatpush3.bf16.msra.mxu1 %v6776_v23  ;;  %5874 = vmatprep.subr.bf16.mxu0 %v7017_v1  ;;  %v322_v44 = vrot.slane %v320_v36, 1  ;;  %v1234_v23 = vshrl.u32 %v7367_v4, 16 }
  0x4a   : > { %5926 = vmatprep.subr.bf16.mxu1 %v7017_v1  ;;  %v7393_v27 = vsel %vm1488_vm4, %v1492_v0, %v1494_v19 }
  0x4b   : > { %v323_v51 = vsel %vm271_vm1, %v318_v42, %v322_v44  ;;  %v326_v2 = vor.u32 %v324_v47, %v322_v44  ;;  %v1498_v42 = vrot.slane %v7390_v25, 2  ;;  %v7409_v44 = vld [vmem:[%s7131_s26 + $0x38] sm:$0xff]   ;;  %v1245_v47 = vrot.slane %v1243_v40, 1  ;;  %v6783_v40 = vld [vmem:[%s9213_s1 + $0x100] sm:$0xff]  }
  0x4c   : > { %5875 = vmatpush3.bf16.msra.mxu0 %v6778_v30  ;;  %v1237_v30 = vshll.u32 %v7367_v4, 16  ;;  %v1500_v12 = vrot.slane %v7409_v44, 2 }
  0x4d   : > { %5927 = vmatpush3.bf16.msra.mxu1 %v6779_v31  ;;  %5964 = vmatprep.subr.bf16.mxu0 %v7017_v1  ;;  %v1496_v31 = vrot.slane %v7367_v4, 2  ;;  %v331_v32 = vsel %vm271_vm1, %v326_v2, %v330_v52  ;;  %v7433_v2 = vld [vmem:[%s7131_s26 + $0x40] sm:$0xff]  }
  0x4e   : > { %5789 = vmatmul.mubr.bf16.gmra.mrb[16].mxu0 %v315_v35  ;;  %6016 = vmatprep.subr.bf16.mxu1 %v7017_v1  ;;  %v1236_v35 = vrot.slane %v1234_v23, 1  ;;  %v1239_v38 = vrot.slane %v1237_v30, 2  ;;  %v7440_v15 = vsel %vm1488_vm4, %v1498_v42, %v1500_v12 }
  0x4f   : > { %5841 = vmatmul.mubr.bf16.gmra.mrb[16].mxu1 %v7215_v43  ;;  %5792 = vmatprep.mubr.msk.bf16.mxu0 %vm7018_vm0, %v7017_v1  ;;  %v1212_v43 = vrot.slane %v1210_v41, 2  ;;  %v7403_v39 = vsel %vm1488_vm4, %v1494_v19, %v1496_v31  ;;  %v1246_v41 = vshll.u32 %v7390_v25, 16  ;;  %v1264_v19 = vshll.u32 %v7433_v2, 16 }
  0x50   : > { %5844 = vmatprep.mubr.msk.bf16.mxu1 %vm7018_vm0, %v7017_v1 }
  0x51   : > { %v1213_v56 = vor.u32 %v1212_v43, %v1209_v46  ;;  %v1240_v46 = vor.u32 %v1239_v38, %v1236_v35  ;;  %v338_v43 = vrot.slane %v336_v18, 1  ;;  %v1248_v50 = vrot.slane %v1246_v41, 2 }
  0x52   : > { %v346_v18 = vrot.slane %v344_v53, 1  ;;  %v978_v35 = vrot.slane %v7341_v37, 1 }
  0x53   : > { %v7370_v7 = vsel %vm1197_vm3, %v1205_v49, %v1213_v56  ;;  %v7400_v34 = vsel %vm1197_vm3, %v1213_v56, %v1222_v20  ;;  %v334_v49 = vor.u32 %v332_v17, %v330_v52  ;;  %v1255_v56 = vshll.u32 %v7409_v44, 16 }
  0x54   : > { %v1249_v57 = vor.u32 %v1248_v50, %v1245_v47  ;;  %v342_v17 = vor.u32 %v340_v33, %v338_v43  ;;  %v977_v33 = vrot.slane %v7320_v28, 1  ;;  %v6787_v50 = vld [vmem:[%s9213_s1 + $0x148] sm:$0xff]  }
  0x55   : > { %v1257_v52 = vrot.slane %v1255_v56, 2  ;;  %v339_v63 = vsel %vm271_vm1, %v334_v49, %v338_v43  ;;  %v6786_v43 = vld [vmem:[%s9213_s1 + $0x108] sm:$0xff]   ;;  %v982_v56 = vrot.slane %v7362_v58, 1 }
  0x56   : > { %5793 = vmatmul.mubr.bf16.gmra.mrb[20].mxu0 %v323_v51  ;;  %v7418_v51 = vsel %vm1488_vm4, %v1496_v31, %v1498_v42  ;;  %v7430_v0 = vsel %vm1197_vm3, %v1240_v46, %v1249_v57  ;;  %v347_v23 = vsel %vm271_vm1, %v342_v17, %v346_v18  ;;  %v979_v42 = vsel %vm693_vm2, %v977_v33, %v978_v35  ;;  %v6805_v18 = vld [vmem:[%s9213_s1 + $0x138] sm:$0xff]  }
  0x57   : > { %5845 = vmatmul.mubr.bf16.gmra.mrb[20].mxu1 %v7237_v55  ;;  %5796 = vmatprep.mubr.msk.bf16.mxu0 %vm7018_vm0, %v7017_v1  ;;  %v1228_v55 = vshll.u32 %v7362_v58, 16  ;;  %v6795_v58 = vld [vmem:[%s9213_s1 + $0x120] sm:$0xff]   ;;  %v6814_v33 = vld [vmem:[%s9213_s1 + $0x198] sm:$0xff]  }
  0x58   : > { %5848 = vmatprep.mubr.msk.bf16.mxu1 %vm7018_vm0, %v7017_v1 }
  0x59   : > { %v1230_v26 = vrot.slane %v1228_v55, 2  ;;  %v1261_v55 = vshrl.u32 %v7433_v2, 16 }
  0x5b   : > { %v1231_v36 = vor.u32 %v1230_v26, %v1227_v21  ;;  %v1266_v21 = vrot.slane %v1264_v19, 2  ;;  %v7451_v26 = vld [vmem:[%s7131_s26 + $0x48] sm:$0xff]  }
  0x5c   : > { %v1273_v38 = vshll.u32 %v7451_v26, 16  ;;  %v1504_v28 = vrot.slane %v7451_v26, 2 }
  0x5d   : > { %v7412_v45 = vsel %vm1197_vm3, %v1222_v20, %v1231_v36  ;;  %v7424_v54 = vsel %vm1197_vm3, %v1231_v36, %v1240_v46  ;;  %v1263_v20 = vrot.slane %v1261_v55, 1  ;;  %v1270_v36 = vshrl.u32 %v7451_v26, 16  ;;  %v6784_v46 = vld [vmem:[%s9213_s1 + $0x140] sm:$0xff]  }
  0x5e   : > { %5797 = vmatmul.mubr.bf16.gmra.mrb[24].mxu0 %v331_v32  ;;  %v986_v55 = vrot.slane %v7390_v25, 1  ;;  %v988_v25 = vrot.slane %v7409_v44, 1 }
  0x5f   : > { %5849 = vmatmul.mubr.bf16.gmra.mrb[24].mxu1 %v7252_v61  ;;  %5800 = vmatprep.mubr.msk.bf16.mxu0 %vm7018_vm0, %v7017_v1  ;;  %v1252_v61 = vshrl.u32 %v7409_v44, 16  ;;  %v1267_v30 = vor.u32 %v1266_v21, %v1263_v20  ;;  %v1272_v41 = vrot.slane %v1270_v36, 1  ;;  %v6804_v44 = vld [vmem:[%s7131_s26 + $0x50] ss:$0 sps:$4 sm:$0x11]   ;;  %v6818_v36 = vld [vmem:[%s9213_s1 + $0x1a8] sm:$0xff]  }
  0x60   : > { %5852 = vmatprep.mubr.msk.bf16.mxu1 %vm7018_vm0, %v7017_v1  ;;  %v989_v20 = vsel %vm693_vm2, %v986_v55, %v988_v25 }
  0x61   : > { %v1254_v60 = vrot.slane %v1252_v61, 1  ;;  %v6790_v61 = vld [vmem:[%s9213_s1 + $0x150] sm:$0xff]  }
  0x63   : > { %v1258_v8 = vor.u32 %v1257_v52, %v1254_v60  ;;  %v6793_v60 = vld [vmem:[%s9213_s1 + $0x158] sm:$0xff]   ;;  %v6796_v52 = vld [vmem:[%s9213_s1 + $0x160] sm:$0xff]  }
  0x65   : > { %v7437_v10 = vsel %vm1197_vm3, %v1249_v57, %v1258_v8  ;;  %v7455_v31 = vsel %vm1197_vm3, %v1258_v8, %v1267_v30  ;;  %v6792_v57 = vld [vmem:[%s9213_s1 + $0x118] sm:$0xff]   ;;  %v984_v8 = vrot.slane %v7367_v4, 1  ;;  %v6803_v4 = vld [vmem:[%s9213_s1 + $0x170] sm:$0xff]  }
  0x66   : > { %5801 = vmatmul.mubr.bf16.gmra.mrb[28].mxu0 %v339_v63  ;;  %v6798_v63 = vld [vmem:[%s9213_s1 + $0x128] sm:$0xff]  }
  0x67   : > { %5853 = vmatmul.mubr.bf16.gmra.mrb[28].mxu1 %v7269_v5  ;;  %5804 = vmatprep.mubr.msk.bf16.mxu0 %vm7018_vm0, %v7017_v1  ;;  %v1502_v5 = vrot.slane %v7433_v2, 2  ;;  %v985_v17 = vsel %vm693_vm2, %v982_v56, %v984_v8  ;;  %v987_v19 = vsel %vm693_vm2, %v984_v8, %v986_v55  ;;  %v6827_v55 = vld [vmem:[%s9213_s1 + $0x200] sm:$0xff]  }
  0x68   : > { %5856 = vmatprep.mubr.msk.bf16.mxu1 %vm7018_vm0, %v7017_v1 }
  0x69   : > { %v7458_v32 = vsel %vm1488_vm4, %v1500_v12, %v1502_v5  ;;  %v7487_v49 = vsel %vm1488_vm4, %v1502_v5, %v1504_v28  ;;  %v6801_v12 = vld [vmem:[%s9213_s1 + $0x130] sm:$0xff]   ;;  %v6811_v5 = vld [vmem:[%s9213_s1 + $0x1c8] sm:$0xff]  }
  0x6e   : > { %5805 = vmatmul.mubr.bf16.gmra.mrb[32].mxu0 %v347_v23 }
  0x6f   : > { %5857 = vmatmul.mubr.bf16.gmra.mrb[32].mxu1 %v7284_v11  ;;  %5876 = vmatprep.mubr.msk.bf16.mxu0 %vm7018_vm0, %v7017_v1  ;;  %v1275_v11 = vrot.slane %v1273_v38, 2  ;;  %v6821_v38 = vld [vmem:[%s9213_s1 + $0x1f0] sm:$0xff]  }
  0x70   : > { %5928 = vmatprep.mubr.msk.bf16.mxu1 %vm7018_vm0, %v7017_v1 }
  0x71   : > { %v7476_v47 = vor.u32 %v1275_v11, %v1272_v41 }
  0x73   : > { %v7482_v37 = vsel %vm1197_vm3, %v1267_v30, %v7476_v47  ;;  %v6809_v30 = vld [vmem:[%s9213_s1 + $0x1c0] sm:$0xff]  }
  0x76   : > { %5877 = vmatmul.mubr.bf16.vlgmr.msra.gmra.mrb[36].mxu0 %v7247_v59  ;;  %v980_v59 = vrot.slane %v7355_v48, 1  ;;  %v6789_v48 = vld [vmem:[%s9213_s1 + $0x110] sm:$0xff]  }
  0x77   : > { %5929 = vmatmul.mubr.bf16.vlgmr.msra.gmra.mrb[36].mxu1 %v979_v42  ;;  %5965 = vmatpush3.bf16.msra.mxu0 %v6783_v40  ;;  %v6823_v40 = vld [vmem:[%s9213_s1 + $0x1b8] sm:$0xff]  }
  0x78   : > { %6017 = vmatpush3.bf16.msra.mxu1 %v6784_v46  ;;  %5880 = vmatprep.mubr.msk.bf16.mxu0 %vm7018_vm0, %v7017_v1  ;;  %v981_v53 = vsel %vm693_vm2, %v978_v35, %v980_v59  ;;  %v6817_v35 = vld [vmem:[%s9213_s1 + $0x1e0] sm:$0xff]   ;;  %v7720_v46 = vld [vmem:[%s7131_s26 + $0x18] sm:$0xff]  }
  0x79   : > { %5932 = vmatprep.mubr.msk.bf16.mxu1 %vm7018_vm0, %v7017_v1  ;;  %5966 = vmatprep.subr.bf16.mxu0 %v7017_v1 }
  0x7a   : > { %6018 = vmatprep.subr.bf16.mxu1 %v7017_v1 }
  0x7b   : > { %5967 = vmatpush3.bf16.msra.mxu0 %v6786_v43 }
  0x7c   : > { %6019 = vmatpush3.bf16.msra.mxu1 %v6787_v50  ;;  %5968 = vmatprep.subr.bf16.mxu0 %v7017_v1  ;;  %v2002_v50 = vshrl.u32 %v7720_v46, 16 }
  0x7d   : > { %6020 = vmatprep.subr.bf16.mxu1 %v7017_v1 }
  0x7e   : > { %5881 = vmatmul.mubr.bf16.gmra.mrb[40].mxu0 %v7255_v62  ;;  %v983_v62 = vsel %vm693_vm2, %v980_v59, %v982_v56  ;;  %v2004_v56 = vrot.slane %v2002_v50, 2  ;;  %v6837_v50 = vld [vmem:[%s9213_s1 + $0x58] sm:$0xff]  }
  0x7f   : > { %5933 = vmatmul.mubr.bf16.gmra.mrb[40].mxu1 %v981_v53  ;;  %5884 = vmatprep.mubr.msk.bf16.mxu0 %vm7018_vm0, %v7017_v1  ;;  %v2005_v53 = vshll.u32 %v7720_v46, 16 }
  0x80   : > { %5936 = vmatprep.mubr.msk.bf16.mxu1 %vm7018_vm0, %v7017_v1  ;;  %5969 = vmatpush3.bf16.msra.mxu0 %v6789_v48 }
  0x81   : > { %6021 = vmatpush3.bf16.msra.mxu1 %v6790_v61  ;;  %5970 = vmatprep.subr.bf16.mxu0 %v7017_v1 }
  0x82   : > { %6022 = vmatprep.subr.bf16.mxu1 %v7017_v1 }
  0x84   : > { %5971 = vmatpush3.bf16.msra.mxu0 %v6792_v57  ;;  %v2007_v57 = vrot.slane %v2005_v53, 3 }
  0x85   : > { %6023 = vmatpush3.bf16.msra.mxu1 %v6793_v60  ;;  %5972 = vmatprep.subr.bf16.mxu0 %v7017_v1  ;;  %v7736_v60 = vld [vmem:[%s7131_s26 + $0x20] sm:$0xff]  }
  0x86   : > { %5885 = vmatmul.mubr.bf16.gmra.mrb[44].mxu0 %v7263_v3  ;;  %6024 = vmatprep.subr.bf16.mxu1 %v7017_v1  ;;  %v6800_v3 = vld [vmem:[%s9213_s1 + $0x168] sm:$0xff]  }
  0x87   : > { %5937 = vmatmul.mubr.bf16.gmra.mrb[44].mxu1 %v983_v62  ;;  %5888 = vmatprep.mubr.msk.bf16.mxu0 %vm7018_vm0, %v7017_v1 }
  0x88   : > { %5940 = vmatprep.mubr.msk.bf16.mxu1 %vm7018_vm0, %v7017_v1  ;;  %5973 = vmatpush3.bf16.msra.mxu0 %v6795_v58  ;;  %v1773_v58 = vrot.slane %v7720_v46, 2 }
  0x89   : > { %6025 = vmatpush3.bf16.msra.mxu1 %v6796_v52  ;;  %5974 = vmatprep.subr.bf16.mxu0 %v7017_v1  ;;  %v2014_v52 = vshll.u32 %v7736_v60, 16 }
  0x8a   : > { %6026 = vmatprep.subr.bf16.mxu1 %v7017_v1 }
  0x8c   : > { %5975 = vmatpush3.bf16.msra.mxu0 %v6798_v63 }
  0x8d   : > { %6027 = vmatpush3.bf16.msra.mxu1 %v6800_v3  ;;  %5976 = vmatprep.subr.bf16.mxu0 %v7017_v1 }
  0x8e   : > { %5889 = vmatmul.mubr.bf16.gmra.mrb[48].mxu0 %v7272_v6  ;;  %6028 = vmatprep.subr.bf16.mxu1 %v7017_v1  ;;  %v6806_v6 = vld [vmem:[%s9213_s1 + $0x178] sm:$0xff]  }
  0x8f   : > { %5941 = vmatmul.mubr.bf16.gmra.mrb[48].mxu1 %v985_v17  ;;  %5892 = vmatprep.mubr.msk.bf16.mxu0 %vm7018_vm0, %v7017_v1 }
  0x90   : > { %5944 = vmatprep.mubr.msk.bf16.mxu1 %vm7018_vm0, %v7017_v1  ;;  %5977 = vmatpush3.bf16.msra.mxu0 %v6801_v12 }
  0x91   : > { %6029 = vmatpush3.bf16.msra.mxu1 %v6803_v4  ;;  %5978 = vmatprep.subr.bf16.mxu0 %v7017_v1 }
  0x92   : > { %6030 = vmatprep.subr.bf16.mxu1 %v7017_v1 }
  0x94   : > { %5979 = vmatpush3.bf16.msra.mxu0 %v6805_v18 }
  0x95   : > { %6031 = vmatpush3.bf16.msra.mxu1 %v6806_v6  ;;  %6068 = vmatprep.subr.bf16.mxu0 %v7017_v1 }
  0x96   : > { %5893 = vmatmul.mubr.bf16.gmra.mrb[52].mxu0 %v7290_v13  ;;  %6120 = vmatprep.subr.bf16.mxu1 %v7017_v1  ;;  %v990_v13 = vrot.slane %v7433_v2, 1 }
  0x97   : > { %5945 = vmatmul.mubr.bf16.gmra.mrb[52].mxu1 %v987_v19  ;;  %5896 = vmatprep.mubr.msk.bf16.mxu0 %vm7018_vm0, %v7017_v1 }
  0x98   : > { %5948 = vmatprep.mubr.msk.bf16.mxu1 %vm7018_vm0, %v7017_v1  ;;  %v991_v21 = vsel %vm693_vm2, %v988_v25, %v990_v13 }
  0x9e   : > { %5897 = vmatmul.mubr.bf16.gmra.mrb[56].mxu0 %v7296_v16  ;;  %v992_v16 = vrot.slane %v7451_v26, 1 }
  0x9f   : > { %5949 = vmatmul.mubr.bf16.gmra.mrb[56].mxu1 %v989_v20  ;;  %5900 = vmatprep.mubr.msk.bf16.mxu0 %vm7018_vm0, %v7017_v1  ;;  %v6828_v20 = vld [vmem:[%s9213_s1 + $0x40] sm:$0xff]  }
  0xa0   : > { %5952 = vmatprep.mubr.msk.bf16.mxu1 %vm7018_vm0, %v7017_v1  ;;  %v993_v23 = vsel %vm693_vm2, %v990_v13, %v992_v16 }
  0xa6   : > { %5901 = vmatmul.mubr.bf16.gmra.mrb[60].mxu0 %v7306_v22  ;;  %v994_v22 = vrot.slane %v6804_v44, 1 }
  0xa7   : > { %5953 = vmatmul.mubr.bf16.gmra.mrb[60].mxu1 %v991_v21  ;;  %5904 = vmatprep.mubr.msk.bf16.mxu0 %vm7018_vm0, %v7017_v1  ;;  %v2016_v21 = vrot.slane %v2014_v52, 3  ;;  %v6839_v52 = vld [vmem:[%s9213_s1 + $0x220] sm:$0xff]  }
  0xa8   : > { %5956 = vmatprep.mubr.msk.bf16.mxu1 %vm7018_vm0, %v7017_v1  ;;  %v995_v2 = vsel %vm693_vm2, %v992_v16, %v994_v22  ;;  %v7756_v16 = vld [vmem:[%s7131_s26 + $0x28] sm:$0xff]   ;;  %v1775_v22 = vrot.slane %v7736_v60, 2 }
  0xae   : > { %5905 = vmatmul.mubr.bf16.gmra.mrb[64].mxu0 %v7313_v24  ;;  %v6808_v24 = vld [vmem:[%s9213_s1 + $0x180] sm:$0xff]  }
  0xaf   : > { %5957 = vmatmul.mubr.bf16.gmra.mrb[64].mxu1 %v993_v23  ;;  %5908 = vmatprep.mubr.msk.bf16.mxu0 %vm7018_vm0, %v7017_v1 }
  0xb0   : > { %5960 = vmatprep.mubr.msk.bf16.mxu1 %vm7018_vm0, %v7017_v1 }
  0xb6   : > { %5909 = vmatmul.mubr.bf16.gmra.mrb[68].mxu0 %v7323_v29  ;;  %v6810_v29 = vld [vmem:[%s9213_s1 + $0x188] sm:$0xff]  }
  0xb7   : > { %5961 = vmatmul.mubr.bf16.gmra.mrb[68].mxu1 %v995_v2  ;;  %5980 = vmatprep.mubr.msk.bf16.mxu0 %vm7018_vm0, %v7017_v1  ;;  %v6830_v2 = vld [vmem:[%s9213_s1 + $0x208] sm:$0xff]  }
  0xb8   : > { %6032 = vmatprep.mubr.msk.bf16.mxu1 %vm7018_vm0, %v7017_v1 }
  0xbe   : > { %5981 = vmatmul.mubr.bf16.vlgmr.msra.gmra.mrb[72].mxu0 %v7370_v7  ;;  %v6812_v7 = vld [vmem:[%s9213_s1 + $0x190] sm:$0xff]  }
  0xbf   : > { %6033 = vmatmul.mubr.bf16.vlgmr.msra.gmra.mrb[72].mxu1 %v7376_v9  ;;  %6069 = vmatpush3.bf16.msra.mxu0 %v6808_v24  ;;  %v6813_v9 = vld [vmem:[%s9213_s1 + $0x1d0] sm:$0xff]  }
  0xc0   : > { %6121 = vmatpush3.bf16.msra.mxu1 %v6809_v30  ;;  %5984 = vmatprep.mubr.msk.bf16.mxu0 %vm7018_vm0, %v7017_v1  ;;  %v6831_v30 = vld [vmem:[%s9213_s1 + $0x48] sm:$0xff]  }
  0xc1   : > { %6036 = vmatprep.mubr.msk.bf16.mxu1 %vm7018_vm0, %v7017_v1  ;;  %6070 = vmatprep.subr.bf16.mxu0 %v7017_v1 }
  0xc2   : > { %6122 = vmatprep.subr.bf16.mxu1 %v7017_v1 }
  0xc3   : > { %6071 = vmatpush3.bf16.msra.mxu0 %v6810_v29  ;;  %v2020_v29 = vshrl.u32 %v7756_v16, 16 }
  0xc4   : > { %6123 = vmatpush3.bf16.msra.mxu1 %v6811_v5  ;;  %6072 = vmatprep.subr.bf16.mxu0 %v7017_v1  ;;  %v2023_v5 = vshll.u32 %v7756_v16, 16 }
  0xc5   : > { %6124 = vmatprep.subr.bf16.mxu1 %v7017_v1 }
  0xc6   : > { %5985 = vmatmul.mubr.bf16.gmra.mrb[76].mxu0 %v7400_v34  ;;  %v6815_v34 = vld [vmem:[%s9213_s1 + $0x1d8] sm:$0xff]  }
  0xc7   : > { %6037 = vmatmul.mubr.bf16.gmra.mrb[76].mxu1 %v7379_v14  ;;  %5988 = vmatprep.mubr.msk.bf16.mxu0 %vm7018_vm0, %v7017_v1  ;;  %v6816_v14 = vld [vmem:[%s9213_s1 + $0x1a0] sm:$0xff]  }
  0xc8   : > { %6040 = vmatprep.mubr.msk.bf16.mxu1 %vm7018_vm0, %v7017_v1  ;;  %6073 = vmatpush3.bf16.msra.mxu0 %v6812_v7 }
  0xc9   : > { %6125 = vmatpush3.bf16.msra.mxu1 %v6813_v9  ;;  %6074 = vmatprep.subr.bf16.mxu0 %v7017_v1 }
  0xca   : > { %6126 = vmatprep.subr.bf16.mxu1 %v7017_v1 }
  0xcc   : > { %6075 = vmatpush3.bf16.msra.mxu0 %v6814_v33 }
  0xcd   : > { %6127 = vmatpush3.bf16.msra.mxu1 %v6815_v34  ;;  %6076 = vmatprep.subr.bf16.mxu0 %v7017_v1 }
  0xce   : > { %5989 = vmatmul.mubr.bf16.gmra.mrb[80].mxu0 %v7412_v45  ;;  %6128 = vmatprep.subr.bf16.mxu1 %v7017_v1  ;;  %v6819_v45 = vld [vmem:[%s9213_s1 + $0x1e8] sm:$0xff]  }
  0xcf   : > { %6041 = vmatmul.mubr.bf16.gmra.mrb[80].mxu1 %v7393_v27  ;;  %5992 = vmatprep.mubr.msk.bf16.mxu0 %vm7018_vm0, %v7017_v1  ;;  %v6820_v27 = vld [vmem:[%s9213_s1 + $0x1b0] sm:$0xff]  }
  0xd0   : > { %6044 = vmatprep.mubr.msk.bf16.mxu1 %vm7018_vm0, %v7017_v1  ;;  %6077 = vmatpush3.bf16.msra.mxu0 %v6816_v14 }
  0xd1   : > { %6129 = vmatpush3.bf16.msra.mxu1 %v6817_v35  ;;  %6078 = vmatprep.subr.bf16.mxu0 %v7017_v1 }
  0xd2   : > { %6130 = vmatprep.subr.bf16.mxu1 %v7017_v1 }
  0xd4   : > { %6079 = vmatpush3.bf16.msra.mxu0 %v6818_v36  ;;  %v1776_v36 = vsel %vm1488_vm4, %v1773_v58, %v1775_v22 }
  0xd5   : > { %6131 = vmatpush3.bf16.msra.mxu1 %v6819_v45  ;;  %6080 = vmatprep.subr.bf16.mxu0 %v7017_v1 }
  0xd6   : > { %5993 = vmatmul.mubr.bf16.gmra.mrb[84].mxu0 %v7424_v54  ;;  %6132 = vmatprep.subr.bf16.mxu1 %v7017_v1  ;;  %v6824_v54 = vld [vmem:[%s9213_s1 + $0x1f8] sm:$0xff]  }
  0xd7   : > { %6045 = vmatmul.mubr.bf16.gmra.mrb[84].mxu1 %v7403_v39  ;;  %5996 = vmatprep.mubr.msk.bf16.mxu0 %vm7018_vm0, %v7017_v1  ;;  %v6822_v39 = vld [vmem:[%s7131_s26 + $0x50] ss:$0 sps:$4 sm:$0x33]  }
  0xd8   : > { %6048 = vmatprep.mubr.msk.bf16.mxu1 %vm7018_vm0, %v7017_v1  ;;  %6081 = vmatpush3.bf16.msra.mxu0 %v6820_v27 }
  0xd9   : > { %6133 = vmatpush3.bf16.msra.mxu1 %v6821_v38  ;;  %6082 = vmatprep.subr.bf16.mxu0 %v7017_v1 }
  0xda   : > { %6134 = vmatprep.subr.bf16.mxu1 %v7017_v1 }
  0xdc   : > { %6083 = vmatpush3.bf16.msra.mxu0 %v6823_v40  ;;  %v2022_v40 = vrot.slane %v2020_v29, 2 }
  0xdd   : > { %6135 = vmatpush3.bf16.msra.mxu1 %v6824_v54  ;;  %6172 = vmatprep.subr.bf16.mxu0 %v7017_v1  ;;  %v2025_v54 = vrot.slane %v2023_v5, 3 }
  0xde   : > { %5997 = vmatmul.mubr.bf16.gmra.mrb[88].mxu0 %v7430_v0  ;;  %6224 = vmatprep.subr.bf16.mxu1 %v7017_v1  ;;  %v1282_v0 = vshll.u32 %v6822_v39, 16 }
  0xdf   : > { %6049 = vmatmul.mubr.bf16.gmra.mrb[88].mxu1 %v7418_v51  ;;  %6000 = vmatprep.mubr.msk.bf16.mxu0 %vm7018_vm0, %v7017_v1  ;;  %v1279_v51 = vshrl.u32 %v6822_v39, 16 }
  0xe0   : > { %6052 = vmatprep.mubr.msk.bf16.mxu1 %vm7018_vm0, %v7017_v1  ;;  %v1284_v11 = vrot.slane %v1282_v0, 2 }
  0xe1   : > { %v1281_v41 = vrot.slane %v1279_v51, 1  ;;  %v7784_v51 = vld [vmem:[%s7131_s26 + $0x30] sm:$0xff]  }
  0xe6   : > { %6001 = vmatmul.mubr.bf16.gmra.mrb[92].mxu0 %v7437_v10  ;;  %v1688_v10 = vld [vmem:[%s7131_s26 + $0x10] sm:$0xc] }
  0xe7   : > { %6053 = vmatmul.mubr.bf16.gmra.mrb[92].mxu1 %v7440_v15  ;;  %6004 = vmatprep.mubr.msk.bf16.mxu0 %vm7018_vm0, %v7017_v1  ;;  %v7716_v15 = vld [vmem:[%s7131_s26 + $0x14] sm:$0xf] }
  0xe8   : > { %6056 = vmatprep.mubr.msk.bf16.mxu1 %vm7018_vm0, %v7017_v1  ;;  %v5143_v42 = vcombine.low %v1688_v10, %v7716_v15 }
  0xea   : > { %v1994_v43 = vshrl.u32 %v5143_v42, 16  ;;  %v1997_v59 = vshll.u32 %v5143_v42, 16  ;;  %v1772_v62 = vrot.slane %v5143_v42, 2  ;;  %v2026_v42 = vor.u32 %v2025_v54, %v2022_v40  ;;  %v6850_v54 = vld [vmem:[%s9213_s1 + $0x238] sm:$0xff]  }
  0xec   : > { %v1996_v48 = vrot.slane %v1994_v43, 2  ;;  %v1999_v61 = vrot.slane %v1997_v59, 3  ;;  %v1774_v18 = vsel %vm1488_vm4, %v1772_v62, %v1773_v58  ;;  %v6836_v43 = vld [vmem:[%s9213_s1 + $0x218] sm:$0xff]  }
  0xee   : > { %6005 = vmatmul.mubr.bf16.gmra.mrb[96].mxu0 %v7455_v31  ;;  %v1285_v31 = vor.u32 %v1284_v11, %v1281_v41  ;;  %v2000_v26 = vor.u32 %v1999_v61, %v1996_v48  ;;  %v6834_v41 = vld [vmem:[%s9213_s1 + $0x50] sm:$0xff]   ;;  %v1777_v11 = vrot.slane %v7756_v16, 2 }
  0xef   : > { %6057 = vmatmul.mubr.bf16.gmra.mrb[96].mxu1 %v7458_v32  ;;  %6008 = vmatprep.mubr.msk.bf16.mxu0 %vm7018_vm0, %v7017_v1  ;;  %v1506_v32 = vrot.slane %v6822_v39, 2  ;;  %v6833_v39 = vld [vmem:[%s9213_s1 + $0x210] sm:$0xff]  }
  0xf0   : > { %6060 = vmatprep.mubr.msk.bf16.mxu1 %vm7018_vm0, %v7017_v1 }
  0xf6   : > { %6009 = vmatmul.mubr.bf16.gmra.mrb[100].mxu0 %v7482_v37  ;;  %v1286_v37 = vsel %vm1197_vm3, %v7476_v47, %v1285_v31  ;;  %v2008_v47 = vor.u32 %v2007_v57, %v2004_v56  ;;  %v2029_v31 = vshrl.u32 %v7784_v51, 16  ;;  %v1778_v56 = vsel %vm1488_vm4, %v1775_v22, %v1777_v11 }
  0xf7   : > { %6061 = vmatmul.mubr.bf16.gmra.mrb[100].mxu1 %v7487_v49  ;;  %6012 = vmatprep.mubr.msk.bf16.mxu0 %vm7018_vm0, %v7017_v1  ;;  %v1507_v49 = vsel %vm1488_vm4, %v1504_v28, %v1506_v32  ;;  %v2011_v28 = vshrl.u32 %v7736_v60, 16  ;;  %v2032_v32 = vshll.u32 %v7784_v51, 16 }
  0xf8   : > { %6064 = vmatprep.mubr.msk.bf16.mxu1 %vm7018_vm0, %v7017_v1  ;;  %v2009_v25 = vsel %vm1992_vm5, %v2000_v26, %v2008_v47  ;;  %v2031_v26 = vrot.slane %v2029_v31, 2 }
  0xf9   : > { %v2013_v13 = vrot.slane %v2011_v28, 2  ;;  %v7812_v28 = vld [vmem:[%s7131_s26 + $0x38] sm:$0xff]  }
  0xfb   : > { %v2017_v24 = vor.u32 %v2016_v21, %v2013_v13 }
  0xfd   : > { %v2018_v38 = vsel %vm1992_vm5, %v2008_v47, %v2017_v24  ;;  %v2027_v58 = vsel %vm1992_vm5, %v2017_v24, %v2026_v42  ;;  %v2034_v47 = vrot.slane %v2032_v32, 3 }
  0xfe   : > { %6013 = vmatmul.mubr.bf16.gmra.mrb[104].mxu0 %v1286_v37 }
  0xff   : > { %6065 = vmatmul.mubr.bf16.gmra.mrb[104].mxu1 %v1507_v49  ;;  %6084 = vmatprep.mubr.msk.bf16.mxu0 %vm7018_vm0, %v7017_v1 }
 0x100   : > { %6136 = vmatprep.mubr.msk.bf16.mxu1 %vm7018_vm0, %v7017_v1 }
 0x101   : > { %v439_v63 = vpop.f32.mrb[0].mxu0 }
 0x102   : > { %v601_v8 = vpop.f32.mrb[0].mxu1  ;;  %v5774_v3 = vpop.f32.mrb[1].mxu0 }
 0x103   : > { %v7745_v12 = vadd.f32 %v601_v8, %v439_v63  ;;  %v5826_v17 = vpop.f32.mrb[1].mxu1  ;;  %v442_v4 = vpop.f32.mrb[2].mxu0  ;;  %v6840_v3 = vld [vmem:[%s9213_s1 + $0x60] sm:$0xff]  }
 0x104   : > { %v604_v6 = vpop.f32.mrb[2].mxu1  ;;  %v5775_v19 = vpop.f32.mrb[3].mxu0  ;;  %v1779_v17 = vrot.slane %v7784_v51, 2 }
 0x105   : > { %v7758_v44 = vadd.f32 %v604_v6, %v442_v4  ;;  %v5827_v23 = vpop.f32.mrb[3].mxu1  ;;  %v2035_v4 = vor.u32 %v2034_v47, %v2031_v26  ;;  %v6842_v6 = vld [vmem:[%s9213_s1 + $0x228] sm:$0xff]  }
 0x106   : > { %6085 = vmatmul.mubr.bf16.vlgmr.msra.gmra.mrb[108].mxu0 %v1774_v18  ;;  %v2038_v18 = vshrl.u32 %v7812_v28, 16 }
 0x107   : > { %6137 = vmatmul.mubr.bf16.vlgmr.msra.gmra.mrb[108].mxu1 %v2009_v25  ;;  %6173 = vmatpush3.bf16.msra.mxu0 %v6827_v55  ;;  %v2041_v55 = vshll.u32 %v7812_v28, 16  ;;  %v6844_v25 = vld [vmem:[%s9213_s1 + $0x68] sm:$0xff]   ;;  %v2036_v29 = vsel %vm1992_vm5, %v2026_v42, %v2035_v4 }
 0x108   : > { %6225 = vmatpush3.bf16.msra.mxu1 %v6828_v20  ;;  %6088 = vmatprep.mubr.msk.bf16.mxu0 %vm7018_vm0, %v7017_v1  ;;  %v2040_v5 = vrot.slane %v2038_v18, 2 }
 0x109   : > { %v447_v7 = vpop.f32.mrb[4].mxu0  ;;  %6140 = vmatprep.mubr.msk.bf16.mxu1 %vm7018_vm0, %v7017_v1  ;;  %6174 = vmatprep.subr.bf16.mxu0 %v7017_v1 }
 0x10a   : > { %v609_v9 = vpop.f32.mrb[4].mxu1  ;;  %v5778_v33 = vpop.f32.mrb[5].mxu0  ;;  %6226 = vmatprep.subr.bf16.mxu1 %v7017_v1 }
 0x10b   : > { %v7775_v34 = vadd.f32 %v609_v9, %v447_v7  ;;  %v5830_v14 = vpop.f32.mrb[5].mxu1  ;;  %v450_v35 = vpop.f32.mrb[6].mxu0  ;;  %6175 = vmatpush3.bf16.msra.mxu0 %v6830_v2  ;;  %v1780_v2 = vsel %vm1488_vm4, %v1777_v11, %v1779_v17  ;;  %v2043_v7 = vrot.slane %v2041_v55, 3  ;;  %v7844_v9 = vld [vmem:[%s7131_s26 + $0x40] sm:$0xff]   ;;  %v6845_v33 = vld [vmem:[%s9213_s1 + $0x230] sm:$0xff]  }
 0x10c   : > { %v612_v45 = vpop.f32.mrb[6].mxu1  ;;  %v5779_v27 = vpop.f32.mrb[7].mxu0  ;;  %6227 = vmatpush3.bf16.msra.mxu1 %v6831_v30  ;;  %6176 = vmatprep.subr.bf16.mxu0 %v7017_v1  ;;  %v2050_v40 = vshll.u32 %v7844_v9, 16 }
 0x10d   : > { %v7786_v0 = vadd.f32 %v612_v45, %v450_v35  ;;  %v5831_v10 = vpop.f32.mrb[7].mxu1  ;;  %6228 = vmatprep.subr.bf16.mxu1 %v7017_v1  ;;  %v1781_v45 = vrot.slane %v7812_v28, 2  ;;  %v2044_v27 = vor.u32 %v2043_v7, %v2040_v5 }
 0x10e   : > { %6089 = vmatmul.mubr.bf16.gmra.mrb[112].mxu0 %v1776_v36  ;;  %v6847_v36 = vld [vmem:[%s9213_s1 + $0x70] sm:$0xff]   ;;  %v6851_v10 = vld [vmem:[%s9213_s1 + $0x78] sm:$0xff]  }
 0x10f   : > { %6141 = vmatmul.mubr.bf16.gmra.mrb[112].mxu1 %v2018_v38  ;;  %6092 = vmatprep.mubr.msk.bf16.mxu0 %vm7018_vm0, %v7017_v1  ;;  %v2047_v38 = vshrl.u32 %v7844_v9, 16 }
 0x110   : > { %6144 = vmatprep.mubr.msk.bf16.mxu1 %vm7018_vm0, %v7017_v1  ;;  %6177 = vmatpush3.bf16.msra.mxu0 %v6833_v39 }
 0x111   : > { %v455_v59 = vpop.f32.mrb[8].mxu0  ;;  %6229 = vmatpush3.bf16.msra.mxu1 %v6834_v41  ;;  %6178 = vmatprep.subr.bf16.mxu0 %v7017_v1 }
 0x112   : > { %v617_v53 = vpop.f32.mrb[8].mxu1  ;;  %v5782_v37 = vpop.f32.mrb[9].mxu0  ;;  %6230 = vmatprep.subr.bf16.mxu1 %v7017_v1 }
 0x113   : > { %v7807_v49 = vadd.f32 %v617_v53, %v455_v59  ;;  %v5834_v48 = vpop.f32.mrb[9].mxu1  ;;  %v458_v61 = vpop.f32.mrb[10].mxu0  ;;  %v2045_v53 = vsel %vm1992_vm5, %v2035_v4, %v2044_v27  ;;  %v2049_v37 = vrot.slane %v2047_v38, 2 }
 0x114   : > { %v620_v57 = vpop.f32.mrb[10].mxu1  ;;  %v5783_v62 = vpop.f32.mrb[11].mxu0  ;;  %6179 = vmatpush3.bf16.msra.mxu0 %v6836_v43  ;;  %v1782_v43 = vsel %vm1488_vm4, %v1779_v17, %v1781_v45  ;;  %v2052_v48 = vrot.slane %v2050_v40, 3 }
 0x115   : > { %v7817_v63 = vadd.f32 %v620_v57, %v458_v61  ;;  %v5835_v8 = vpop.f32.mrb[11].mxu1  ;;  %6231 = vmatpush3.bf16.msra.mxu1 %v6837_v50  ;;  %6180 = vmatprep.subr.bf16.mxu0 %v7017_v1  ;;  %v7876_v61 = vld [vmem:[%s7131_s26 + $0x48] sm:$0xff]   ;;  %v1783_v62 = vrot.slane %v7844_v9, 2 }
 0x116   : > { %6093 = vmatmul.mubr.bf16.gmra.mrb[116].mxu0 %v1778_v56  ;;  %6232 = vmatprep.subr.bf16.mxu1 %v7017_v1  ;;  %v2056_v26 = vshrl.u32 %v7876_v61, 16  ;;  %v2059_v47 = vshll.u32 %v7876_v61, 16 }
 0x117   : > { %6145 = vmatmul.mubr.bf16.gmra.mrb[116].mxu1 %v2027_v58  ;;  %6096 = vmatprep.mubr.msk.bf16.mxu0 %vm7018_vm0, %v7017_v1  ;;  %v2053_v58 = vor.u32 %v2052_v48, %v2049_v37  ;;  %v1784_v55 = vsel %vm1488_vm4, %v1781_v45, %v1783_v62  ;;  %v2543_v48 = vld [vmem:[%s7131_s26 + $0x48] sm:$0xf] }
 0x118   : > { %6148 = vmatprep.mubr.msk.bf16.mxu1 %vm7018_vm0, %v7017_v1  ;;  %6181 = vmatpush3.bf16.msra.mxu0 %v6839_v52 }
 0x119   : > { %v463_v19 = vpop.f32.mrb[12].mxu0  ;;  %6233 = vmatpush3.bf16.msra.mxu1 %v6840_v3  ;;  %6182 = vmatprep.subr.bf16.mxu0 %v7017_v1 }
 0x11a   : > { %v625_v20 = vpop.f32.mrb[12].mxu1  ;;  %v5786_v13 = vpop.f32.mrb[13].mxu0  ;;  %6234 = vmatprep.subr.bf16.mxu1 %v7017_v1 }
 0x11b   : > { %v7839_v21 = vadd.f32 %v625_v20, %v463_v19  ;;  %v5838_v23 = vpop.f32.mrb[13].mxu1  ;;  %v466_v22 = vpop.f32.mrb[14].mxu0  ;;  %v2054_v20 = vsel %vm1992_vm5, %v2044_v27, %v2053_v58  ;;  %v2058_v13 = vrot.slane %v2056_v26, 2 }
 0x11c   : > { %v628_v24 = vpop.f32.mrb[14].mxu1  ;;  %v5787_v30 = vpop.f32.mrb[15].mxu0  ;;  %6183 = vmatpush3.bf16.msra.mxu0 %v6842_v6  ;;  %v7893_v6 = vld [vmem:[%s7131_s26 + $0x50] sm:$0xff]   ;;  %v2061_v23 = vrot.slane %v2059_v47, 3 }
 0x11d   : > { %v7849_v14 = vadd.f32 %v628_v24, %v466_v22  ;;  %v5839_v35 = vpop.f32.mrb[15].mxu1  ;;  %6235 = vmatpush3.bf16.msra.mxu1 %v6844_v25  ;;  %6184 = vmatprep.subr.bf16.mxu0 %v7017_v1  ;;  %v1785_v24 = vrot.slane %v7876_v61, 2  ;;  %v2065_v30 = vshrl.u32 %v7893_v6, 16  ;;  %v2068_v5 = vshll.u32 %v7893_v6, 16 }
 0x11e   : > { %6097 = vmatmul.mubr.bf16.gmra.mrb[120].mxu0 %v1780_v2  ;;  %6236 = vmatprep.subr.bf16.mxu1 %v7017_v1 }
 0x11f   : > { %6149 = vmatmul.mubr.bf16.gmra.mrb[120].mxu1 %v2036_v29  ;;  %6100 = vmatprep.mubr.msk.bf16.mxu0 %vm7018_vm0, %v7017_v1  ;;  %v2062_v29 = vor.u32 %v2061_v23, %v2058_v13  ;;  %v1786_v38 = vsel %vm1488_vm4, %v1783_v62, %v1785_v24  ;;  %v2067_v40 = vrot.slane %v2065_v30, 2  ;;  %v2262_v30 = vld [vmem:[%s7131_s26 + $0x10] sm:$0x8] }
 0x120   : > { %6152 = vmatprep.mubr.msk.bf16.mxu1 %vm7018_vm0, %v7017_v1  ;;  %6185 = vmatpush3.bf16.msra.mxu0 %v6845_v33 }
 0x121   : > { %v471_v39 = vpop.f32.mrb[16].mxu0  ;;  %6237 = vmatpush3.bf16.msra.mxu1 %v6847_v36  ;;  %6186 = vmatprep.subr.bf16.mxu0 %v7017_v1 }
 0x122   : > { %v633_v41 = vpop.f32.mrb[16].mxu1  ;;  %v5790_v11 = vpop.f32.mrb[17].mxu0  ;;  %6238 = vmatprep.subr.bf16.mxu1 %v7017_v1 }
 0x123   : > { %v7871_v42 = vadd.f32 %v633_v41, %v471_v39  ;;  %v5842_v31 = vpop.f32.mrb[17].mxu1  ;;  %v474_v32 = vpop.f32.mrb[18].mxu0  ;;  %v2070_v41 = vrot.slane %v2068_v5, 3  ;;  %v7910_v11 = vld [vmem:[%s7131_s26 + $0x58] ss:$0 sps:$4 sm:$0x77]  }
 0x124   : > { %v636_v59 = vpop.f32.mrb[18].mxu1  ;;  %v5791_v50 = vpop.f32.mrb[19].mxu0  ;;  %6187 = vmatpush3.bf16.msra.mxu0 %v6850_v54 }
 0x125   : > { %v7878_v56 = vadd.f32 %v636_v59, %v474_v32  ;;  %v5843_v57 = vpop.f32.mrb[19].mxu1  ;;  %6239 = vmatpush3.bf16.msra.mxu1 %v6851_v10  ;;  %6276 = vmatprep.subr.bf16.mxu0 %v7017_v1  ;;  %v2063_v10 = vsel %vm1992_vm5, %v2053_v58, %v2062_v29  ;;  %v2071_v59 = vor.u32 %v2070_v41, %v2067_v40  ;;  %v2074_v50 = vshrl.u32 %v7910_v11, 16 }
 0x126   : > { %6101 = vmatmul.mubr.bf16.gmra.mrb[124].mxu0 %v1782_v43  ;;  %6328 = vmatprep.subr.bf16.mxu1 %v7017_v1  ;;  %v1787_v43 = vrot.slane %v7893_v6, 2  ;;  %v7923_v57 = vld [vmem:[%s7131_s26 + $0x4c] sm:$0xf]  ;;  %v5202_v40 = vcombine.low %v2262_v30, %v7716_v15  ;;  %v6856_v30 = vld [vmem:[%s9213_s1 + $0x80] sm:$0xff]  }
 0x127   : > { %6153 = vmatmul.mubr.bf16.gmra.mrb[124].mxu1 %v2045_v53  ;;  %6104 = vmatprep.mubr.msk.bf16.mxu0 %vm7018_vm0, %v7017_v1  ;;  %v2077_v53 = vshll.u32 %v7910_v11, 16 }
 0x128   : > { %6156 = vmatprep.mubr.msk.bf16.mxu1 %vm7018_vm0, %v7017_v1  ;;  %v2284_v15 = vrot.slane %v5202_v40, 3  ;;  %v7987_v40 = vld [vmem:[%s7131_s26 + $0x60] sm:$0xff]  }
 0x129   : > { %v479_v52 = vpop.f32.mrb[20].mxu0 }
 0x12a   : > { %v641_v8 = vpop.f32.mrb[20].mxu1  ;;  %v5794_v3 = vpop.f32.mrb[21].mxu0 }
 0x12b   : > { %v7889_v17 = vadd.f32 %v641_v8, %v479_v52  ;;  %v5846_v4 = vpop.f32.mrb[21].mxu1  ;;  %v482_v18 = vpop.f32.mrb[22].mxu0  ;;  %v1788_v8 = vsel %vm1488_vm4, %v1785_v24, %v1787_v43  ;;  %v6848_v3 = vld [vmem:[%s7131_s26 + $0x58] ss:$0 sps:$4 sm:$0x33]  }
 0x12c   : > { %v644_v19 = vpop.f32.mrb[22].mxu1  ;;  %v5795_v25 = vpop.f32.mrb[23].mxu0 }
 0x12d   : > { %v7896_v22 = vadd.f32 %v644_v19, %v482_v18  ;;  %v5847_v2 = vpop.f32.mrb[23].mxu1  ;;  %v2076_v19 = vrot.slane %v2074_v50, 2  ;;  %v2079_v25 = vrot.slane %v2077_v53, 3 }
 0x12e   : > { %6105 = vmatmul.mubr.bf16.gmra.mrb[128].mxu0 %v1784_v55  ;;  %v2072_v55 = vsel %vm1992_vm5, %v2062_v29, %v2071_v59  ;;  %v1789_v2 = vrot.slane %v6848_v3, 2  ;;  %v7941_v29 = vld [vmem:[%s7131_s26 + $0x50] sm:$0xff]  }
 0x12f   : > { %6157 = vmatmul.mubr.bf16.gmra.mrb[128].mxu1 %v2054_v20  ;;  %6108 = vmatprep.mubr.msk.bf16.mxu0 %vm7018_vm0, %v7017_v1  ;;  %v7931_v20 = vcombine.low %v2543_v48, %v7923_v57  ;;  %v2080_v24 = vor.u32 %v2079_v25, %v2076_v19  ;;  %v2650_v53 = vshll.u32 %v7941_v29, 16  ;;  %v2654_v19 = vshrl.u32 %v7941_v29, 16 }
 0x130   : > { %6160 = vmatprep.mubr.msk.bf16.mxu1 %vm7018_vm0, %v7017_v1 }
 0x131   : > { %v487_v7 = vpop.f32.mrb[24].mxu0  ;;  %v2645_v5 = vshll.u32 %v7931_v20, 16  ;;  %v2081_v41 = vsel %vm1992_vm5, %v2071_v59, %v2080_v24 }
 0x132   : > { %v649_v33 = vpop.f32.mrb[24].mxu1  ;;  %v5798_v35 = vpop.f32.mrb[25].mxu0 }
 0x133   : > { %v7905_v36 = vadd.f32 %v649_v33, %v487_v7  ;;  %v5850_v45 = vpop.f32.mrb[25].mxu1  ;;  %v490_v27 = vpop.f32.mrb[26].mxu0  ;;  %v2647_v50 = vrot.slane %v2645_v5, 1 }
 0x134   : > { %v652_v54 = vpop.f32.mrb[26].mxu1  ;;  %v5799_v39 = vpop.f32.mrb[27].mxu0 }
 0x135   : > { %v7912_v31 = vadd.f32 %v652_v54, %v490_v27  ;;  %v5851_v32 = vpop.f32.mrb[27].mxu1 }
 0x136   : > { %6109 = vmatmul.mubr.bf16.gmra.mrb[132].mxu0 %v1786_v38  ;;  %v1790_v38 = vsel %vm1488_vm4, %v1787_v43, %v1789_v2  ;;  %v2643_v32 = vshrl.u32 %v7931_v20, 16  ;;  %v2285_v43 = vrot.slane %v7720_v46, 3  ;;  %v6855_v46 = vld [vmem:[%s9213_s1] sm:$0xff]  }
 0x137   : > { %6161 = vmatmul.mubr.bf16.gmra.mrb[132].mxu1 %v2063_v10  ;;  %6112 = vmatprep.mubr.msk.bf16.mxu0 %vm7018_vm0, %v7017_v1 }
 0x138   : > { %6164 = vmatprep.mubr.msk.bf16.mxu1 %vm7018_vm0, %v7017_v1  ;;  %v2648_v59 = vor.u32 %v2647_v50, %v2643_v32 }
 0x139   : > { %v495_v37 = vpop.f32.mrb[28].mxu0 }
 0x13a   : > { %v657_v62 = vpop.f32.mrb[28].mxu1  ;;  %v5802_v58 = vpop.f32.mrb[29].mxu0 }
 0x13b   : > { %v7925_v26 = vadd.f32 %v657_v62, %v495_v37  ;;  %v5854_v47 = vpop.f32.mrb[29].mxu1  ;;  %v498_v52 = vpop.f32.mrb[30].mxu0  ;;  %v7957_v62 = vld [vmem:[%s7131_s26 + $0x58] sm:$0xff]   ;;  %v2652_v58 = vrot.slane %v2650_v53, 1 }
 0x13c   : > { %v660_v4 = vpop.f32.mrb[30].mxu1  ;;  %v5803_v18 = vpop.f32.mrb[31].mxu0  ;;  %v2658_v25 = vshll.u32 %v7957_v62, 16 }
 0x13d   : > { %v7933_v13 = vadd.f32 %v660_v4, %v498_v52  ;;  %v5855_v23 = vpop.f32.mrb[31].mxu1 }
 0x13e   : > { %6113 = vmatmul.mubr.bf16.gmra.mrb[136].mxu0 %v1788_v8 }
 0x13f   : > { %6165 = vmatmul.mubr.bf16.gmra.mrb[136].mxu1 %v2072_v55  ;;  %6116 = vmatprep.mubr.msk.bf16.mxu0 %vm7018_vm0, %v7017_v1  ;;  %v2286_v55 = vsel %vm2283_vm6, %v2284_v15, %v2285_v43 }
 0x140   : > { %6168 = vmatprep.mubr.msk.bf16.mxu1 %vm7018_vm0, %v7017_v1 }
 0x141   : > { %v503_v7 = vpop.f32.mrb[32].mxu0 }
 0x142   : > { %v665_v33 = vpop.f32.mrb[32].mxu1  ;;  %v5806_v35 = vpop.f32.mrb[33].mxu0 }
 0x143   : > { %v5858_v45 = vpop.f32.mrb[33].mxu1  ;;  %v506_v27 = vpop.f32.mrb[34].mxu0  ;;  %v7946_v54 = vadd.f32 %v665_v33, %v503_v7  ;;  %v2287_v35 = vrot.slane %v7736_v60, 3 }
 0x144   : > { %v668_v39 = vpop.f32.mrb[34].mxu1  ;;  %v5807_v10 = vpop.f32.mrb[35].mxu0  ;;  %v2660_v45 = vrot.slane %v2658_v25, 1 }
 0x145   : > { %v5859_v37 = vpop.f32.mrb[35].mxu1  ;;  %v7951_v48 = vadd.f32 %v668_v39, %v506_v27  ;;  %v6858_v27 = vld [vmem:[%s9213_s1 + $0x8] sm:$0xff]   ;;  %v2288_v53 = vsel %vm2283_vm6, %v2285_v43, %v2287_v35 }
 0x146   : > { %6117 = vmatmul.mubr.bf16.gmra.mrb[140].mxu0 %v1790_v38  ;;  %v6859_v38 = vld [vmem:[%s9213_s1 + $0x88] sm:$0xff]  }
 0x147   : > { %6169 = vmatmul.mubr.bf16.gmra.mrb[140].mxu1 %v2081_v41  ;;  %6188 = vmatprep.mubr.msk.bf16.mxu0 %vm7018_vm0, %v7017_v1 }
 0x148   : > { %6240 = vmatprep.mubr.msk.bf16.mxu1 %vm7018_vm0, %v7017_v1 }
 0x149   : > { %v804_v47 = vpop.f32.mrb[36].mxu0 }
 0x14a   : > { %v875_v52 = vadd.f32 %v804_v47, %v7745_v12  ;;  %v1087_v8 = vpop.f32.mrb[36].mxu1  ;;  %v5878_v3 = vpop.f32.mrb[37].mxu0  ;;  %v2653_v12 = vsel %vm271_vm1, %v2648_v59, %v2652_v58  ;;  %v2662_v47 = vshrl.u32 %v7957_v62, 16 }
 0x14b   : > { %v5930_v4 = vpop.f32.mrb[37].mxu1  ;;  %v807_v18 = vpop.f32.mrb[38].mxu0 }
 0x14c   : > { %v876_v23 = vadd.f32 %v807_v18, %v7758_v44  ;;  %v1090_v2 = vpop.f32.mrb[38].mxu1  ;;  %v5879_v24 = vpop.f32.mrb[39].mxu0  ;;  %v7973_v5 = vadd.f32 %v1087_v8, %v875_v52  ;;  %v2656_v44 = vor.u32 %v2654_v19, %v2652_v58  ;;  %v6861_v52 = vld [vmem:[%s9213_s1 + $0x10] sm:$0xff]   ;;  %v2289_v4 = vrot.slane %v7756_v16, 3  ;;  %v8015_v18 = vld [vmem:[%s7131_s26 + $0x68] sm:$0xff]   ;;  %v6864_v19 = vld [vmem:[%s9213_s1 + $0x18] sm:$0xff]  }
 0x14d   : > { %v5931_v7 = vpop.f32.mrb[39].mxu1  ;;  %v6865_v16 = vld [vmem:[%s9213_s1 + $0x98] sm:$0xff]  }
 0x14e   : > { %6189 = vmatmul.mubr.bf16.vlgmr.msra.gmra.mrb[144].mxu0 %v2286_v55  ;;  %v7975_v33 = vadd.f32 %v1090_v2, %v876_v23  ;;  %v2661_v37 = vsel %vm271_vm1, %v2656_v44, %v2660_v45  ;;  %v2664_v55 = vor.u32 %v2662_v47, %v2660_v45  ;;  %v2290_v7 = vsel %vm2283_vm6, %v2287_v35, %v2289_v4 }
 0x14f   : > { %6241 = vmatmul.mubr.bf16.vlgmr.msra.gmra.mrb[144].mxu1 %v2653_v12  ;;  %6277 = vmatpush3.bf16.msra.mxu0 %v6855_v46  ;;  %v2670_v44 = vshrl.u32 %v7987_v40, 16  ;;  %v2674_v45 = vshll.u32 %v8015_v18, 16 }
 0x150   : > { %6329 = vmatpush3.bf16.msra.mxu1 %v6856_v30  ;;  %6192 = vmatprep.mubr.msk.bf16.mxu0 %vm7018_vm0, %v7017_v1 }
 0x151   : > { %v812_v39 = vpop.f32.mrb[40].mxu0  ;;  %6244 = vmatprep.mubr.msk.bf16.mxu1 %vm7018_vm0, %v7017_v1  ;;  %6278 = vmatprep.subr.bf16.mxu0 %v7017_v1 }
 0x152   : > { %v877_v60 = vadd.f32 %v812_v39, %v7775_v34  ;;  %v1095_v10 = vpop.f32.mrb[40].mxu1  ;;  %v5882_v41 = vpop.f32.mrb[41].mxu0  ;;  %6330 = vmatprep.subr.bf16.mxu1 %v7017_v1  ;;  %v2666_v34 = vshll.u32 %v7987_v40, 16 }
 0x153   : > { %v5934_v32 = vpop.f32.mrb[41].mxu1  ;;  %v815_v50 = vpop.f32.mrb[42].mxu0  ;;  %6279 = vmatpush3.bf16.msra.mxu0 %v6858_v27 }
 0x154   : > { %v878_v15 = vadd.f32 %v815_v50, %v7786_v0  ;;  %v1098_v59 = vpop.f32.mrb[42].mxu1  ;;  %v5883_v58 = vpop.f32.mrb[43].mxu0  ;;  %6331 = vmatpush3.bf16.msra.mxu1 %v6859_v38  ;;  %6280 = vmatprep.subr.bf16.mxu0 %v7017_v1  ;;  %v8003_v43 = vadd.f32 %v1095_v10, %v877_v60  ;;  %v6862_v0 = vld [vmem:[%s9213_s1 + $0x90] sm:$0xff]   ;;  %v2668_v46 = vrot.slane %v2666_v34, 1  ;;  %v2291_v32 = vrot.slane %v7784_v51, 3  ;;  %v6872_v51 = vld [vmem:[%s9213_s1 + $0xa8] sm:$0xff]  }
 0x155   : > { %v5935_v8 = vpop.f32.mrb[43].mxu1  ;;  %6332 = vmatprep.subr.bf16.mxu1 %v7017_v1 }
 0x156   : > { %6193 = vmatmul.mubr.bf16.gmra.mrb[148].mxu0 %v2288_v53  ;;  %v8009_v3 = vadd.f32 %v1098_v59, %v878_v15  ;;  %v2669_v60 = vsel %vm271_vm1, %v2664_v55, %v2668_v46  ;;  %v2672_v50 = vor.u32 %v2670_v44, %v2668_v46  ;;  %v2676_v53 = vrot.slane %v2674_v45, 1  ;;  %v6870_v15 = vld [vmem:[%s9213_s1 + $0x28] sm:$0xff]   ;;  %v6877_v45 = vld [vmem:[%s9213_s1 + $0x38] sm:$0xff]  }
 0x157   : > { %6245 = vmatmul.mubr.bf16.gmra.mrb[148].mxu1 %v2661_v37  ;;  %6196 = vmatprep.mubr.msk.bf16.mxu0 %vm7018_vm0, %v7017_v1  ;;  %v8051_v37 = vld [vmem:[%s7131_s26 + $0x70] sm:$0xff]  }
 0x158   : > { %6248 = vmatprep.mubr.msk.bf16.mxu1 %vm7018_vm0, %v7017_v1  ;;  %6281 = vmatpush3.bf16.msra.mxu0 %v6861_v52  ;;  %v2677_v55 = vsel %vm271_vm1, %v2672_v50, %v2676_v53  ;;  %v2686_v50 = vshrl.u32 %v8051_v37, 16 }
 0x159   : > { %v820_v25 = vpop.f32.mrb[44].mxu0  ;;  %6333 = vmatpush3.bf16.msra.mxu1 %v6862_v0  ;;  %6282 = vmatprep.subr.bf16.mxu0 %v7017_v1  ;;  %v2292_v0 = vsel %vm2283_vm6, %v2289_v4, %v2291_v32 }
 0x15a   : > { %v879_v23 = vadd.f32 %v820_v25, %v7807_v49  ;;  %v1103_v2 = vpop.f32.mrb[44].mxu1  ;;  %v5886_v24 = vpop.f32.mrb[45].mxu0  ;;  %6334 = vmatprep.subr.bf16.mxu1 %v7017_v1  ;;  %v6867_v49 = vld [vmem:[%s9213_s1 + $0x20] sm:$0xff]  }
 0x15b   : > { %v5938_v12 = vpop.f32.mrb[45].mxu1  ;;  %v823_v30 = vpop.f32.mrb[46].mxu0 }
 0x15c   : > { %v880_v27 = vadd.f32 %v823_v30, %v7817_v63  ;;  %v1106_v38 = vpop.f32.mrb[46].mxu1  ;;  %v5887_v39 = vpop.f32.mrb[47].mxu0  ;;  %6283 = vmatpush3.bf16.msra.mxu0 %v6864_v19  ;;  %v8036_v10 = vadd.f32 %v1103_v2, %v879_v23  ;;  %v6868_v63 = vld [vmem:[%s9213_s1 + $0xa0] sm:$0xff]   ;;  %v2682_v23 = vshll.u32 %v8051_v37, 16  ;;  %v2293_v12 = vrot.slane %v7812_v28, 3  ;;  %v8083_v30 = vld [vmem:[%s7131_s26 + $0x78] sm:$0xff]  }
 0x15d   : > { %v5939_v41 = vpop.f32.mrb[47].mxu1  ;;  %6335 = vmatpush3.bf16.msra.mxu1 %v6865_v16  ;;  %6284 = vmatprep.subr.bf16.mxu0 %v7017_v1  ;;  %v2678_v16 = vshrl.u32 %v8015_v18, 16  ;;  %v6878_v28 = vld [vmem:[%s9213_s1 + $0xb8] sm:$0xff]  }
 0x15e   : > { %6197 = vmatmul.mubr.bf16.gmra.mrb[152].mxu0 %v2290_v7  ;;  %6336 = vmatprep.subr.bf16.mxu1 %v7017_v1  ;;  %v8043_v35 = vadd.f32 %v1106_v38, %v880_v27  ;;  %v2684_v44 = vrot.slane %v2682_v23, 1 }
 0x15f   : > { %6249 = vmatmul.mubr.bf16.gmra.mrb[152].mxu1 %v2669_v60  ;;  %6200 = vmatprep.mubr.msk.bf16.mxu0 %vm7018_vm0, %v7017_v1  ;;  %v2680_v7 = vor.u32 %v2678_v16, %v2676_v53  ;;  %v2690_v53 = vshll.u32 %v8083_v30, 16 }
 0x160   : > { %6252 = vmatprep.mubr.msk.bf16.mxu1 %vm7018_vm0, %v7017_v1  ;;  %6285 = vmatpush3.bf16.msra.mxu0 %v6867_v49 }
 0x161   : > { %v828_v59 = vpop.f32.mrb[48].mxu0  ;;  %6337 = vmatpush3.bf16.msra.mxu1 %v6868_v63  ;;  %6286 = vmatprep.subr.bf16.mxu0 %v7017_v1  ;;  %v2294_v63 = vsel %vm2283_vm6, %v2291_v32, %v2293_v12 }
 0x162   : > { %v881_v58 = vadd.f32 %v828_v59, %v7839_v21  ;;  %v1111_v47 = vpop.f32.mrb[48].mxu1  ;;  %v5890_v34 = vpop.f32.mrb[49].mxu0  ;;  %6338 = vmatprep.subr.bf16.mxu1 %v7017_v1  ;;  %v6873_v21 = vld [vmem:[%s9213_s1 + $0x30] sm:$0xff]  }
 0x163   : > { %v5942_v52 = vpop.f32.mrb[49].mxu1  ;;  %v831_v8 = vpop.f32.mrb[50].mxu0  ;;  %v2688_v34 = vor.u32 %v2686_v50, %v2684_v44 }
 0x164   : > { %v882_v46 = vadd.f32 %v831_v8, %v7849_v14  ;;  %v1114_v19 = vpop.f32.mrb[50].mxu1  ;;  %v5891_v25 = vpop.f32.mrb[51].mxu0  ;;  %6287 = vmatpush3.bf16.msra.mxu0 %v6870_v15  ;;  %v8070_v2 = vadd.f32 %v1111_v47, %v881_v58  ;;  %v6875_v14 = vld [vmem:[%s9213_s1 + $0xb0] sm:$0xff]   ;;  %v2685_v58 = vsel %vm271_vm1, %v2680_v7, %v2684_v44  ;;  %v2692_v52 = vrot.slane %v2690_v53, 1  ;;  %v8113_v8 = vld [vmem:[%s7131_s26 + $0x80] sm:$0xff]  }
 0x165   : > { %v5943_v24 = vpop.f32.mrb[51].mxu1  ;;  %6339 = vmatpush3.bf16.msra.mxu1 %v6872_v51  ;;  %6288 = vmatprep.subr.bf16.mxu0 %v7017_v1  ;;  %v2694_v7 = vshrl.u32 %v8083_v30, 16  ;;  %v2698_v44 = vshll.u32 %v8113_v8, 16 }
 0x166   : > { %6201 = vmatmul.mubr.bf16.gmra.mrb[156].mxu0 %v2292_v0  ;;  %6340 = vmatprep.subr.bf16.mxu1 %v7017_v1  ;;  %v8077_v4 = vadd.f32 %v1114_v19, %v882_v46 }
 0x167   : > { %6253 = vmatmul.mubr.bf16.gmra.mrb[156].mxu1 %v2677_v55  ;;  %6204 = vmatprep.mubr.msk.bf16.mxu0 %vm7018_vm0, %v7017_v1 }
 0x168   : > { %6256 = vmatprep.mubr.msk.bf16.mxu1 %vm7018_vm0, %v7017_v1  ;;  %6289 = vmatpush3.bf16.msra.mxu0 %v6873_v21  ;;  %v2693_v21 = vsel %vm271_vm1, %v2688_v34, %v2692_v52 }
 0x169   : > { %v836_v27 = vpop.f32.mrb[52].mxu0  ;;  %6341 = vmatpush3.bf16.msra.mxu1 %v6875_v14  ;;  %6290 = vmatprep.subr.bf16.mxu0 %v7017_v1 }
 0x16a   : > { %v883_v38 = vadd.f32 %v836_v27, %v7871_v42  ;;  %v1119_v39 = vpop.f32.mrb[52].mxu1  ;;  %v5894_v60 = vpop.f32.mrb[53].mxu0  ;;  %6342 = vmatprep.subr.bf16.mxu1 %v7017_v1 }
 0x16b   : > { %v5946_v49 = vpop.f32.mrb[53].mxu1  ;;  %v839_v41 = vpop.f32.mrb[54].mxu0 }
 0x16c   : > { %v884_v15 = vadd.f32 %v839_v41, %v7878_v56  ;;  %v1122_v59 = vpop.f32.mrb[54].mxu1  ;;  %v5895_v51 = vpop.f32.mrb[55].mxu0  ;;  %6291 = vmatpush3.bf16.msra.mxu0 %v6877_v45  ;;  %v8101_v42 = vadd.f32 %v1119_v39, %v883_v38  ;;  %v2295_v56 = vrot.slane %v7844_v9, 3  ;;  %v2700_v38 = vrot.slane %v2698_v44, 1 }
 0x16d   : > { %v5947_v47 = vpop.f32.mrb[55].mxu1  ;;  %6343 = vmatpush3.bf16.msra.mxu1 %v6878_v28  ;;  %6380 = vmatprep.subr.bf16.mxu0 %v7017_v1  ;;  %v8129_v28 = vld [vmem:[%s7131_s26 + $0x88] sm:$0xff]  }
 0x16e   : > { %6205 = vmatmul.mubr.bf16.gmra.mrb[160].mxu0 %v2294_v63  ;;  %6432 = vmatprep.subr.bf16.mxu1 %v7017_v1  ;;  %v8105_v32 = vadd.f32 %v1122_v59, %v884_v15  ;;  %v2296_v23 = vsel %vm2283_vm6, %v2293_v12, %v2295_v56  ;;  %v2297_v12 = vrot.slane %v7876_v61, 3  ;;  %v2702_v15 = vshrl.u32 %v8113_v8, 16 }
 0x16f   : > { %6257 = vmatmul.mubr.bf16.gmra.mrb[160].mxu1 %v2685_v58  ;;  %6208 = vmatprep.mubr.msk.bf16.mxu0 %vm7018_vm0, %v7017_v1  ;;  %v2706_v61 = vshll.u32 %v8129_v28, 16  ;;  %v2710_v44 = vshrl.u32 %v8129_v28, 16 }
 0x170   : > { %6260 = vmatprep.mubr.msk.bf16.mxu1 %vm7018_vm0, %v7017_v1  ;;  %v2298_v53 = vsel %vm2283_vm6, %v2295_v56, %v2297_v12  ;;  %v2299_v56 = vrot.slane %v7893_v6, 3 }
 0x171   : > { %v844_v0 = vpop.f32.mrb[56].mxu0 }
 0x172   : > { %v885_v55 = vadd.f32 %v844_v0, %v7889_v17  ;;  %v1127_v46 = vpop.f32.mrb[56].mxu1  ;;  %v5898_v19 = vpop.f32.mrb[57].mxu0  ;;  %v2704_v0 = vor.u32 %v2702_v15, %v2700_v38 }
 0x173   : > { %v5950_v25 = vpop.f32.mrb[57].mxu1  ;;  %v847_v16 = vpop.f32.mrb[58].mxu0 }
 0x174   : > { %v886_v9 = vadd.f32 %v847_v16, %v7896_v22  ;;  %v1130_v24 = vpop.f32.mrb[58].mxu1  ;;  %v5899_v14 = vpop.f32.mrb[59].mxu0  ;;  %v8121_v45 = vadd.f32 %v1127_v46, %v885_v55  ;;  %v2696_v22 = vor.u32 %v2694_v7, %v2692_v52  ;;  %v2708_v55 = vrot.slane %v2706_v61, 1 }
 0x175   : > { %v5951_v17 = vpop.f32.mrb[59].mxu1 }
 0x176   : > { %6209 = vmatmul.mubr.bf16.gmra.mrb[164].mxu0 %v2296_v23  ;;  %v8123_v27 = vadd.f32 %v1130_v24, %v886_v9  ;;  %v2701_v47 = vsel %vm271_vm1, %v2696_v22, %v2700_v38  ;;  %v2300_v9 = vsel %vm2283_vm6, %v2297_v12, %v2299_v56  ;;  %v2709_v24 = vsel %vm271_vm1, %v2704_v0, %v2708_v55 }
 0x177   : > { %6261 = vmatmul.mubr.bf16.gmra.mrb[164].mxu1 %v2693_v21  ;;  %6212 = vmatprep.mubr.msk.bf16.mxu0 %vm7018_vm0, %v7017_v1  ;;  %v2301_v12 = vrot.slane %v7910_v11, 3 }
 0x178   : > { %6264 = vmatprep.mubr.msk.bf16.mxu1 %vm7018_vm0, %v7017_v1 }
 0x179   : > { %v852_v39 = vpop.f32.mrb[60].mxu0  ;;  %v2302_v61 = vsel %vm2283_vm6, %v2299_v56, %v2301_v12 }
 0x17a   : > { %v887_v60 = vadd.f32 %v852_v39, %v7905_v36  ;;  %v1135_v49 = vpop.f32.mrb[60].mxu1  ;;  %v5902_v41 = vpop.f32.mrb[61].mxu0 }
 0x17b   : > { %v5954_v63 = vpop.f32.mrb[61].mxu1  ;;  %v855_v50 = vpop.f32.mrb[62].mxu0 }
 0x17c   : > { %v888_v59 = vadd.f32 %v855_v50, %v7912_v31  ;;  %v1138_v51 = vpop.f32.mrb[62].mxu1  ;;  %v5903_v58 = vpop.f32.mrb[63].mxu0  ;;  %v8139_v34 = vadd.f32 %v1135_v49, %v887_v60  ;;  %v8149_v31 = vld [vmem:[%s7131_s26 + $0x90] ss:$0 sps:$4 sm:$0x11]  }
 0x17d   : > { %v5955_v36 = vpop.f32.mrb[63].mxu1  ;;  %v2714_v17 = vshll.u32 %v8149_v31, 16  ;;  %v3042_v49 = vld [vmem:[%s7131_s26 + $0x48] sm:$0xe] }
 0x17e   : > { %6213 = vmatmul.mubr.bf16.gmra.mrb[168].mxu0 %v2298_v53  ;;  %v8141_v52 = vadd.f32 %v1138_v51, %v888_v59  ;;  %v5270_v36 = vcombine.low %v3042_v49, %v7923_v57 }
 0x17f   : > { %6265 = vmatmul.mubr.bf16.gmra.mrb[168].mxu1 %v2701_v47  ;;  %6216 = vmatprep.mubr.msk.bf16.mxu0 %vm7018_vm0, %v7017_v1  ;;  %v2716_v39 = vrot.slane %v2714_v17, 1  ;;  %v6882_v17 = vld [vmem:[%s9213_s1 + $0xc8] sm:$0xff]  }
 0x180   : > { %6268 = vmatprep.mubr.msk.bf16.mxu1 %vm7018_vm0, %v7017_v1 }
 0x181   : > { %v860_v46 = vpop.f32.mrb[64].mxu0 }
 0x182   : > { %v889_v19 = vadd.f32 %v860_v46, %v7925_v26  ;;  %v1143_v25 = vpop.f32.mrb[64].mxu1  ;;  %v5906_v16 = vpop.f32.mrb[65].mxu0 }
 0x183   : > { %v5958_v23 = vpop.f32.mrb[65].mxu1  ;;  %v863_v21 = vpop.f32.mrb[66].mxu0 }
 0x184   : > { %v890_v6 = vadd.f32 %v863_v21, %v7933_v13  ;;  %v1146_v14 = vpop.f32.mrb[66].mxu1  ;;  %v5907_v7 = vpop.f32.mrb[67].mxu0  ;;  %v8157_v22 = vadd.f32 %v1143_v25, %v889_v19  ;;  %v2712_v13 = vor.u32 %v2710_v44, %v2708_v55  ;;  %v6880_v23 = vld [vmem:[%s9213_s1 + $0xc0] sm:$0xff]  }
 0x185   : > { %v5959_v26 = vpop.f32.mrb[67].mxu1 }
 0x186   : > { %6217 = vmatmul.mubr.bf16.gmra.mrb[172].mxu0 %v2300_v9  ;;  %v8159_v38 = vadd.f32 %v1146_v14, %v890_v6  ;;  %v2717_v47 = vsel %vm271_vm1, %v2712_v13, %v2716_v39  ;;  %v6883_v26 = vld [vmem:[%s9213_s1 + $0x108] sm:$0xff]  }
 0x187   : > { %6269 = vmatmul.mubr.bf16.gmra.mrb[172].mxu1 %v2709_v24  ;;  %6220 = vmatprep.mubr.msk.bf16.mxu0 %vm7018_vm0, %v7017_v1 }
 0x188   : > { %6272 = vmatprep.mubr.msk.bf16.mxu1 %vm7018_vm0, %v7017_v1 }
 0x189   : > { %v868_v60 = vpop.f32.mrb[68].mxu0 }
 0x18a   : > { %v891_v41 = vadd.f32 %v868_v60, %v7946_v54  ;;  %v1151_v63 = vpop.f32.mrb[68].mxu1  ;;  %v5910_v50 = vpop.f32.mrb[69].mxu0  ;;  %v3062_v54 = vrot.slane %v5270_v36, 1 }
 0x18b   : > { %v5962_v53 = vpop.f32.mrb[69].mxu1  ;;  %v871_v15 = vpop.f32.mrb[70].mxu0 }
 0x18c   : > { %v8169_v59 = vadd.f32 %v1151_v63, %v891_v41  ;;  %v892_v51 = vadd.f32 %v871_v15, %v7951_v48  ;;  %v1154_v11 = vpop.f32.mrb[70].mxu1  ;;  %v5911_v58 = vpop.f32.mrb[71].mxu0  ;;  %v3063_v48 = vrot.slane %v7941_v29, 1 }
 0x18d   : > { %v5963_v0 = vpop.f32.mrb[71].mxu1  ;;  %v6886_v58 = vld [vmem:[%s9213_s1 + $0xd8] sm:$0xff]  }
 0x18e   : > { %v8174_v55 = vadd.f32 %v1154_v11, %v892_v51  ;;  %6221 = vmatmul.mubr.bf16.gmra.mrb[176].mxu0 %v2302_v61  ;;  %v3064_v14 = vsel %vm693_vm2, %v3062_v54, %v3063_v48  ;;  %v6885_v51 = vld [vmem:[%s9213_s1 + $0x110] sm:$0xff]  }
 0x18f   : > { %6273 = vmatmul.mubr.bf16.gmra.mrb[176].mxu1 %v2717_v47  ;;  %6292 = vmatprep.mubr.msk.bf16.mxu0 %vm7018_vm0, %v7017_v1 }
 0x190   : > { %6344 = vmatprep.mubr.msk.bf16.mxu1 %vm7018_vm0, %v7017_v1 }
 0x191   : > { %v1378_v56 = vpop.f32.mrb[72].mxu0 }
 0x192   : > { %v1449_v46 = vadd.f32 %v1378_v56, %v7973_v5  ;;  %v1599_v19 = vpop.f32.mrb[72].mxu1  ;;  %v5982_v25 = vpop.f32.mrb[73].mxu0  ;;  %v6881_v5 = vld [vmem:[%s9213_s1 + $0x100] sm:$0xff]  }
 0x193   : > { %v6034_v57 = vpop.f32.mrb[73].mxu1  ;;  %v1381_v16 = vpop.f32.mrb[74].mxu0 }
 0x194   : > { %v8185_v21 = vadd.f32 %v1599_v19, %v1449_v46  ;;  %v1450_v9 = vadd.f32 %v1381_v16, %v7975_v33  ;;  %v1602_v24 = vpop.f32.mrb[74].mxu1  ;;  %v5983_v6 = vpop.f32.mrb[75].mxu0  ;;  %v3065_v33 = vrot.slane %v7957_v62, 1 }
 0x195   : > { %v6035_v7 = vpop.f32.mrb[75].mxu1  ;;  %v6890_v6 = vld [vmem:[%s9213_s1 + $0xe8] sm:$0xff]  }
 0x196   : > { %v8192_v44 = vadd.f32 %v1602_v24, %v1450_v9  ;;  %6293 = vmatmul.mubr.bf16.vlgmr.msra.gmra.mrb[180].mxu0 %v7931_v20  ;;  %v3066_v15 = vsel %vm693_vm2, %v3063_v48, %v3065_v33  ;;  %v6889_v9 = vld [vmem:[%s9213_s1 + $0x120] sm:$0xff]  }
 0x197   : > { %6345 = vmatmul.mubr.bf16.vlgmr.msra.gmra.mrb[180].mxu1 %v3064_v14  ;;  %6381 = vmatpush3.bf16.msra.mxu0 %v6880_v23  ;;  %v6888_v23 = vld [vmem:[%s9213_s1 + $0xe0] sm:$0xff]  }
 0x198   : > { %6433 = vmatpush3.bf16.msra.mxu1 %v6881_v5  ;;  %6296 = vmatprep.mubr.msk.bf16.mxu0 %vm7018_vm0, %v7017_v1 }
 0x199   : > { %v1386_v12 = vpop.f32.mrb[76].mxu0  ;;  %6348 = vmatprep.mubr.msk.bf16.mxu1 %vm7018_vm0, %v7017_v1  ;;  %6382 = vmatprep.subr.bf16.mxu0 %v7017_v1 }
 0x19a   : > { %v1451_v20 = vadd.f32 %v1386_v12, %v8003_v43  ;;  %v1607_v13 = vpop.f32.mrb[76].mxu1  ;;  %v5986_v39 = vpop.f32.mrb[77].mxu0  ;;  %6434 = vmatprep.subr.bf16.mxu1 %v7017_v1  ;;  %v6884_v43 = vld [vmem:[%s9213_s1 + $0xd0] sm:$0xff]  }
 0x19b   : > { %v6038_v60 = vpop.f32.mrb[77].mxu1  ;;  %v1389_v49 = vpop.f32.mrb[78].mxu0  ;;  %6383 = vmatpush3.bf16.msra.mxu0 %v6882_v17 }
 0x19c   : > { %v8209_v41 = vadd.f32 %v1607_v13, %v1451_v20  ;;  %v1452_v63 = vadd.f32 %v1389_v49, %v8009_v3  ;;  %v1610_v50 = vpop.f32.mrb[78].mxu1  ;;  %v5987_v53 = vpop.f32.mrb[79].mxu0  ;;  %6435 = vmatpush3.bf16.msra.mxu1 %v6883_v26  ;;  %6384 = vmatprep.subr.bf16.mxu0 %v7017_v1  ;;  %v3067_v3 = vrot.slane %v7987_v40, 1  ;;  %v6892_v49 = vld [vmem:[%s9213_s1 + $0xf0] sm:$0xff]  }
 0x19d   : > { %v6039_v61 = vpop.f32.mrb[79].mxu1  ;;  %6436 = vmatprep.subr.bf16.mxu1 %v7017_v1  ;;  %v6894_v53 = vld [vmem:[%s9213_s1 + $0xf8] sm:$0xff]  }
 0x19e   : > { %v8221_v11 = vadd.f32 %v1610_v50, %v1452_v63  ;;  %6297 = vmatmul.mubr.bf16.gmra.mrb[184].mxu0 %v7941_v29  ;;  %v6887_v29 = vld [vmem:[%s9213_s1 + $0x118] sm:$0xff]   ;;  %v3068_v16 = vsel %vm693_vm2, %v3065_v33, %v3067_v3  ;;  %v6893_v63 = vld [vmem:[%s9213_s1 + $0x130] sm:$0xff]  }
 0x19f   : > { %6349 = vmatmul.mubr.bf16.gmra.mrb[184].mxu1 %v3066_v15  ;;  %6300 = vmatprep.mubr.msk.bf16.mxu0 %vm7018_vm0, %v7017_v1 }
 0x1a0   : > { %6352 = vmatprep.mubr.msk.bf16.mxu1 %vm7018_vm0, %v7017_v1  ;;  %6385 = vmatpush3.bf16.msra.mxu0 %v6884_v43 }
 0x1a1   : > { %v1394_v47 = vpop.f32.mrb[80].mxu0  ;;  %6437 = vmatpush3.bf16.msra.mxu1 %v6885_v51  ;;  %6386 = vmatprep.subr.bf16.mxu0 %v7017_v1 }
 0x1a2   : > { %v1453_v36 = vadd.f32 %v1394_v47, %v8036_v10  ;;  %v1615_v0 = vpop.f32.mrb[80].mxu1  ;;  %v5990_v54 = vpop.f32.mrb[81].mxu0  ;;  %6438 = vmatprep.subr.bf16.mxu1 %v7017_v1 }
 0x1a3   : > { %v6042_v48 = vpop.f32.mrb[81].mxu1  ;;  %v1397_v56 = vpop.f32.mrb[82].mxu0 }
 0x1a4   : > { %v8238_v46 = vadd.f32 %v1615_v0, %v1453_v36  ;;  %v1454_v19 = vadd.f32 %v1397_v56, %v8043_v35  ;;  %v1618_v25 = vpop.f32.mrb[82].mxu1  ;;  %v5991_v57 = vpop.f32.mrb[83].mxu0  ;;  %6387 = vmatpush3.bf16.msra.mxu0 %v6886_v58  ;;  %v3069_v35 = vrot.slane %v8015_v18, 1 }
 0x1a5   : > { %v6043_v10 = vpop.f32.mrb[83].mxu1  ;;  %6439 = vmatpush3.bf16.msra.mxu1 %v6887_v29  ;;  %6388 = vmatprep.subr.bf16.mxu0 %v7017_v1 }
 0x1a6   : > { %v8249_v24 = vadd.f32 %v1618_v25, %v1454_v19  ;;  %6301 = vmatmul.mubr.bf16.gmra.mrb[188].mxu0 %v7957_v62  ;;  %6440 = vmatprep.subr.bf16.mxu1 %v7017_v1  ;;  %v6891_v62 = vld [vmem:[%s9213_s1 + $0x128] sm:$0xff]   ;;  %v3070_v60 = vsel %vm693_vm2, %v3067_v3, %v3069_v35 }
 0x1a7   : > { %6353 = vmatmul.mubr.bf16.gmra.mrb[188].mxu1 %v3068_v16  ;;  %6304 = vmatprep.mubr.msk.bf16.mxu0 %vm7018_vm0, %v7017_v1 }
 0x1a8   : > { %6356 = vmatprep.mubr.msk.bf16.mxu1 %vm7018_vm0, %v7017_v1  ;;  %6389 = vmatpush3.bf16.msra.mxu0 %v6888_v23 }
 0x1a9   : > { %v1402_v14 = vpop.f32.mrb[84].mxu0  ;;  %6441 = vmatpush3.bf16.msra.mxu1 %v6889_v9  ;;  %6390 = vmatprep.subr.bf16.mxu0 %v7017_v1 }
 0x1aa   : > { %v1455_v5 = vadd.f32 %v1402_v14, %v8070_v2  ;;  %v1623_v7 = vpop.f32.mrb[84].mxu1  ;;  %v5994_v17 = vpop.f32.mrb[85].mxu0  ;;  %6442 = vmatprep.subr.bf16.mxu1 %v7017_v1 }
 0x1ab   : > { %v6046_v33 = vpop.f32.mrb[85].mxu1  ;;  %v1405_v26 = vpop.f32.mrb[86].mxu0 }
 0x1ac   : > { %v8267_v12 = vadd.f32 %v1623_v7, %v1455_v5  ;;  %v1456_v20 = vadd.f32 %v1405_v26, %v8077_v4  ;;  %v1626_v13 = vpop.f32.mrb[86].mxu1  ;;  %v5995_v39 = vpop.f32.mrb[87].mxu0  ;;  %6391 = vmatpush3.bf16.msra.mxu0 %v6890_v6  ;;  %v3071_v4 = vrot.slane %v8051_v37, 1 }
 0x1ad   : > { %v6047_v2 = vpop.f32.mrb[87].mxu1  ;;  %6443 = vmatpush3.bf16.msra.mxu1 %v6891_v62  ;;  %6392 = vmatprep.subr.bf16.mxu0 %v7017_v1 }
 0x1ae   : > { %v8278_v50 = vadd.f32 %v1626_v13, %v1456_v20  ;;  %6305 = vmatmul.mubr.bf16.gmra.mrb[192].mxu0 %v7987_v40  ;;  %6444 = vmatprep.subr.bf16.mxu1 %v7017_v1  ;;  %v6895_v40 = vld [vmem:[%s9213_s1 + $0x138] sm:$0xff]   ;;  %v3072_v54 = vsel %vm693_vm2, %v3069_v35, %v3071_v4 }
 0x1af   : > { %6357 = vmatmul.mubr.bf16.gmra.mrb[192].mxu1 %v3070_v60  ;;  %6308 = vmatprep.mubr.msk.bf16.mxu0 %vm7018_vm0, %v7017_v1 }
 0x1b0   : > { %6360 = vmatprep.mubr.msk.bf16.mxu1 %vm7018_vm0, %v7017_v1  ;;  %6393 = vmatpush3.bf16.msra.mxu0 %v6892_v49 }
 0x1b1   : > { %v1410_v15 = vpop.f32.mrb[88].mxu0  ;;  %6445 = vmatpush3.bf16.msra.mxu1 %v6893_v63  ;;  %6394 = vmatprep.subr.bf16.mxu0 %v7017_v1  ;;  %v8338_v63 = vld [vmem:[%s7131_s26 + $0x54] sm:$0xf] }
 0x1b2   : > { %v1457_v43 = vadd.f32 %v1410_v15, %v8101_v42  ;;  %v1631_v61 = vpop.f32.mrb[88].mxu1  ;;  %v5998_v51 = vpop.f32.mrb[89].mxu0  ;;  %6446 = vmatprep.subr.bf16.mxu1 %v7017_v1 }
 0x1b3   : > { %v6050_v3 = vpop.f32.mrb[89].mxu1  ;;  %v1413_v58 = vpop.f32.mrb[90].mxu0 }
 0x1b4   : > { %v8296_v47 = vadd.f32 %v1631_v61, %v1457_v43  ;;  %v1458_v29 = vadd.f32 %v1413_v58, %v8105_v32  ;;  %v1634_v36 = vpop.f32.mrb[90].mxu1  ;;  %v5999_v0 = vpop.f32.mrb[91].mxu0  ;;  %6395 = vmatpush3.bf16.msra.mxu0 %v6894_v53  ;;  %v3073_v32 = vrot.slane %v8083_v30, 1 }
 0x1b5   : > { %v6051_v48 = vpop.f32.mrb[91].mxu1  ;;  %6447 = vmatpush3.bf16.msra.mxu1 %v6895_v40  ;;  %6484 = vmatprep.subr.bf16.mxu0 %v7017_v1  ;;  %v8347_v0 = vld [vmem:[%s7131_s26 + $0x58] sm:$0xff]  }
 0x1b6   : > { %v8301_v42 = vadd.f32 %v1634_v36, %v1458_v29  ;;  %6309 = vmatmul.mubr.bf16.gmra.mrb[196].mxu0 %v8015_v18  ;;  %6536 = vmatprep.subr.bf16.mxu1 %v7017_v1  ;;  %v3074_v6 = vsel %vm693_vm2, %v3071_v4, %v3073_v32 }
 0x1b7   : > { %6361 = vmatmul.mubr.bf16.gmra.mrb[196].mxu1 %v3072_v54  ;;  %6312 = vmatprep.mubr.msk.bf16.mxu0 %vm7018_vm0, %v7017_v1 }
 0x1b8   : > { %6364 = vmatprep.mubr.msk.bf16.mxu1 %vm7018_vm0, %v7017_v1 }
 0x1b9   : > { %v1418_v56 = vpop.f32.mrb[92].mxu0 }
 0x1ba   : > { %v1459_v19 = vadd.f32 %v1418_v56, %v8121_v45  ;;  %v1639_v25 = vpop.f32.mrb[92].mxu1  ;;  %v6002_v57 = vpop.f32.mrb[93].mxu0  ;;  %v3075_v45 = vrot.slane %v8113_v8, 1  ;;  %v3572_v56 = vshrl.u32 %v8347_v0, 16 }
 0x1bb   : > { %v6054_v16 = vpop.f32.mrb[93].mxu1  ;;  %v1421_v23 = vpop.f32.mrb[94].mxu0 }
 0x1bc   : > { %v8311_v10 = vadd.f32 %v1639_v25, %v1459_v19  ;;  %v1460_v18 = vadd.f32 %v1421_v23, %v8123_v27  ;;  %v1642_v9 = vpop.f32.mrb[94].mxu1  ;;  %v6003_v35 = vpop.f32.mrb[95].mxu0  ;;  %v3076_v60 = vsel %vm693_vm2, %v3073_v32, %v3075_v45  ;;  %v3575_v19 = vshll.u32 %v8347_v0, 16 }
 0x1bd   : > { %v6055_v14 = vpop.f32.mrb[95].mxu1 }
 0x1be   : > { %v8315_v62 = vadd.f32 %v1642_v9, %v1460_v18  ;;  %6313 = vmatmul.mubr.bf16.gmra.mrb[200].mxu0 %v8051_v37 }
 0x1bf   : > { %6365 = vmatmul.mubr.bf16.gmra.mrb[200].mxu1 %v3074_v6  ;;  %6316 = vmatprep.mubr.msk.bf16.mxu0 %vm7018_vm0, %v7017_v1  ;;  %v8362_v6 = vld [vmem:[%s7131_s26 + $0x60] sm:$0xff]  }
 0x1c0   : > { %6368 = vmatprep.mubr.msk.bf16.mxu1 %vm7018_vm0, %v7017_v1 }
 0x1c1   : > { %v1426_v5 = vpop.f32.mrb[96].mxu0 }
 0x1c2   : > { %v1461_v27 = vadd.f32 %v1426_v5, %v8139_v34  ;;  %v1647_v7 = vpop.f32.mrb[96].mxu1  ;;  %v6006_v17 = vpop.f32.mrb[97].mxu0  ;;  %v3077_v34 = vrot.slane %v8129_v28, 1 }
 0x1c3   : > { %v6058_v33 = vpop.f32.mrb[97].mxu1  ;;  %v1429_v26 = vpop.f32.mrb[98].mxu0  ;;  %v3577_v17 = vrot.slane %v3575_v19, 2  ;;  %v6902_v19 = vld [vmem:[%s9213_s1 + $0x188] sm:$0xff]  }
 0x1c4   : > { %v8324_v20 = vadd.f32 %v1647_v7, %v1461_v27  ;;  %v1462_v37 = vadd.f32 %v1429_v26, %v8141_v52  ;;  %v1650_v13 = vpop.f32.mrb[98].mxu1  ;;  %v6007_v39 = vpop.f32.mrb[99].mxu0  ;;  %v3261_v52 = vld [vmem:[%s7131_s26 + $0x50] sm:$0xe]  ;;  %v3078_v36 = vsel %vm693_vm2, %v3075_v45, %v3077_v34  ;;  %v3574_v7 = vrot.slane %v3572_v56, 1 }
 0x1c5   : > { %v6059_v49 = vpop.f32.mrb[99].mxu1  ;;  %v5295_v61 = vcombine.low %v3261_v52, %v8338_v63 }
 0x1c6   : > { %v8328_v2 = vadd.f32 %v1650_v13, %v1462_v37  ;;  %6317 = vmatmul.mubr.bf16.gmra.mrb[204].mxu0 %v8083_v30  ;;  %v3345_v37 = vrot.slane %v8347_v0, 1  ;;  %v3581_v13 = vshrl.u32 %v8362_v6, 16 }
 0x1c7   : > { %6369 = vmatmul.mubr.bf16.gmra.mrb[204].mxu1 %v3076_v60  ;;  %6320 = vmatprep.mubr.msk.bf16.mxu0 %vm7018_vm0, %v7017_v1  ;;  %v3564_v32 = vshrl.u32 %v5295_v61, 16  ;;  %v3344_v26 = vrot.slane %v5295_v61, 1  ;;  %v3578_v60 = vor.u32 %v3577_v17, %v3574_v7 }
 0x1c8   : > { %6372 = vmatprep.mubr.msk.bf16.mxu1 %vm7018_vm0, %v7017_v1 }
 0x1c9   : > { %v1434_v4 = vpop.f32.mrb[100].mxu0  ;;  %v3566_v35 = vrot.slane %v3564_v32, 1 }
 0x1ca   : > { %v1463_v53 = vadd.f32 %v1434_v4, %v8157_v22  ;;  %v1655_v15 = vpop.f32.mrb[100].mxu1  ;;  %v6010_v40 = vpop.f32.mrb[101].mxu0  ;;  %v3079_v22 = vrot.slane %v8149_v31, 1 }
 0x1cb   : > { %v6062_v43 = vpop.f32.mrb[101].mxu1  ;;  %v1437_v30 = vpop.f32.mrb[102].mxu0  ;;  %v6898_v40 = vld [vmem:[%s9213_s1 + $0x140] sm:$0xff]  }
 0x1cc   : > { %v8342_v51 = vadd.f32 %v1655_v15, %v1463_v53  ;;  %v1464_v3 = vadd.f32 %v1437_v30, %v8159_v38  ;;  %v1658_v58 = vpop.f32.mrb[102].mxu1  ;;  %v6011_v29 = vpop.f32.mrb[103].mxu0  ;;  %v3567_v38 = vshll.u32 %v5295_v61, 16  ;;  %v3080_v9 = vsel %vm693_vm2, %v3077_v34, %v3079_v22 }
 0x1cd   : > { %v6063_v54 = vpop.f32.mrb[103].mxu1  ;;  %v3346_v15 = vsel %vm693_vm2, %v3344_v26, %v3345_v37  ;;  %v3583_v43 = vrot.slane %v3581_v13, 1 }
 0x1ce   : > { %v8349_v48 = vadd.f32 %v1658_v58, %v1464_v3  ;;  %6321 = vmatmul.mubr.bf16.gmra.mrb[208].mxu0 %v8113_v8  ;;  %v3569_v31 = vrot.slane %v3567_v38, 2  ;;  %v8390_v54 = vld [vmem:[%s7131_s26 + $0x68] sm:$0xff]   ;;  %v3347_v38 = vrot.slane %v8362_v6, 1 }
 0x1cf   : > { %6373 = vmatmul.mubr.bf16.gmra.mrb[208].mxu1 %v3078_v36  ;;  %6324 = vmatprep.mubr.msk.bf16.mxu0 %vm7018_vm0, %v7017_v1  ;;  %v6899_v36 = vld [vmem:[%s9213_s1 + $0x180] sm:$0xff]  }
 0x1d0   : > { %6376 = vmatprep.mubr.msk.bf16.mxu1 %vm7018_vm0, %v7017_v1  ;;  %v3570_v39 = vor.u32 %v3569_v31, %v3566_v35  ;;  %v3348_v31 = vsel %vm693_vm2, %v3345_v37, %v3347_v38  ;;  %v6904_v37 = vld [vmem:[%s9213_s1 + $0x150] sm:$0xff]  }
 0x1d1   : > { %v1442_v25 = vpop.f32.mrb[104].mxu0 }
 0x1d2   : > { %v1465_v57 = vadd.f32 %v1442_v25, %v8169_v59  ;;  %v1663_v8 = vpop.f32.mrb[104].mxu1  ;;  %v6014_v16 = vpop.f32.mrb[105].mxu0  ;;  %v3590_v25 = vshrl.u32 %v8390_v54, 16 }
 0x1d3   : > { %v6066_v23 = vpop.f32.mrb[105].mxu1  ;;  %v1445_v18 = vpop.f32.mrb[106].mxu0 }
 0x1d4   : > { %v8364_v14 = vadd.f32 %v1663_v8, %v1465_v57  ;;  %v1466_v45 = vadd.f32 %v1445_v18, %v8174_v55  ;;  %v1666_v5 = vpop.f32.mrb[106].mxu1  ;;  %v6015_v27 = vpop.f32.mrb[107].mxu0  ;;  %v3584_v55 = vshll.u32 %v8362_v6, 16  ;;  %v3593_v57 = vshll.u32 %v8390_v54, 16 }
 0x1d5   : > { %v6067_v33 = vpop.f32.mrb[107].mxu1 }
 0x1d6   : > { %v8367_v59 = vadd.f32 %v1666_v5, %v1466_v45  ;;  %6325 = vmatmul.mubr.bf16.gmra.mrb[212].mxu0 %v8129_v28  ;;  %v3586_v30 = vrot.slane %v3584_v55, 2  ;;  %v8413_v5 = vld [vmem:[%s7131_s26 + $0x70] sm:$0xff]   ;;  %v3595_v26 = vrot.slane %v3593_v57, 2 }
 0x1d7   : > { %6377 = vmatmul.mubr.bf16.gmra.mrb[212].mxu1 %v3080_v9  ;;  %6396 = vmatprep.mubr.msk.bf16.mxu0 %vm7018_vm0, %v7017_v1  ;;  %v6905_v55 = vld [vmem:[%s9213_s1 + $0x190] sm:$0xff]  }
 0x1d8   : > { %6448 = vmatprep.mubr.msk.bf16.mxu1 %vm7018_vm0, %v7017_v1  ;;  %v3587_v56 = vor.u32 %v3586_v30, %v3583_v43 }
 0x1d9   : > { %v1882_v49 = vpop.f32.mrb[108].mxu0 }
 0x1da   : > { %v1953_v28 = vadd.f32 %v1882_v49, %v8185_v21  ;;  %v2173_v34 = vpop.f32.mrb[108].mxu1  ;;  %v6086_v52 = vpop.f32.mrb[109].mxu0  ;;  %v3579_v21 = vsel %vm1197_vm3, %v3570_v39, %v3578_v60  ;;  %v3588_v45 = vsel %vm1197_vm3, %v3578_v60, %v3587_v56  ;;  %v3599_v60 = vshrl.u32 %v8413_v5, 16 }
 0x1db   : > { %v6138_v4 = vpop.f32.mrb[109].mxu1  ;;  %v1885_v53 = vpop.f32.mrb[110].mxu0  ;;  %v3602_v49 = vshll.u32 %v8413_v5, 16 }
 0x1dc   : > { %v8382_v61 = vadd.f32 %v2173_v34, %v1953_v28  ;;  %v1954_v3 = vadd.f32 %v1885_v53, %v8192_v44  ;;  %v2176_v58 = vpop.f32.mrb[110].mxu1  ;;  %v6087_v29 = vpop.f32.mrb[111].mxu0  ;;  %v6901_v44 = vld [vmem:[%s9213_s1 + $0x148] sm:$0xff]   ;;  %v6907_v34 = vld [vmem:[%s9213_s1 + $0x158] sm:$0xff]  }
 0x1dd   : > { %v6139_v22 = vpop.f32.mrb[111].mxu1  ;;  %v6908_v4 = vld [vmem:[%s9213_s1 + $0x198] sm:$0xff]   ;;  %v3604_v29 = vrot.slane %v3602_v49, 2 }
 0x1de   : > { %v8392_v32 = vadd.f32 %v2176_v58, %v1954_v3  ;;  %6397 = vmatmul.mubr.bf16.vlgmr.msra.gmra.mrb[216].mxu0 %v3346_v15  ;;  %v3601_v58 = vrot.slane %v3599_v60, 1 }
 0x1df   : > { %6449 = vmatmul.mubr.bf16.vlgmr.msra.gmra.mrb[216].mxu1 %v3579_v21  ;;  %6485 = vmatpush3.bf16.msra.mxu0 %v6898_v40 }
 0x1e0   : > { %6537 = vmatpush3.bf16.msra.mxu1 %v6899_v36  ;;  %6400 = vmatprep.mubr.msk.bf16.mxu0 %vm7018_vm0, %v7017_v1 }
 0x1e1   : > { %v1890_v8 = vpop.f32.mrb[112].mxu0  ;;  %6452 = vmatprep.mubr.msk.bf16.mxu1 %vm7018_vm0, %v7017_v1  ;;  %6486 = vmatprep.subr.bf16.mxu0 %v7017_v1 }
 0x1e2   : > { %v1955_v16 = vadd.f32 %v1890_v8, %v8209_v41  ;;  %v2181_v23 = vpop.f32.mrb[112].mxu1  ;;  %v6090_v18 = vpop.f32.mrb[113].mxu0  ;;  %6538 = vmatprep.subr.bf16.mxu1 %v7017_v1  ;;  %v3592_v41 = vrot.slane %v3590_v25, 1  ;;  %v6910_v25 = vld [vmem:[%s9213_s1 + $0x160] sm:$0xff]   ;;  %v3605_v8 = vor.u32 %v3604_v29, %v3601_v58 }
 0x1e3   : > { %v6142_v9 = vpop.f32.mrb[113].mxu1  ;;  %v1893_v35 = vpop.f32.mrb[114].mxu0  ;;  %6487 = vmatpush3.bf16.msra.mxu0 %v6901_v44  ;;  %v6913_v18 = vld [vmem:[%s9213_s1 + $0x168] sm:$0xff]  }
 0x1e4   : > { %v8415_v27 = vadd.f32 %v2181_v23, %v1955_v16  ;;  %v1956_v7 = vadd.f32 %v1893_v35, %v8221_v11  ;;  %v2184_v17 = vpop.f32.mrb[114].mxu1  ;;  %v6091_v33 = vpop.f32.mrb[115].mxu0  ;;  %6539 = vmatpush3.bf16.msra.mxu1 %v6902_v19  ;;  %6488 = vmatprep.subr.bf16.mxu0 %v7017_v1  ;;  %v3349_v11 = vrot.slane %v8390_v54, 1  ;;  %v3596_v28 = vor.u32 %v3595_v26, %v3592_v41  ;;  %v6915_v35 = vld [vmem:[%s9213_s1 + $0x1a8] sm:$0xff]  }
 0x1e5   : > { %v6143_v13 = vpop.f32.mrb[115].mxu1  ;;  %6540 = vmatprep.subr.bf16.mxu1 %v7017_v1 }
 0x1e6   : > { %v8426_v39 = vadd.f32 %v2184_v17, %v1956_v7  ;;  %6401 = vmatmul.mubr.bf16.gmra.mrb[220].mxu0 %v3348_v31  ;;  %v3350_v3 = vsel %vm693_vm2, %v3347_v38, %v3349_v11  ;;  %v3597_v19 = vsel %vm1197_vm3, %v3587_v56, %v3596_v28  ;;  %v6911_v38 = vld [vmem:[%s9213_s1 + $0x1a0] sm:$0xff]   ;;  %v3351_v56 = vrot.slane %v8413_v5, 1 }
 0x1e7   : > { %6453 = vmatmul.mubr.bf16.gmra.mrb[220].mxu1 %v3588_v45  ;;  %6404 = vmatprep.mubr.msk.bf16.mxu0 %vm7018_vm0, %v7017_v1  ;;  %v3606_v26 = vsel %vm1197_vm3, %v3596_v28, %v3605_v8 }
 0x1e8   : > { %6456 = vmatprep.mubr.msk.bf16.mxu1 %vm7018_vm0, %v7017_v1  ;;  %6489 = vmatpush3.bf16.msra.mxu0 %v6904_v37  ;;  %v3352_v41 = vsel %vm693_vm2, %v3349_v11, %v3351_v56  ;;  %v8481_v37 = vld [vmem:[%s7131_s26 + $0x80] sm:$0xff]   ;;  %v6918_v11 = vld [vmem:[%s9213_s1 + $0x1b0] sm:$0xff]  }
 0x1e9   : > { %v1898_v52 = vpop.f32.mrb[116].mxu0  ;;  %6541 = vmatpush3.bf16.msra.mxu1 %v6905_v55  ;;  %6490 = vmatprep.subr.bf16.mxu0 %v7017_v1 }
 0x1ea   : > { %v1957_v53 = vadd.f32 %v1898_v52, %v8238_v46  ;;  %v2189_v15 = vpop.f32.mrb[116].mxu1  ;;  %v6094_v40 = vpop.f32.mrb[117].mxu0  ;;  %6542 = vmatprep.subr.bf16.mxu1 %v7017_v1  ;;  %v8450_v46 = vld [vmem:[%s7131_s26 + $0x78] sm:$0xff]   ;;  %v6916_v52 = vld [vmem:[%s9213_s1 + $0x170] sm:$0xff]  }
 0x1eb   : > { %v6146_v43 = vpop.f32.mrb[117].mxu1  ;;  %v1901_v30 = vpop.f32.mrb[118].mxu0  ;;  %v3608_v16 = vshrl.u32 %v8450_v46, 16  ;;  %v3611_v23 = vshll.u32 %v8450_v46, 16 }
 0x1ec   : > { %v8445_v21 = vadd.f32 %v2189_v15, %v1957_v53  ;;  %v1958_v36 = vadd.f32 %v1901_v30, %v8249_v24  ;;  %v2192_v22 = vpop.f32.mrb[118].mxu1  ;;  %v6095_v44 = vpop.f32.mrb[119].mxu0  ;;  %6491 = vmatpush3.bf16.msra.mxu0 %v6907_v34  ;;  %v3617_v53 = vshrl.u32 %v8481_v37, 16  ;;  %v3620_v15 = vshll.u32 %v8481_v37, 16  ;;  %v6921_v43 = vld [vmem:[%s9213_s1 + $0x178] sm:$0xff]  }
 0x1ed   : > { %v6147_v57 = vpop.f32.mrb[119].mxu1  ;;  %6543 = vmatpush3.bf16.msra.mxu1 %v6908_v4  ;;  %6492 = vmatprep.subr.bf16.mxu0 %v7017_v1  ;;  %v3610_v34 = vrot.slane %v3608_v16, 1 }
 0x1ee   : > { %v8459_v24 = vadd.f32 %v2192_v22, %v1958_v36  ;;  %6405 = vmatmul.mubr.bf16.gmra.mrb[224].mxu0 %v3350_v3  ;;  %6544 = vmatprep.subr.bf16.mxu1 %v7017_v1  ;;  %v6922_v3 = vld [vmem:[%s9213_s1 + $0x1b8] sm:$0xff]   ;;  %v3622_v57 = vrot.slane %v3620_v15, 2 }
 0x1ef   : > { %6457 = vmatmul.mubr.bf16.gmra.mrb[224].mxu1 %v3597_v19  ;;  %6408 = vmatprep.mubr.msk.bf16.mxu0 %vm7018_vm0, %v7017_v1 }
 0x1f0   : > { %6460 = vmatprep.mubr.msk.bf16.mxu1 %vm7018_vm0, %v7017_v1  ;;  %6493 = vmatpush3.bf16.msra.mxu0 %v6910_v25  ;;  %v3619_v25 = vrot.slane %v3617_v53, 1 }
 0x1f1   : > { %v1906_v9 = vpop.f32.mrb[120].mxu0  ;;  %6545 = vmatpush3.bf16.msra.mxu1 %v6911_v38  ;;  %6494 = vmatprep.subr.bf16.mxu0 %v7017_v1 }
 0x1f2   : > { %v1959_v31 = vadd.f32 %v1906_v9, %v8267_v12  ;;  %v2197_v45 = vpop.f32.mrb[120].mxu1  ;;  %v6098_v7 = vpop.f32.mrb[121].mxu0  ;;  %6546 = vmatprep.subr.bf16.mxu1 %v7017_v1  ;;  %v3613_v12 = vrot.slane %v3611_v23, 2 }
 0x1f3   : > { %v6150_v17 = vpop.f32.mrb[121].mxu1  ;;  %v1909_v33 = vpop.f32.mrb[122].mxu0 }
 0x1f4   : > { %v8483_v13 = vadd.f32 %v2197_v45, %v1959_v31  ;;  %v1960_v55 = vadd.f32 %v1909_v33, %v8278_v50  ;;  %v2200_v60 = vpop.f32.mrb[122].mxu1  ;;  %v6099_v49 = vpop.f32.mrb[123].mxu0  ;;  %6495 = vmatpush3.bf16.msra.mxu0 %v6913_v18  ;;  %v3353_v50 = vrot.slane %v8450_v46, 1  ;;  %v3614_v40 = vor.u32 %v3613_v12, %v3610_v34  ;;  %v8535_v34 = vld [vmem:[%s7131_s26 + $0x90] sm:$0xff]  }
 0x1f5   : > { %v6151_v4 = vpop.f32.mrb[123].mxu1  ;;  %6547 = vmatpush3.bf16.msra.mxu1 %v6915_v35  ;;  %6496 = vmatprep.subr.bf16.mxu0 %v7017_v1  ;;  %v8518_v35 = vld [vmem:[%s7131_s26 + $0x88] sm:$0xff]  }
 0x1f6   : > { %v8493_v28 = vadd.f32 %v2200_v60, %v1960_v55  ;;  %6409 = vmatmul.mubr.bf16.gmra.mrb[228].mxu0 %v3352_v41  ;;  %6548 = vmatprep.subr.bf16.mxu1 %v7017_v1  ;;  %v3354_v19 = vsel %vm693_vm2, %v3351_v56, %v3353_v50  ;;  %v3615_v9 = vsel %vm1197_vm3, %v3605_v8, %v3614_v40  ;;  %v3626_v8 = vshrl.u32 %v8518_v35, 16 }
 0x1f7   : > { %6461 = vmatmul.mubr.bf16.gmra.mrb[228].mxu1 %v3606_v26  ;;  %6412 = vmatprep.mubr.msk.bf16.mxu0 %vm7018_vm0, %v7017_v1  ;;  %v3623_v56 = vor.u32 %v3622_v57, %v3619_v25  ;;  %v3629_v45 = vshll.u32 %v8518_v35, 16 }
 0x1f8   : > { %6464 = vmatprep.mubr.msk.bf16.mxu1 %vm7018_vm0, %v7017_v1  ;;  %6497 = vmatpush3.bf16.msra.mxu0 %v6916_v52  ;;  %v3628_v53 = vrot.slane %v3626_v8, 1  ;;  %v8556_v8 = vld [vmem:[%s7131_s26 + $0x98] ss:$0 sps:$4 sm:$0x33]  }
 0x1f9   : > { %v1914_v30 = vpop.f32.mrb[124].mxu0  ;;  %6549 = vmatpush3.bf16.msra.mxu1 %v6918_v11  ;;  %6498 = vmatprep.subr.bf16.mxu0 %v7017_v1  ;;  %v3624_v49 = vsel %vm1197_vm3, %v3614_v40, %v3623_v56  ;;  %v3631_v15 = vrot.slane %v3629_v45, 2  ;;  %v3635_v40 = vshrl.u32 %v8535_v34, 16 }
 0x1fa   : > { %v1961_v58 = vadd.f32 %v1914_v30, %v8296_v47  ;;  %v2205_v29 = vpop.f32.mrb[124].mxu1  ;;  %v6102_v36 = vpop.f32.mrb[125].mxu0  ;;  %6550 = vmatprep.subr.bf16.mxu1 %v7017_v1  ;;  %v3638_v30 = vshll.u32 %v8535_v34, 16 }
 0x1fb   : > { %v6154_v22 = vpop.f32.mrb[125].mxu1  ;;  %v1917_v44 = vpop.f32.mrb[126].mxu0  ;;  %v3637_v25 = vrot.slane %v3635_v40, 1 }
 0x1fc   : > { %v8513_v38 = vadd.f32 %v2205_v29, %v1961_v58  ;;  %v1962_v16 = vadd.f32 %v1917_v44, %v8301_v42  ;;  %v2208_v23 = vpop.f32.mrb[126].mxu1  ;;  %v6103_v18 = vpop.f32.mrb[127].mxu0  ;;  %6499 = vmatpush3.bf16.msra.mxu0 %v6921_v43  ;;  %v3355_v42 = vrot.slane %v8481_v37, 1  ;;  %v3640_v57 = vrot.slane %v3638_v30, 2 }
 0x1fd   : > { %v6155_v47 = vpop.f32.mrb[127].mxu1  ;;  %6551 = vmatpush3.bf16.msra.mxu1 %v6922_v3  ;;  %6588 = vmatprep.subr.bf16.mxu0 %v7017_v1 }
 0x1fe   : > { %v8521_v31 = vadd.f32 %v2208_v23, %v1962_v16  ;;  %6413 = vmatmul.mubr.bf16.gmra.mrb[232].mxu0 %v3354_v19  ;;  %6640 = vmatprep.subr.bf16.mxu1 %v7017_v1  ;;  %v3356_v60 = vsel %vm693_vm2, %v3353_v50, %v3355_v42  ;;  %v3357_v50 = vrot.slane %v8518_v35, 1 }
 0x1ff   : > { %6465 = vmatmul.mubr.bf16.gmra.mrb[232].mxu1 %v3615_v9  ;;  %6416 = vmatprep.mubr.msk.bf16.mxu0 %vm7018_vm0, %v7017_v1 }
 0x200   : > { %6468 = vmatprep.mubr.msk.bf16.mxu1 %vm7018_vm0, %v7017_v1  ;;  %v3358_v19 = vsel %vm693_vm2, %v3355_v42, %v3357_v50  ;;  %v3359_v42 = vrot.slane %v8535_v34, 1 }
 0x201   : > { %v1922_v7 = vpop.f32.mrb[128].mxu0 }
 0x202   : > { %v1963_v17 = vadd.f32 %v1922_v7, %v8311_v10  ;;  %v2213_v33 = vpop.f32.mrb[128].mxu1  ;;  %v6106_v41 = vpop.f32.mrb[129].mxu0  ;;  %v3641_v7 = vor.u32 %v3640_v57, %v3637_v25 }
 0x203   : > { %v6158_v26 = vpop.f32.mrb[129].mxu1  ;;  %v1925_v55 = vpop.f32.mrb[130].mxu0 }
 0x204   : > { %v8537_v12 = vadd.f32 %v2213_v33, %v1963_v17  ;;  %v1964_v52 = vadd.f32 %v1925_v55, %v8315_v62  ;;  %v2216_v4 = vpop.f32.mrb[130].mxu1  ;;  %v6107_v11 = vpop.f32.mrb[131].mxu0  ;;  %v3632_v62 = vor.u32 %v3631_v15, %v3628_v53 }
 0x205   : > { %v6159_v43 = vpop.f32.mrb[131].mxu1 }
 0x206   : > { %v8540_v10 = vadd.f32 %v2216_v4, %v1964_v52  ;;  %6417 = vmatmul.mubr.bf16.gmra.mrb[236].mxu0 %v3356_v60  ;;  %v3633_v47 = vsel %vm1197_vm3, %v3623_v56, %v3632_v62  ;;  %v3647_v56 = vshll.u32 %v8556_v8, 16  ;;  %v3642_v52 = vsel %vm1197_vm3, %v3632_v62, %v3641_v7  ;;  %v6919_v4 = vld [vmem:[%s7131_s26 + $0x98] ss:$0 sps:$4 sm:$0x11]  }
 0x207   : > { %6469 = vmatmul.mubr.bf16.gmra.mrb[236].mxu1 %v3624_v49  ;;  %6420 = vmatprep.mubr.msk.bf16.mxu0 %vm7018_vm0, %v7017_v1  ;;  %v3360_v49 = vsel %vm693_vm2, %v3357_v50, %v3359_v42  ;;  %v3361_v50 = vrot.slane %v6919_v4, 1 }
 0x208   : > { %6472 = vmatprep.mubr.msk.bf16.mxu1 %vm7018_vm0, %v7017_v1 }
 0x209   : > { %v1930_v3 = vpop.f32.mrb[132].mxu0 }
 0x20a   : > { %v1965_v58 = vadd.f32 %v1930_v3, %v8324_v20  ;;  %v2221_v29 = vpop.f32.mrb[132].mxu1  ;;  %v6110_v36 = vpop.f32.mrb[133].mxu0 }
 0x20b   : > { %v6162_v22 = vpop.f32.mrb[133].mxu1  ;;  %v1933_v44 = vpop.f32.mrb[134].mxu0  ;;  %v8583_v36 = vld [vmem:[%s7131_s26 + $0x5c] sm:$0xf] }
 0x20c   : > { %v8551_v16 = vadd.f32 %v2221_v29, %v1965_v58  ;;  %v1966_v23 = vadd.f32 %v1933_v44, %v8328_v2  ;;  %v2224_v18 = vpop.f32.mrb[134].mxu1  ;;  %v6111_v9 = vpop.f32.mrb[135].mxu0  ;;  %v3644_v2 = vshrl.u32 %v8556_v8, 16  ;;  %v3832_v58 = vld [vmem:[%s7131_s26 + $0x50] sm:$0xc] }
 0x20d   : > { %v6163_v45 = vpop.f32.mrb[135].mxu1  ;;  %v4051_v29 = vld [vmem:[%s7131_s26 + $0x58] sm:$0xc] }
 0x20e   : > { %v8558_v20 = vadd.f32 %v2224_v18, %v1966_v23  ;;  %6421 = vmatmul.mubr.bf16.gmra.mrb[240].mxu0 %v3358_v19  ;;  %v3646_v40 = vrot.slane %v3644_v2, 1  ;;  %v3362_v23 = vsel %vm693_vm2, %v3359_v42, %v3361_v50  ;;  %v5354_v18 = vcombine.low %v3832_v58, %v8338_v63  ;;  %v6928_v50 = vld [vmem:[%s9213_s1 + $0x200] sm:$0xff]  }
 0x20f   : > { %6473 = vmatmul.mubr.bf16.gmra.mrb[240].mxu1 %v3633_v47  ;;  %6424 = vmatprep.mubr.msk.bf16.mxu0 %vm7018_vm0, %v7017_v1 }
 0x210   : > { %6476 = vmatprep.mubr.msk.bf16.mxu1 %vm7018_vm0, %v7017_v1  ;;  %v3852_v63 = vrot.slane %v5354_v18, 2 }
 0x211   : > { %v1938_v17 = vpop.f32.mrb[136].mxu0 }
 0x212   : > { %v1967_v33 = vadd.f32 %v1938_v17, %v8342_v51  ;;  %v2229_v41 = vpop.f32.mrb[136].mxu1  ;;  %v6114_v26 = vpop.f32.mrb[137].mxu0  ;;  %v3649_v51 = vrot.slane %v3647_v56, 2  ;;  %v8596_v17 = vld [vmem:[%s7131_s26 + $0x60] sm:$0xff]  }
 0x213   : > { %v6166_v55 = vpop.f32.mrb[137].mxu1  ;;  %v1941_v60 = vpop.f32.mrb[138].mxu0  ;;  %v8613_v26 = vld [vmem:[%s9214_s2] ss:$0 sm:$0xff] }
 0x214   : > { %v8571_v11 = vadd.f32 %v2229_v41, %v1967_v33  ;;  %v1968_v53 = vadd.f32 %v1941_v60, %v8349_v48  ;;  %v2232_v15 = vpop.f32.mrb[138].mxu1  ;;  %v6115_v43 = vpop.f32.mrb[139].mxu0  ;;  %v3650_v62 = vor.u32 %v3649_v51, %v3646_v40 }
 0x215   : > { %v6167_v30 = vpop.f32.mrb[139].mxu1 }
 0x216   : > { %v8574_v3 = vadd.f32 %v2232_v15, %v1968_v53  ;;  %6425 = vmatmul.mubr.bf16.gmra.mrb[244].mxu0 %v3360_v49  ;;  %v3651_v56 = vsel %vm1197_vm3, %v3641_v7, %v3650_v62  ;;  %v4135_v7 = vrot.slane %v8596_v17, 2  ;;  %v6927_v15 = vld [vmem:[%s9213_s1 + $0x1c0] sm:$0xff]   ;;  %v8631_v62 = vld [vmem:[%s7131_s26 + $0x68] sm:$0xff]  }
 0x217   : > { %6477 = vmatmul.mubr.bf16.gmra.mrb[244].mxu1 %v3642_v52  ;;  %6428 = vmatprep.mubr.msk.bf16.mxu0 %vm7018_vm0, %v7017_v1 }
 0x218   : > { %6480 = vmatprep.mubr.msk.bf16.mxu1 %vm7018_vm0, %v7017_v1 }
 0x219   : > { %v1946_v48 = vpop.f32.mrb[140].mxu0 }
 0x21a   : > { %v1969_v22 = vadd.f32 %v1946_v48, %v8364_v14  ;;  %v2237_v44 = vpop.f32.mrb[140].mxu1  ;;  %v6118_v19 = vpop.f32.mrb[141].mxu0  ;;  %v8593_v14 = vcombine.low %v4051_v29, %v8583_v36 }
 0x21b   : > { %v6170_v25 = vpop.f32.mrb[141].mxu1  ;;  %v1949_v57 = vpop.f32.mrb[142].mxu0  ;;  %v4137_v19 = vrot.slane %v8631_v62, 2 }
 0x21c   : > { %v8588_v9 = vadd.f32 %v2237_v44, %v1969_v22  ;;  %v1970_v47 = vadd.f32 %v1949_v57, %v8367_v59  ;;  %v2240_v45 = vpop.f32.mrb[142].mxu1  ;;  %v6119_v2 = vpop.f32.mrb[143].mxu0  ;;  %v3853_v59 = vrot.slane %v8347_v0, 2  ;;  %v4134_v42 = vrot.slane %v8593_v14, 2  ;;  %v6930_v22 = vld [vmem:[%s9213_s1 + $0x1c8] sm:$0xff]  }
 0x21d   : > { %v6171_v33 = vpop.f32.mrb[143].mxu1 }
 0x21e   : > { %v8598_v41 = vadd.f32 %v2240_v45, %v1970_v47  ;;  %6429 = vmatmul.mubr.bf16.gmra.mrb[248].mxu0 %v3362_v23  ;;  %v3854_v53 = vsel %vm1488_vm4, %v3852_v63, %v3853_v59 }
 0x21f   : > { %6481 = vmatmul.mubr.bf16.gmra.mrb[248].mxu1 %v3651_v56  ;;  %6500 = vmatprep.mubr.msk.bf16.mxu0 %vm7018_vm0, %v7017_v1 }
 0x220   : > { %6552 = vmatprep.mubr.msk.bf16.mxu1 %vm7018_vm0, %v7017_v1 }
 0x221   : > { %v2394_v55 = vpop.f32.mrb[144].mxu0 }
 0x222   : > { %v2465_v60 = vadd.f32 %v2394_v55, %v8382_v61  ;;  %v8616_v49 = vpop.f32.mrb[144].mxu1  ;;  %v6190_v0 = vpop.f32.mrb[145].mxu0  ;;  %v4136_v61 = vsel %vm1488_vm4, %v4134_v42, %v4135_v7  ;;  %v8662_v55 = vld [vmem:[%s7131_s26 + $0x70] sm:$0xff]  }
 0x223   : > { %v6242_v52 = vpop.f32.mrb[145].mxu1  ;;  %v2397_v4 = vpop.f32.mrb[146].mxu0 }
 0x224   : > { %v2489_v43 = vadd.f32 %v8613_v26, %v2465_v60  ;;  %v2466_v40 = vadd.f32 %v2397_v4, %v8392_v32  ;;  %v8624_v51 = vpop.f32.mrb[146].mxu1  ;;  %v6191_v30 = vpop.f32.mrb[147].mxu0  ;;  %v3855_v32 = vrot.slane %v8362_v6, 2  ;;  %v6931_v6 = vld [vmem:[%s9213_s1 + $0x208] sm:$0xff]   ;;  %v3857_v52 = vrot.slane %v8390_v54, 2  ;;  %v6937_v54 = vld [vmem:[%s9213_s1 + $0x218] sm:$0xff]  }
 0x225   : > { %v6243_v58 = vpop.f32.mrb[147].mxu1 }
 0x226   : > { %v2507_v48 = vmax.f32 %v2489_v43, 0.0  ;;  %v2490_v29 = vadd.f32 %v8613_v26, %v2466_v40  ;;  %6501 = vmatmul.mubr.bf16.vlgmr.msra.gmra.mrb[252].mxu0 %v3854_v53  ;;  %v3856_v2 = vsel %vm1488_vm4, %v3853_v59, %v3855_v32  ;;  %v6933_v59 = vld [vmem:[%s9213_s1 + $0x1d0] sm:$0xff]   ;;  %v4139_v53 = vrot.slane %v8662_v55, 2 }
 0x227   : > { %6553 = vmatmul.mubr.bf16.vlgmr.msra.gmra.mrb[252].mxu1 %v4136_v61  ;;  %6589 = vmatpush3.bf16.msra.mxu0 %v6927_v15  ;;  %v6936_v15 = vld [vmem:[%s9213_s1 + $0x1d8] sm:$0xff]  }
 0x228   : > { %2525 = vst [vmem:[%s8638_s17] sm:$0xff] %v2507_v48  ;;  %v2508_v44 = vmax.f32 %v2490_v29, 0.0  ;;  %6641 = vmatpush3.bf16.msra.mxu1 %v6928_v50  ;;  %6504 = vmatprep.mubr.msk.bf16.mxu0 %vm7018_vm0, %v7017_v1  ;;  %v3858_v48 = vsel %vm1488_vm4, %v3855_v32, %v3857_v52 }
 0x229   : > { %v2402_v25 = vpop.f32.mrb[148].mxu0  ;;  %6556 = vmatprep.mubr.msk.bf16.mxu1 %vm7018_vm0, %v7017_v1  ;;  %6590 = vmatprep.subr.bf16.mxu0 %v7017_v1 }
 0x22a   : > { %2526 = vst [vmem:[%s8638_s17 + $0x8] sm:$0xff] %v2508_v44  ;;  %v2467_v57 = vadd.f32 %v2402_v25, %v8415_v27  ;;  %v8652_v23 = vpop.f32.mrb[148].mxu1  ;;  %v6194_v18 = vpop.f32.mrb[149].mxu0  ;;  %6642 = vmatprep.subr.bf16.mxu1 %v7017_v1  ;;  %v4138_v27 = vsel %vm1488_vm4, %v4135_v7, %v4137_v19  ;;  %v4140_v25 = vsel %vm1488_vm4, %v4137_v19, %v4139_v53  ;;  %v3859_v19 = vrot.slane %v8413_v5, 2  ;;  %v6944_v5 = vld [vmem:[%s9213_s1 + $0x228] sm:$0xff]  }
 0x22b   : > { %v6246_v47 = vpop.f32.mrb[149].mxu1  ;;  %v2405_v45 = vpop.f32.mrb[150].mxu0  ;;  %6591 = vmatpush3.bf16.msra.mxu0 %v6930_v22 }
 0x22c   : > { %v2491_v56 = vadd.f32 %v8613_v26, %v2467_v57  ;;  %v2468_v33 = vadd.f32 %v2405_v45, %v8426_v39  ;;  %v8658_v63 = vpop.f32.mrb[150].mxu1  ;;  %v6195_v42 = vpop.f32.mrb[151].mxu0  ;;  %6643 = vmatpush3.bf16.msra.mxu1 %v6931_v6  ;;  %6592 = vmatprep.subr.bf16.mxu0 %v7017_v1  ;;  %v6934_v39 = vld [vmem:[%s9213_s1 + $0x210] sm:$0xff]   ;;  %v6939_v57 = vld [vmem:[%s9213_s1 + $0x1e0] sm:$0xff]  }
 0x22d   : > { %v6247_v60 = vpop.f32.mrb[151].mxu1  ;;  %6644 = vmatprep.subr.bf16.mxu1 %v7017_v1 }
 0x22e   : > { %v2509_v0 = vmax.f32 %v2491_v56, 0.0  ;;  %v2492_v7 = vadd.f32 %v8613_v26, %v2468_v33  ;;  %6505 = vmatmul.mubr.bf16.gmra.mrb[0].mxu0 %v3856_v2  ;;  %v6942_v56 = vld [vmem:[%s9213_s1 + $0x1e8] sm:$0xff]  }
 0x22f   : > { %6557 = vmatmul.mubr.bf16.gmra.mrb[0].mxu1 %v4138_v27  ;;  %6508 = vmatprep.mubr.msk.bf16.mxu0 %vm7018_vm0, %v7017_v1 }
 0x230   : > { %2527 = vst [vmem:[%s8638_s17 + $0x10] sm:$0xff] %v2509_v0  ;;  %v2510_v4 = vmax.f32 %v2492_v7, 0.0  ;;  %6560 = vmatprep.mubr.msk.bf16.mxu1 %vm7018_vm0, %v7017_v1  ;;  %6593 = vmatpush3.bf16.msra.mxu0 %v6933_v59  ;;  %v3860_v0 = vsel %vm1488_vm4, %v3857_v52, %v3859_v19 }
 0x231   : > { %v2410_v43 = vpop.f32.mrb[152].mxu0  ;;  %6645 = vmatpush3.bf16.msra.mxu1 %v6934_v39  ;;  %6594 = vmatprep.subr.bf16.mxu0 %v7017_v1 }
 0x232   : > { %2528 = vst [vmem:[%s8638_s17 + $0x18] sm:$0xff] %v2510_v4  ;;  %v2469_v40 = vadd.f32 %v2410_v43, %v8445_v21  ;;  %v8689_v30 = vpop.f32.mrb[152].mxu1  ;;  %v6198_v61 = vpop.f32.mrb[153].mxu0  ;;  %6646 = vmatprep.subr.bf16.mxu1 %v7017_v1  ;;  %v8699_v21 = vld [vmem:[%s7131_s26 + $0x78] sm:$0xff]  }
 0x233   : > { %v6250_v50 = vpop.f32.mrb[153].mxu1  ;;  %v2413_v58 = vpop.f32.mrb[154].mxu0  ;;  %v4141_v2 = vrot.slane %v8699_v21, 2 }
 0x234   : > { %v2493_v29 = vadd.f32 %v8613_v26, %v2469_v40  ;;  %v2470_v22 = vadd.f32 %v2413_v58, %v8459_v24  ;;  %v8695_v44 = vpop.f32.mrb[154].mxu1  ;;  %v6199_v6 = vpop.f32.mrb[155].mxu0  ;;  %6595 = vmatpush3.bf16.msra.mxu0 %v6936_v15  ;;  %v6940_v24 = vld [vmem:[%s9213_s1 + $0x220] sm:$0xff]   ;;  %v6945_v40 = vld [vmem:[%s9213_s1 + $0x1f0] sm:$0xff]  }
 0x235   : > { %v6251_v18 = vpop.f32.mrb[155].mxu1  ;;  %6647 = vmatpush3.bf16.msra.mxu1 %v6937_v54  ;;  %6596 = vmatprep.subr.bf16.mxu0 %v7017_v1  ;;  %v4142_v54 = vsel %vm1488_vm4, %v4139_v53, %v4141_v2  ;;  %v3861_v53 = vrot.slane %v8450_v46, 2  ;;  %v6950_v46 = vld [vmem:[%s9213_s1 + $0x238] sm:$0xff]  }
 0x236   : > { %v2511_v32 = vmax.f32 %v2493_v29, 0.0  ;;  %v2494_v47 = vadd.f32 %v8613_v26, %v2470_v22  ;;  %6509 = vmatmul.mubr.bf16.gmra.mrb[4].mxu0 %v3858_v48  ;;  %6648 = vmatprep.subr.bf16.mxu1 %v7017_v1  ;;  %v6949_v29 = vld [vmem:[%s9213_s1 + $0x1f8] sm:$0xff]  }
 0x237   : > { %6561 = vmatmul.mubr.bf16.gmra.mrb[4].mxu1 %v4140_v25  ;;  %6512 = vmatprep.mubr.msk.bf16.mxu0 %vm7018_vm0, %v7017_v1 }
 0x238   : > { %2529 = vst [vmem:[%s8638_s17 + $0x20] sm:$0xff] %v2511_v32  ;;  %v2512_v45 = vmax.f32 %v2494_v47, 0.0  ;;  %6564 = vmatprep.mubr.msk.bf16.mxu1 %vm7018_vm0, %v7017_v1  ;;  %6597 = vmatpush3.bf16.msra.mxu0 %v6939_v57  ;;  %v3862_v32 = vsel %vm1488_vm4, %v3859_v19, %v3861_v53 }
 0x239   : > { %v2418_v33 = vpop.f32.mrb[156].mxu0  ;;  %6649 = vmatpush3.bf16.msra.mxu1 %v6940_v24  ;;  %6598 = vmatprep.subr.bf16.mxu0 %v7017_v1 }
 0x23a   : > { %2530 = vst [vmem:[%s8638_s17 + $0x28] sm:$0xff] %v2512_v45  ;;  %v2471_v42 = vadd.f32 %v2418_v33, %v8483_v13  ;;  %v8726_v27 = vpop.f32.mrb[156].mxu1  ;;  %v6202_v59 = vpop.f32.mrb[157].mxu0  ;;  %6650 = vmatprep.subr.bf16.mxu1 %v7017_v1  ;;  %v8736_v13 = vld [vmem:[%s7131_s26 + $0x80] sm:$0xff]  }
 0x23b   : > { %v6254_v60 = vpop.f32.mrb[157].mxu1  ;;  %v2421_v39 = vpop.f32.mrb[158].mxu0  ;;  %v4143_v48 = vrot.slane %v8736_v13, 2 }
 0x23c   : > { %v2495_v7 = vadd.f32 %v8613_v26, %v2471_v42  ;;  %v2472_v4 = vadd.f32 %v2421_v39, %v8493_v28  ;;  %v8732_v15 = vpop.f32.mrb[158].mxu1  ;;  %v6203_v43 = vpop.f32.mrb[159].mxu0  ;;  %6599 = vmatpush3.bf16.msra.mxu0 %v6942_v56  ;;  %v6947_v28 = vld [vmem:[%s9213_s1 + $0x230] sm:$0xff]  }
 0x23d   : > { %v6255_v61 = vpop.f32.mrb[159].mxu1  ;;  %6651 = vmatpush3.bf16.msra.mxu1 %v6944_v5  ;;  %6600 = vmatprep.subr.bf16.mxu0 %v7017_v1  ;;  %v4144_v5 = vsel %vm1488_vm4, %v4141_v2, %v4143_v48 }
 0x23e   : > { %v2513_v52 = vmax.f32 %v2495_v7, 0.0  ;;  %v2496_v50 = vadd.f32 %v8613_v26, %v2472_v4  ;;  %6513 = vmatmul.mubr.bf16.gmra.mrb[8].mxu0 %v3860_v0  ;;  %6652 = vmatprep.subr.bf16.mxu1 %v7017_v1 }
 0x23f   : > { %6565 = vmatmul.mubr.bf16.gmra.mrb[8].mxu1 %v4142_v54  ;;  %6516 = vmatprep.mubr.msk.bf16.mxu0 %vm7018_vm0, %v7017_v1 }
 0x240   : > { %2531 = vst [vmem:[%s8638_s17 + $0x30] sm:$0xff] %v2513_v52  ;;  %v2514_v58 = vmax.f32 %v2496_v50, 0.0  ;;  %6568 = vmatprep.mubr.msk.bf16.mxu1 %vm7018_vm0, %v7017_v1  ;;  %6601 = vmatpush3.bf16.msra.mxu0 %v6945_v40 }
 0x241   : > { %v2426_v22 = vpop.f32.mrb[160].mxu0  ;;  %6653 = vmatpush3.bf16.msra.mxu1 %v6947_v28  ;;  %6602 = vmatprep.subr.bf16.mxu0 %v7017_v1 }
 0x242   : > { %2532 = vst [vmem:[%s8638_s17 + $0x38] sm:$0xff] %v2514_v58  ;;  %v2473_v6 = vadd.f32 %v2426_v22, %v8513_v38  ;;  %v8763_v25 = vpop.f32.mrb[160].mxu1  ;;  %v6206_v57 = vpop.f32.mrb[161].mxu0  ;;  %6654 = vmatprep.subr.bf16.mxu1 %v7017_v1  ;;  %v8773_v38 = vld [vmem:[%s7131_s26 + $0x88] sm:$0xff]   ;;  %v8794_v58 = vld [vmem:[%s7131_s26 + $0x90] sm:$0xff]  }
 0x243   : > { %v6258_v18 = vpop.f32.mrb[161].mxu1  ;;  %v2429_v24 = vpop.f32.mrb[162].mxu0  ;;  %v4145_v2 = vrot.slane %v8773_v38, 2 }
 0x244   : > { %v2497_v47 = vadd.f32 %v8613_v26, %v2473_v6  ;;  %v2474_v45 = vadd.f32 %v2429_v24, %v8521_v31  ;;  %v8769_v56 = vpop.f32.mrb[162].mxu1  ;;  %v6207_v33 = vpop.f32.mrb[163].mxu0  ;;  %6603 = vmatpush3.bf16.msra.mxu0 %v6949_v29  ;;  %v3863_v31 = vrot.slane %v8481_v37, 2 }
 0x245   : > { %v6259_v42 = vpop.f32.mrb[163].mxu1  ;;  %6655 = vmatpush3.bf16.msra.mxu1 %v6950_v46  ;;  %v4146_v50 = vsel %vm1488_vm4, %v4143_v48, %v4145_v2  ;;  %v4147_v48 = vrot.slane %v8794_v58, 2 }
 0x246   : > { %v2515_v59 = vmax.f32 %v2497_v47, 0.0  ;;  %v2498_v60 = vadd.f32 %v8613_v26, %v2474_v45  ;;  %6517 = vmatmul.mubr.bf16.gmra.mrb[12].mxu0 %v3862_v32  ;;  %v3864_v37 = vsel %vm1488_vm4, %v3861_v53, %v3863_v31  ;;  %v3865_v53 = vrot.slane %v8518_v35, 2 }
 0x247   : > { %6569 = vmatmul.mubr.bf16.gmra.mrb[12].mxu1 %v4144_v5  ;;  %6520 = vmatprep.mubr.msk.bf16.mxu0 %vm7018_vm0, %v7017_v1  ;;  %v4148_v42 = vsel %vm1488_vm4, %v4145_v2, %v4147_v48 }
 0x248   : > { %2533 = vst [vmem:[%s8638_s17 + $0x40] sm:$0xff] %v2515_v59  ;;  %v2516_v19 = vmax.f32 %v2498_v60, 0.0  ;;  %6572 = vmatprep.mubr.msk.bf16.mxu1 %vm7018_vm0, %v7017_v1  ;;  %v3866_v35 = vsel %vm1488_vm4, %v3863_v31, %v3865_v53  ;;  %v8815_v59 = vld [vmem:[%s7131_s26 + $0x98] sm:$0xff]   ;;  %v3867_v31 = vrot.slane %v8535_v34, 2 }
 0x249   : > { %v2434_v39 = vpop.f32.mrb[164].mxu0  ;;  %v4149_v2 = vrot.slane %v8815_v59, 2 }
 0x24a   : > { %2534 = vst [vmem:[%s8638_s17 + $0x48] sm:$0xff] %v2516_v19  ;;  %v2475_v0 = vadd.f32 %v2434_v39, %v8537_v12  ;;  %v8785_v7 = vpop.f32.mrb[164].mxu1  ;;  %v6210_v4 = vpop.f32.mrb[165].mxu0 }
 0x24b   : > { %v6262_v43 = vpop.f32.mrb[165].mxu1  ;;  %v2437_v54 = vpop.f32.mrb[166].mxu0 }
 0x24c   : > { %v2499_v40 = vadd.f32 %v8613_v26, %v2475_v0  ;;  %v2476_v61 = vadd.f32 %v2437_v54, %v8540_v10  ;;  %v8790_v28 = vpop.f32.mrb[166].mxu1  ;;  %v6211_v52 = vpop.f32.mrb[167].mxu0 }
 0x24d   : > { %v6263_v12 = vpop.f32.mrb[167].mxu1 }
 0x24e   : > { %v2517_v29 = vmax.f32 %v2499_v40, 0.0  ;;  %v2500_v22 = vadd.f32 %v8613_v26, %v2476_v61  ;;  %6521 = vmatmul.mubr.bf16.gmra.mrb[16].mxu0 %v3864_v37  ;;  %v3868_v40 = vsel %vm1488_vm4, %v3865_v53, %v3867_v31  ;;  %v4150_v12 = vsel %vm1488_vm4, %v4147_v48, %v4149_v2 }
 0x24f   : > { %6573 = vmatmul.mubr.bf16.gmra.mrb[16].mxu1 %v4146_v50  ;;  %6524 = vmatprep.mubr.msk.bf16.mxu0 %vm7018_vm0, %v7017_v1  ;;  %v4357_v53 = vshll.u32 %v8593_v14, 16  ;;  %v3869_v48 = vrot.slane %v8556_v8, 2 }
 0x250   : > { %2535 = vst [vmem:[%s8638_s17 + $0x50] sm:$0xff] %v2517_v29  ;;  %v2518_v10 = vmax.f32 %v2500_v22, 0.0  ;;  %6576 = vmatprep.mubr.msk.bf16.mxu1 %vm7018_vm0, %v7017_v1  ;;  %v6948_v29 = vld [vmem:[%s7131_s26 + $0xa0] ss:$0 sps:$4 sm:$0x33]   ;;  %v4354_v22 = vshrl.u32 %v8593_v14, 16 }
 0x251   : > { %v2442_v46 = vpop.f32.mrb[168].mxu0  ;;  %v3870_v8 = vsel %vm1488_vm4, %v3867_v31, %v3869_v48 }
 0x252   : > { %2536 = vst [vmem:[%s8638_s17 + $0x58] sm:$0xff] %v2518_v10  ;;  %v2477_v6 = vadd.f32 %v2442_v46, %v8551_v16  ;;  %v8806_v57 = vpop.f32.mrb[168].mxu1  ;;  %v6214_v18 = vpop.f32.mrb[169].mxu0 }
 0x253   : > { %v6266_v24 = vpop.f32.mrb[169].mxu1  ;;  %v2445_v32 = vpop.f32.mrb[170].mxu0 }
 0x254   : > { %v2501_v47 = vadd.f32 %v8613_v26, %v2477_v6  ;;  %v2478_v45 = vadd.f32 %v2445_v32, %v8558_v20  ;;  %v8811_v33 = vpop.f32.mrb[170].mxu1  ;;  %v6215_v5 = vpop.f32.mrb[171].mxu0  ;;  %v4365_v6 = vshll.u32 %v8596_v17, 16  ;;  %v4151_v24 = vrot.slane %v6948_v29, 2  ;;  %v4622_v32 = vld [vmem:[%s7131_s26 + $0x58] sm:$0x8] }
 0x255   : > { %v6267_v16 = vpop.f32.mrb[171].mxu1 }
 0x256   : > { %v2519_v60 = vmax.f32 %v2501_v47, 0.0  ;;  %v2502_v19 = vadd.f32 %v8613_v26, %v2478_v45  ;;  %6525 = vmatmul.mubr.bf16.gmra.mrb[20].mxu0 %v3866_v35  ;;  %v4356_v47 = vrot.slane %v4354_v22, 2 }
 0x257   : > { %6577 = vmatmul.mubr.bf16.gmra.mrb[20].mxu1 %v4148_v42  ;;  %6528 = vmatprep.mubr.msk.bf16.mxu0 %vm7018_vm0, %v7017_v1  ;;  %v4359_v42 = vrot.slane %v4357_v53, 3 }
 0x258   : > { %2537 = vst [vmem:[%s8638_s17 + $0x60] sm:$0xff] %v2519_v60  ;;  %v2520_v20 = vmax.f32 %v2502_v19, 0.0  ;;  %6580 = vmatprep.mubr.msk.bf16.mxu1 %vm7018_vm0, %v7017_v1 }
 0x259   : > { %v2450_v39 = vpop.f32.mrb[172].mxu0  ;;  %v4360_v31 = vor.u32 %v4359_v42, %v4356_v47  ;;  %v4383_v42 = vshll.u32 %v8662_v55, 16 }
 0x25a   : > { %2538 = vst [vmem:[%s8638_s17 + $0x68] sm:$0xff] %v2520_v20  ;;  %v2479_v0 = vadd.f32 %v2450_v39, %v8571_v11  ;;  %v8827_v4 = vpop.f32.mrb[172].mxu1  ;;  %v6218_v43 = vpop.f32.mrb[173].mxu0  ;;  %v4367_v20 = vrot.slane %v4365_v6, 3  ;;  %v5438_v39 = vcombine.low %v4622_v32, %v8583_v36 }
 0x25b   : > { %v6270_v54 = vpop.f32.mrb[173].mxu1  ;;  %v2453_v37 = vpop.f32.mrb[174].mxu0 }
 0x25c   : > { %v2503_v34 = vadd.f32 %v8613_v26, %v2479_v0  ;;  %v2480_v61 = vadd.f32 %v2453_v37, %v8574_v3  ;;  %v8832_v52 = vpop.f32.mrb[174].mxu1  ;;  %v6219_v50 = vpop.f32.mrb[175].mxu0  ;;  %v4362_v3 = vshrl.u32 %v8596_v17, 16  ;;  %v4152_v37 = vsel %vm1488_vm4, %v4149_v2, %v4151_v24 }
 0x25d   : > { %v6271_v11 = vpop.f32.mrb[175].mxu1  ;;  %v4371_v50 = vshrl.u32 %v8631_v62, 16  ;;  %v4643_v2 = vrot.slane %v8596_v17, 3 }
 0x25e   : > { %v2521_v10 = vmax.f32 %v2503_v34, 0.0  ;;  %v2504_v46 = vadd.f32 %v8613_v26, %v2480_v61  ;;  %6529 = vmatmul.mubr.bf16.gmra.mrb[24].mxu0 %v3868_v40  ;;  %v4364_v19 = vrot.slane %v4362_v3, 2 }
 0x25f   : > { %6581 = vmatmul.mubr.bf16.gmra.mrb[24].mxu1 %v4150_v12  ;;  %6532 = vmatprep.mubr.msk.bf16.mxu0 %vm7018_vm0, %v7017_v1  ;;  %v4642_v12 = vrot.slane %v5438_v39, 3  ;;  %v4373_v6 = vrot.slane %v4371_v50, 2 }
 0x260   : > { %2539 = vst [vmem:[%s8638_s17 + $0x70] sm:$0xff] %v2521_v10  ;;  %v2522_v18 = vmax.f32 %v2504_v46, 0.0  ;;  %6584 = vmatprep.mubr.msk.bf16.mxu1 %vm7018_vm0, %v7017_v1  ;;  %v4368_v36 = vor.u32 %v4367_v20, %v4364_v19 }
 0x261   : > { %v2458_v35 = vpop.f32.mrb[176].mxu0  ;;  %v4644_v17 = vsel %vm2283_vm6, %v4642_v12, %v4643_v2 }
 0x262   : > { %2540 = vst [vmem:[%s8638_s17 + $0x78] sm:$0xff] %v2522_v18  ;;  %v2481_v14 = vadd.f32 %v2458_v35, %v8588_v9  ;;  %v8850_v45 = vpop.f32.mrb[176].mxu1  ;;  %v6222_v5 = vpop.f32.mrb[177].mxu0  ;;  %v4369_v3 = vsel %vm1992_vm5, %v4360_v31, %v4368_v36 }
 0x263   : > { %v6274_v16 = vpop.f32.mrb[177].mxu1  ;;  %v2461_v60 = vpop.f32.mrb[178].mxu0  ;;  %v4380_v5 = vshrl.u32 %v8662_v55, 16 }
 0x264   : > { %v2505_v0 = vadd.f32 %v8613_v26, %v2481_v14  ;;  %v2482_v43 = vadd.f32 %v2461_v60, %v8598_v41  ;;  %v8856_v54 = vpop.f32.mrb[178].mxu1  ;;  %v6223_v9 = vpop.f32.mrb[179].mxu0  ;;  %v4374_v41 = vshll.u32 %v8631_v62, 16 }
 0x265   : > { %v6275_v40 = vpop.f32.mrb[179].mxu1  ;;  %v4385_v9 = vrot.slane %v4383_v42, 3 }
 0x266   : > { %v2523_v34 = vmax.f32 %v2505_v0, 0.0  ;;  %v2506_v61 = vadd.f32 %v8613_v26, %v2482_v43  ;;  %6533 = vmatmul.mubr.bf16.gmra.mrb[28].mxu0 %v3870_v8  ;;  %v4376_v48 = vrot.slane %v4374_v41, 3  ;;  %v4382_v43 = vrot.slane %v4380_v5, 2 }
 0x267   : > { %6585 = vmatmul.mubr.bf16.gmra.mrb[28].mxu1 %v4152_v37  ;;  %6604 = vmatprep.mubr.msk.bf16.mxu0 %vm7018_vm0, %v7017_v1  ;;  %v4392_v41 = vshll.u32 %v8699_v21, 16 }
 0x268   : > { %2541 = vst [vmem:[%s8638_s17 + $0x80] sm:$0xff] %v2523_v34  ;;  %v2524_v29 = vmax.f32 %v2506_v61, 0.0  ;;  %6656 = vmatprep.mubr.msk.bf16.mxu1 %vm7018_vm0, %v7017_v1 }
 0x269   : > { %v2971_v26 = vpop.f32.mrb[180].mxu0 }
 0x26a   : > { %2542 = vst [vmem:[%s8638_s17 + $0x88] sm:$0xff] %v2524_v29  ;;  %v2972_v11 = vadd.f32 %v2971_v26, %v8616_v49  ;;  %v3172_v22 = vpop.f32.mrb[180].mxu1  ;;  %v6294_v10 = vpop.f32.mrb[181].mxu0  ;;  %v4377_v49 = vor.u32 %v4376_v48, %v4373_v6 }
 0x26b   : > { %v6346_v46 = vpop.f32.mrb[181].mxu1  ;;  %v2974_v53 = vpop.f32.mrb[182].mxu0 }
 0x26c   : > { %v8871_v18 = vadd.f32 %v3172_v22, %v2972_v11  ;;  %v2975_v24 = vadd.f32 %v2974_v53, %v8624_v51  ;;  %v3175_v32 = vpop.f32.mrb[182].mxu1  ;;  %v6295_v35 = vpop.f32.mrb[183].mxu0  ;;  %v4645_v51 = vrot.slane %v8631_v62, 3  ;;  %v4378_v0 = vsel %vm1992_vm5, %v4368_v36, %v4377_v49 }
 0x26d   : > { %v6347_v47 = vpop.f32.mrb[183].mxu1  ;;  %v4389_v36 = vshrl.u32 %v8699_v21, 16  ;;  %v4394_v53 = vrot.slane %v4392_v41, 3 }
 0x26e   : > { %v8875_v14 = vadd.f32 %v3175_v32, %v2975_v24  ;;  %6605 = vmatmul.mubr.bf16.vlgmr.msra.gmra.mrb[32].mxu0 %v4369_v3  ;;  %v4646_v31 = vsel %vm2283_vm6, %v4643_v2, %v4645_v51  ;;  %v4401_v47 = vshll.u32 %v8736_v13, 16 }
 0x26f   : > { %6657 = vmatmul.mubr.bf16.vlgmr.msra.gmra.mrb[32].mxu1 %v4644_v17  ;;  %6608 = vmatprep.mubr.msk.bf16.mxu0 %vm7018_vm0, %v7017_v1  ;;  %v4391_v46 = vrot.slane %v4389_v36, 2  ;;  %v4398_v17 = vshrl.u32 %v8736_v13, 16 }
 0x270   : > { %6660 = vmatprep.mubr.msk.bf16.mxu1 %vm7018_vm0, %v7017_v1 }
 0x271   : > { %v2979_v16 = vpop.f32.mrb[184].mxu0 }
 0x272   : > { %v2980_v60 = vadd.f32 %v2979_v16, %v8652_v23  ;;  %v3180_v8 = vpop.f32.mrb[184].mxu1  ;;  %v6298_v19 = vpop.f32.mrb[185].mxu0  ;;  %v4386_v23 = vor.u32 %v4385_v9, %v4382_v43 }
 0x273   : > { %v6350_v20 = vpop.f32.mrb[185].mxu1  ;;  %v2982_v39 = vpop.f32.mrb[186].mxu0  ;;  %v4400_v19 = vrot.slane %v4398_v17, 2 }
 0x274   : > { %v8886_v37 = vadd.f32 %v3180_v8, %v2980_v60  ;;  %v2983_v40 = vadd.f32 %v2982_v39, %v8658_v63  ;;  %v3183_v34 = vpop.f32.mrb[186].mxu1  ;;  %v6299_v61 = vpop.f32.mrb[187].mxu0  ;;  %v4647_v63 = vrot.slane %v8662_v55, 3  ;;  %v4387_v10 = vsel %vm1992_vm5, %v4377_v49, %v4386_v23 }
 0x275   : > { %v6351_v62 = vpop.f32.mrb[187].mxu1  ;;  %v4403_v20 = vrot.slane %v4401_v47, 3  ;;  %v4407_v61 = vshrl.u32 %v8773_v38, 16 }
 0x276   : > { %v8890_v50 = vadd.f32 %v3183_v34, %v2983_v40  ;;  %6609 = vmatmul.mubr.bf16.gmra.mrb[36].mxu0 %v4378_v0  ;;  %v4648_v32 = vsel %vm2283_vm6, %v4645_v51, %v4647_v63 }
 0x277   : > { %6661 = vmatmul.mubr.bf16.gmra.mrb[36].mxu1 %v4646_v31  ;;  %6612 = vmatprep.mubr.msk.bf16.mxu0 %vm7018_vm0, %v7017_v1  ;;  %v4410_v31 = vshll.u32 %v8773_v38, 16 }
 0x278   : > { %6664 = vmatprep.mubr.msk.bf16.mxu1 %vm7018_vm0, %v7017_v1 }
 0x279   : > { %v2987_v12 = vpop.f32.mrb[188].mxu0 }
 0x27a   : > { %v2988_v29 = vadd.f32 %v2987_v12, %v8689_v30  ;;  %v3188_v2 = vpop.f32.mrb[188].mxu1  ;;  %v6302_v26 = vpop.f32.mrb[189].mxu0  ;;  %v4395_v30 = vor.u32 %v4394_v53, %v4391_v46 }
 0x27b   : > { %v6354_v11 = vpop.f32.mrb[189].mxu1  ;;  %v2990_v22 = vpop.f32.mrb[190].mxu0  ;;  %v4412_v26 = vrot.slane %v4410_v31, 3 }
 0x27c   : > { %v8901_v3 = vadd.f32 %v3188_v2, %v2988_v29  ;;  %v2991_v6 = vadd.f32 %v2990_v22, %v8695_v44  ;;  %v3191_v48 = vpop.f32.mrb[190].mxu1  ;;  %v6303_v24 = vpop.f32.mrb[191].mxu0  ;;  %v4649_v44 = vrot.slane %v8699_v21, 3  ;;  %v4396_v8 = vsel %vm1992_vm5, %v4386_v23, %v4395_v30 }
 0x27d   : > { %v6355_v55 = vpop.f32.mrb[191].mxu1  ;;  %v4409_v2 = vrot.slane %v4407_v61, 2  ;;  %v4419_v24 = vshll.u32 %v8794_v58, 16 }
 0x27e   : > { %v8905_v35 = vadd.f32 %v3191_v48, %v2991_v6  ;;  %6613 = vmatmul.mubr.bf16.gmra.mrb[40].mxu0 %v4387_v10  ;;  %v4650_v40 = vsel %vm2283_vm6, %v4647_v63, %v4649_v44  ;;  %v4416_v48 = vshrl.u32 %v8794_v58, 16 }
 0x27f   : > { %6665 = vmatmul.mubr.bf16.gmra.mrb[40].mxu1 %v4648_v32  ;;  %6616 = vmatprep.mubr.msk.bf16.mxu0 %vm7018_vm0, %v7017_v1 }
 0x280   : > { %6668 = vmatprep.mubr.msk.bf16.mxu1 %vm7018_vm0, %v7017_v1 }
 0x281   : > { %v2995_v49 = vpop.f32.mrb[192].mxu0 }
 0x282   : > { %v2996_v5 = vadd.f32 %v2995_v49, %v8726_v27  ;;  %v3196_v42 = vpop.f32.mrb[192].mxu1  ;;  %v6306_v51 = vpop.f32.mrb[193].mxu0  ;;  %v4404_v27 = vor.u32 %v4403_v20, %v4400_v19 }
 0x283   : > { %v6358_v16 = vpop.f32.mrb[193].mxu1  ;;  %v2998_v60 = vpop.f32.mrb[194].mxu0 }
 0x284   : > { %v8916_v39 = vadd.f32 %v3196_v42, %v2996_v5  ;;  %v2999_v0 = vadd.f32 %v2998_v60, %v8732_v15  ;;  %v3199_v43 = vpop.f32.mrb[194].mxu1  ;;  %v6307_v9 = vpop.f32.mrb[195].mxu0  ;;  %v4651_v15 = vrot.slane %v8736_v13, 3  ;;  %v4405_v29 = vsel %vm1992_vm5, %v4395_v30, %v4404_v27 }
 0x285   : > { %v6359_v21 = vpop.f32.mrb[195].mxu1  ;;  %v4418_v5 = vrot.slane %v4416_v48, 2  ;;  %v4421_v42 = vrot.slane %v4419_v24, 3 }
 0x286   : > { %v8920_v34 = vadd.f32 %v3199_v43, %v2999_v0  ;;  %6617 = vmatmul.mubr.bf16.gmra.mrb[44].mxu0 %v4396_v8  ;;  %v4652_v53 = vsel %vm2283_vm6, %v4649_v44, %v4651_v15  ;;  %v4428_v43 = vshll.u32 %v8815_v59, 16 }
 0x287   : > { %6669 = vmatmul.mubr.bf16.gmra.mrb[44].mxu1 %v4650_v40  ;;  %6620 = vmatprep.mubr.msk.bf16.mxu0 %vm7018_vm0, %v7017_v1  ;;  %v4422_v0 = vor.u32 %v4421_v42, %v4418_v5 }
 0x288   : > { %6672 = vmatprep.mubr.msk.bf16.mxu1 %vm7018_vm0, %v7017_v1 }
 0x289   : > { %v3003_v62 = vpop.f32.mrb[196].mxu0 }
 0x28a   : > { %v3004_v23 = vadd.f32 %v3003_v62, %v8763_v25  ;;  %v3204_v36 = vpop.f32.mrb[196].mxu1  ;;  %v6310_v41 = vpop.f32.mrb[197].mxu0  ;;  %v4413_v25 = vor.u32 %v4412_v26, %v4409_v2 }
 0x28b   : > { %v6362_v63 = vpop.f32.mrb[197].mxu1  ;;  %v3006_v12 = vpop.f32.mrb[198].mxu0 }
 0x28c   : > { %v8931_v11 = vadd.f32 %v3204_v36, %v3004_v23  ;;  %v3007_v22 = vadd.f32 %v3006_v12, %v8769_v56  ;;  %v3207_v10 = vpop.f32.mrb[198].mxu1  ;;  %v6311_v46 = vpop.f32.mrb[199].mxu0  ;;  %v4653_v56 = vrot.slane %v8773_v38, 3  ;;  %v4414_v49 = vsel %vm1992_vm5, %v4404_v27, %v4413_v25  ;;  %v6951_v36 = vld [vmem:[%s7131_s26 + $0xa0] ss:$0 sps:$4 sm:$0x77]  }
 0x28d   : > { %v6363_v13 = vpop.f32.mrb[199].mxu1  ;;  %v4423_v62 = vsel %vm1992_vm5, %v4413_v25, %v4422_v0  ;;  %v4430_v23 = vrot.slane %v4428_v43, 3  ;;  %v4659_v42 = vrot.slane %v6951_v36, 3 }
 0x28e   : > { %v8935_v6 = vadd.f32 %v3207_v10, %v3007_v22  ;;  %6621 = vmatmul.mubr.bf16.gmra.mrb[48].mxu0 %v4405_v29  ;;  %v4654_v19 = vsel %vm2283_vm6, %v4651_v15, %v4653_v56  ;;  %v4434_v22 = vshrl.u32 %v6951_v36, 16  ;;  %v4437_v10 = vshll.u32 %v6951_v36, 16 }
 0x28f   : > { %6673 = vmatmul.mubr.bf16.gmra.mrb[48].mxu1 %v4652_v53  ;;  %6624 = vmatprep.mubr.msk.bf16.mxu0 %vm7018_vm0, %v7017_v1 }
 0x290   : > { %6676 = vmatprep.mubr.msk.bf16.mxu1 %vm7018_vm0, %v7017_v1 }
 0x291   : > { %v3011_v32 = vpop.f32.mrb[200].mxu0 }
 0x292   : > { %v3012_v55 = vadd.f32 %v3011_v32, %v8785_v7  ;;  %v3212_v30 = vpop.f32.mrb[200].mxu1  ;;  %v6314_v17 = vpop.f32.mrb[201].mxu0  ;;  %v4425_v7 = vshrl.u32 %v8815_v59, 16  ;;  %v4436_v32 = vrot.slane %v4434_v22, 2 }
 0x293   : > { %v6366_v47 = vpop.f32.mrb[201].mxu1  ;;  %v3014_v44 = vpop.f32.mrb[202].mxu0 }
 0x294   : > { %v8946_v51 = vadd.f32 %v3212_v30, %v3012_v55  ;;  %v3015_v16 = vadd.f32 %v3014_v44, %v8790_v28  ;;  %v3215_v60 = vpop.f32.mrb[202].mxu1  ;;  %v6315_v8 = vpop.f32.mrb[203].mxu0  ;;  %v4655_v28 = vrot.slane %v8794_v58, 3  ;;  %v4427_v61 = vrot.slane %v4425_v7, 2 }
 0x295   : > { %v6367_v38 = vpop.f32.mrb[203].mxu1  ;;  %v4439_v55 = vrot.slane %v4437_v10, 3 }
 0x296   : > { %v8950_v20 = vadd.f32 %v3215_v60, %v3015_v16  ;;  %6625 = vmatmul.mubr.bf16.gmra.mrb[52].mxu0 %v4414_v49  ;;  %v4656_v58 = vsel %vm2283_vm6, %v4653_v56, %v4655_v28 }
 0x297   : > { %6677 = vmatmul.mubr.bf16.gmra.mrb[52].mxu1 %v4654_v19  ;;  %6628 = vmatprep.mubr.msk.bf16.mxu0 %vm7018_vm0, %v7017_v1 }
 0x298   : > { %6680 = vmatprep.mubr.msk.bf16.mxu1 %vm7018_vm0, %v7017_v1 }
 0x299   : > { %v3019_v9 = vpop.f32.mrb[204].mxu0 }
 0x29a   : > { %v3020_v40 = vadd.f32 %v3019_v9, %v8806_v57  ;;  %v3220_v21 = vpop.f32.mrb[204].mxu1  ;;  %v6318_v27 = vpop.f32.mrb[205].mxu0  ;;  %v4431_v57 = vor.u32 %v4430_v23, %v4427_v61 }
 0x29b   : > { %v6370_v31 = vpop.f32.mrb[205].mxu1  ;;  %v3022_v15 = vpop.f32.mrb[206].mxu0 }
 0x29c   : > { %v8962_v41 = vadd.f32 %v3220_v21, %v3020_v40  ;;  %v3023_v63 = vadd.f32 %v3022_v15, %v8811_v33  ;;  %v3223_v12 = vpop.f32.mrb[206].mxu1  ;;  %v6319_v29 = vpop.f32.mrb[207].mxu0  ;;  %v4657_v33 = vrot.slane %v8815_v59, 3  ;;  %v4432_v56 = vsel %vm1992_vm5, %v4422_v0, %v4431_v57 }
 0x29d   : > { %v6371_v2 = vpop.f32.mrb[207].mxu1 }
 0x29e   : > { %v8966_v26 = vadd.f32 %v3223_v12, %v3023_v63  ;;  %6629 = vmatmul.mubr.bf16.gmra.mrb[56].mxu0 %v4423_v62  ;;  %v4658_v49 = vsel %vm2283_vm6, %v4655_v28, %v4657_v33  ;;  %v4660_v40 = vsel %vm2283_vm6, %v4657_v33, %v4659_v42 }
 0x29f   : > { %6681 = vmatmul.mubr.bf16.gmra.mrb[56].mxu1 %v4656_v58  ;;  %6632 = vmatprep.mubr.msk.bf16.mxu0 %vm7018_vm0, %v7017_v1 }
 0x2a0   : > { %6684 = vmatprep.mubr.msk.bf16.mxu1 %vm7018_vm0, %v7017_v1 }
 0x2a1   : > { %v3027_v46 = vpop.f32.mrb[208].mxu0 }
 0x2a2   : > { %v3028_v53 = vadd.f32 %v3027_v46, %v8827_v4  ;;  %v3228_v13 = vpop.f32.mrb[208].mxu1  ;;  %v6322_v25 = vpop.f32.mrb[209].mxu0  ;;  %v4440_v4 = vor.u32 %v4439_v55, %v4436_v32 }
 0x2a3   : > { %v6374_v48 = vpop.f32.mrb[209].mxu1  ;;  %v3030_v24 = vpop.f32.mrb[210].mxu0 }
 0x2a4   : > { %v8975_v30 = vadd.f32 %v3228_v13, %v3028_v53  ;;  %v3031_v17 = vadd.f32 %v3030_v24, %v8832_v52  ;;  %v3231_v47 = vpop.f32.mrb[210].mxu1  ;;  %v6323_v44 = vpop.f32.mrb[211].mxu0  ;;  %v4441_v7 = vsel %vm1992_vm5, %v4431_v57, %v4440_v4 }
 0x2a5   : > { %v6375_v59 = vpop.f32.mrb[211].mxu1 }
 0x2a6   : > { %v8979_v5 = vadd.f32 %v3231_v47, %v3031_v17  ;;  %6633 = vmatmul.mubr.bf16.gmra.mrb[60].mxu0 %v4432_v56 }
 0x2a7   : > { %6685 = vmatmul.mubr.bf16.gmra.mrb[60].mxu1 %v4658_v49  ;;  %6636 = vmatprep.mubr.msk.bf16.mxu0 %vm7018_vm0, %v7017_v1 }
 0x2a8   : > { %6688 = vmatprep.mubr.msk.bf16.mxu1 %vm7018_vm0, %v7017_v1 }
 0x2a9   : > { %v3035_v16 = vpop.f32.mrb[212].mxu0 }
 0x2aa   : > { %v3036_v52 = vadd.f32 %v3035_v16, %v8850_v45  ;;  %v3236_v60 = vpop.f32.mrb[212].mxu1  ;;  %v6326_v8 = vpop.f32.mrb[213].mxu0 }
 0x2ab   : > { %v6378_v19 = vpop.f32.mrb[213].mxu1  ;;  %v3038_v38 = vpop.f32.mrb[214].mxu0 }
 0x2ac   : > { %v8987_v0 = vadd.f32 %v3236_v60, %v3036_v52  ;;  %v3039_v43 = vadd.f32 %v3038_v38, %v8856_v54  ;;  %v3239_v28 = vpop.f32.mrb[214].mxu1  ;;  %v6327_v9 = vpop.f32.mrb[215].mxu0 }
 0x2ad   : > { %v6379_v21 = vpop.f32.mrb[215].mxu1 }
 0x2ae   : > { %v8991_v1 = vadd.f32 %v3239_v28, %v3039_v43  ;;  %6637 = vmatmul.mubr.bf16.gmra.mrb[64].mxu0 %v4441_v7 }
 0x2af   : > { %6689 = vmatmul.mubr.bf16.gmra.mrb[64].mxu1 %v4660_v40 }
 0x2b1   : > { %v3454_v45 = vpop.f32.mrb[216].mxu0 }
 0x2b2   : > { %v3525_v27 = vadd.f32 %v3454_v45, %v8871_v18  ;;  %v3743_v61 = vpop.f32.mrb[216].mxu1  ;;  %v6398_v31 = vpop.f32.mrb[217].mxu0 }
 0x2b3   : > { %v6450_v15 = vpop.f32.mrb[217].mxu1  ;;  %v3457_v62 = vpop.f32.mrb[218].mxu0 }
 0x2b4   : > { %v8994_v23 = vadd.f32 %v3743_v61, %v3525_v27  ;;  %v3526_v54 = vadd.f32 %v3457_v62, %v8875_v14  ;;  %v3746_v36 = vpop.f32.mrb[218].mxu1  ;;  %v6399_v63 = vpop.f32.mrb[219].mxu0 }
 0x2b5   : > { %v6451_v12 = vpop.f32.mrb[219].mxu1 }
 0x2b6   : > { %v8997_v29 = vadd.f32 %v3746_v36, %v3526_v54 }
 0x2b9   : > { %v3462_v58 = vpop.f32.mrb[220].mxu0 }
 0x2ba   : > { %v3527_v2 = vadd.f32 %v3462_v58, %v8886_v37  ;;  %v3751_v57 = vpop.f32.mrb[220].mxu1  ;;  %v6402_v22 = vpop.f32.mrb[221].mxu0 }
 0x2bb   : > { %v6454_v10 = vpop.f32.mrb[221].mxu1  ;;  %v3465_v18 = vpop.f32.mrb[222].mxu0 }
 0x2bc   : > { %v9000_v33 = vadd.f32 %v3751_v57, %v3527_v2  ;;  %v3528_v46 = vadd.f32 %v3465_v18, %v8890_v50  ;;  %v3754_v53 = vpop.f32.mrb[222].mxu1  ;;  %v6403_v13 = vpop.f32.mrb[223].mxu0 }
 0x2bd   : > { %v6455_v25 = vpop.f32.mrb[223].mxu1 }
 0x2be   : > { %v9003_v14 = vadd.f32 %v3754_v53, %v3528_v46 }
 0x2c1   : > { %v3470_v48 = vpop.f32.mrb[224].mxu0 }
 0x2c2   : > { %v3529_v24 = vadd.f32 %v3470_v48, %v8901_v3  ;;  %v3759_v56 = vpop.f32.mrb[224].mxu1  ;;  %v6406_v32 = vpop.f32.mrb[225].mxu0 }
 0x2c3   : > { %v6458_v55 = vpop.f32.mrb[225].mxu1  ;;  %v3473_v37 = vpop.f32.mrb[226].mxu0 }
 0x2c4   : > { %v9006_v17 = vadd.f32 %v3759_v56, %v3529_v24  ;;  %v3530_v47 = vadd.f32 %v3473_v37, %v8905_v35  ;;  %v3762_v44 = vpop.f32.mrb[226].mxu1  ;;  %v6407_v49 = vpop.f32.mrb[227].mxu0 }
 0x2c5   : > { %v6459_v59 = vpop.f32.mrb[227].mxu1 }
 0x2c6   : > { %v9009_v50 = vadd.f32 %v3762_v44, %v3530_v47 }
 0x2c9   : > { %v3478_v4 = vpop.f32.mrb[228].mxu0 }
 0x2ca   : > { %v3531_v42 = vadd.f32 %v3478_v4, %v8916_v39  ;;  %v3767_v16 = vpop.f32.mrb[228].mxu1  ;;  %v6410_v52 = vpop.f32.mrb[229].mxu0 }
 0x2cb   : > { %v6462_v60 = vpop.f32.mrb[229].mxu1  ;;  %v3481_v3 = vpop.f32.mrb[230].mxu0 }
 0x2cc   : > { %v9012_v8 = vadd.f32 %v3767_v16, %v3531_v42  ;;  %v3532_v19 = vadd.f32 %v3481_v3, %v8920_v34  ;;  %v3770_v38 = vpop.f32.mrb[230].mxu1  ;;  %v6411_v7 = vpop.f32.mrb[231].mxu0 }
 0x2cd   : > { %v6463_v43 = vpop.f32.mrb[231].mxu1 }
 0x2ce   : > { %v9015_v35 = vadd.f32 %v3770_v38, %v3532_v19 }
 0x2d1   : > { %v3486_v28 = vpop.f32.mrb[232].mxu0 }
 0x2d2   : > { %v3533_v9 = vadd.f32 %v3486_v28, %v8931_v11  ;;  %v3775_v40 = vpop.f32.mrb[232].mxu1  ;;  %v6414_v21 = vpop.f32.mrb[233].mxu0 }
 0x2d3   : > { %v6466_v45 = vpop.f32.mrb[233].mxu1  ;;  %v3489_v39 = vpop.f32.mrb[234].mxu0 }
 0x2d4   : > { %v9018_v27 = vadd.f32 %v3775_v40, %v3533_v9  ;;  %v3534_v61 = vadd.f32 %v3489_v39, %v8935_v6  ;;  %v3778_v31 = vpop.f32.mrb[234].mxu1  ;;  %v6415_v15 = vpop.f32.mrb[235].mxu0 }
 0x2d5   : > { %v6467_v62 = vpop.f32.mrb[235].mxu1 }
 0x2d6   : > { %v9021_v34 = vadd.f32 %v3778_v31, %v3534_v61 }
 0x2d9   : > { %v3494_v54 = vpop.f32.mrb[236].mxu0 }
 0x2da   : > { %v3535_v36 = vadd.f32 %v3494_v54, %v8946_v51  ;;  %v3783_v63 = vpop.f32.mrb[236].mxu1  ;;  %v6418_v12 = vpop.f32.mrb[237].mxu0 }
 0x2db   : > { %v6470_v58 = vpop.f32.mrb[237].mxu1  ;;  %v3497_v11 = vpop.f32.mrb[238].mxu0 }
 0x2dc   : > { %v9024_v2 = vadd.f32 %v3783_v63, %v3535_v36  ;;  %v3536_v57 = vadd.f32 %v3497_v11, %v8950_v20  ;;  %v3786_v22 = vpop.f32.mrb[238].mxu1  ;;  %v6419_v10 = vpop.f32.mrb[239].mxu0 }
 0x2dd   : > { %v6471_v18 = vpop.f32.mrb[239].mxu1 }
 0x2de   : > { %v9027_v6 = vadd.f32 %v3786_v22, %v3536_v57 }
 0x2e1   : > { %v3502_v46 = vpop.f32.mrb[240].mxu0 }
 0x2e2   : > { %v3537_v53 = vadd.f32 %v3502_v46, %v8962_v41  ;;  %v3791_v13 = vpop.f32.mrb[240].mxu1  ;;  %v6422_v25 = vpop.f32.mrb[241].mxu0 }
 0x2e3   : > { %v6474_v48 = vpop.f32.mrb[241].mxu1  ;;  %v3505_v51 = vpop.f32.mrb[242].mxu0 }
 0x2e4   : > { %v9030_v24 = vadd.f32 %v3791_v13, %v3537_v53  ;;  %v3538_v56 = vadd.f32 %v3505_v51, %v8966_v26  ;;  %v3794_v32 = vpop.f32.mrb[242].mxu1  ;;  %v6423_v55 = vpop.f32.mrb[243].mxu0 }
 0x2e5   : > { %v6475_v37 = vpop.f32.mrb[243].mxu1 }
 0x2e6   : > { %v9033_v20 = vadd.f32 %v3794_v32, %v3538_v56 }
 0x2e9   : > { %v3510_v47 = vpop.f32.mrb[244].mxu0 }
 0x2ea   : > { %v3539_v44 = vadd.f32 %v3510_v47, %v8975_v30  ;;  %v3799_v49 = vpop.f32.mrb[244].mxu1  ;;  %v6426_v59 = vpop.f32.mrb[245].mxu0 }
 0x2eb   : > { %v6478_v4 = vpop.f32.mrb[245].mxu1  ;;  %v3513_v41 = vpop.f32.mrb[246].mxu0 }
 0x2ec   : > { %v9036_v42 = vadd.f32 %v3799_v49, %v3539_v44  ;;  %v3540_v16 = vadd.f32 %v3513_v41, %v8979_v5  ;;  %v3802_v52 = vpop.f32.mrb[246].mxu1  ;;  %v6427_v60 = vpop.f32.mrb[247].mxu0 }
 0x2ed   : > { %v6479_v3 = vpop.f32.mrb[247].mxu1 }
 0x2ee   : > { %v9039_v26 = vadd.f32 %v3802_v52, %v3540_v16 }
 0x2f1   : > { %v3518_v19 = vpop.f32.mrb[248].mxu0 }
 0x2f2   : > { %v3541_v38 = vadd.f32 %v3518_v19, %v8987_v0  ;;  %v3807_v7 = vpop.f32.mrb[248].mxu1  ;;  %v6430_v43 = vpop.f32.mrb[249].mxu0 }
 0x2f3   : > { %v6482_v28 = vpop.f32.mrb[249].mxu1  ;;  %v3521_v30 = vpop.f32.mrb[250].mxu0 }
 0x2f4   : > { %v9042_v9 = vadd.f32 %v3807_v7, %v3541_v38  ;;  %v3542_v40 = vadd.f32 %v3521_v30, %v8991_v1  ;;  %v3810_v21 = vpop.f32.mrb[250].mxu1  ;;  %v6431_v45 = vpop.f32.mrb[251].mxu0 }
 0x2f5   : > { %v6483_v39 = vpop.f32.mrb[251].mxu1 }
 0x2f6   : > { %v9045_v5 = vadd.f32 %v3810_v21, %v3542_v40 }
 0x2f9   : > { %v3962_v61 = vpop.f32.mrb[252].mxu0 }
 0x2fa   : > { %v4033_v31 = vadd.f32 %v3962_v61, %v8994_v23  ;;  %v4244_v15 = vpop.f32.mrb[252].mxu1  ;;  %v6502_v62 = vpop.f32.mrb[253].mxu0 }
 0x2fb   : > { %v6554_v54 = vpop.f32.mrb[253].mxu1  ;;  %v3965_v0 = vpop.f32.mrb[254].mxu0 }
 0x2fc   : > { %v9048_v36 = vadd.f32 %v4244_v15, %v4033_v31  ;;  %v4034_v63 = vadd.f32 %v3965_v0, %v8997_v29  ;;  %v4247_v12 = vpop.f32.mrb[254].mxu1  ;;  %v6503_v58 = vpop.f32.mrb[255].mxu0 }
 0x2fd   : > { %v6555_v11 = vpop.f32.mrb[255].mxu1 }
 0x2fe   : > { %v9051_v1 = vadd.f32 %v4247_v12, %v4034_v63 }
 0x301   : > { %v3970_v57 = vpop.f32.mrb[0].mxu0 }
 0x302   : > { %v4035_v22 = vadd.f32 %v3970_v57, %v9000_v33  ;;  %v4252_v10 = vpop.f32.mrb[0].mxu1  ;;  %v6506_v18 = vpop.f32.mrb[1].mxu0 }
 0x303   : > { %v6558_v46 = vpop.f32.mrb[1].mxu1  ;;  %v3973_v23 = vpop.f32.mrb[2].mxu0 }
 0x304   : > { %v9054_v53 = vadd.f32 %v4252_v10, %v4035_v22  ;;  %v4036_v13 = vadd.f32 %v3973_v23, %v9003_v14  ;;  %v4255_v25 = vpop.f32.mrb[2].mxu1  ;;  %v6507_v48 = vpop.f32.mrb[3].mxu0 }
 0x305   : > { %v6559_v51 = vpop.f32.mrb[3].mxu1 }
 0x306   : > { %v9057_v29 = vadd.f32 %v4255_v25, %v4036_v13 }
 0x309   : > { %v3978_v56 = vpop.f32.mrb[4].mxu0 }
 0x30a   : > { %v4037_v32 = vadd.f32 %v3978_v56, %v9006_v17  ;;  %v4260_v55 = vpop.f32.mrb[4].mxu1  ;;  %v6510_v37 = vpop.f32.mrb[5].mxu0 }
 0x30b   : > { %v6562_v47 = vpop.f32.mrb[5].mxu1  ;;  %v3981_v33 = vpop.f32.mrb[6].mxu0 }
 0x30c   : > { %v9060_v44 = vadd.f32 %v4260_v55, %v4037_v32  ;;  %v4038_v49 = vadd.f32 %v3981_v33, %v9009_v50  ;;  %v4263_v59 = vpop.f32.mrb[6].mxu1  ;;  %v6511_v4 = vpop.f32.mrb[7].mxu0 }
 0x30d   : > { %v6563_v41 = vpop.f32.mrb[7].mxu1 }
 0x30e   : > { %v9063_v14 = vadd.f32 %v4263_v59, %v4038_v49 }
 0x311   : > { %v3986_v16 = vpop.f32.mrb[8].mxu0 }
 0x312   : > { %v4039_v52 = vadd.f32 %v3986_v16, %v9012_v8  ;;  %v4268_v60 = vpop.f32.mrb[8].mxu1  ;;  %v6514_v3 = vpop.f32.mrb[9].mxu0 }
 0x313   : > { %v6566_v19 = vpop.f32.mrb[9].mxu1  ;;  %v3989_v17 = vpop.f32.mrb[10].mxu0 }
 0x314   : > { %v9066_v38 = vadd.f32 %v4268_v60, %v4039_v52  ;;  %v4040_v7 = vadd.f32 %v3989_v17, %v9015_v35  ;;  %v4271_v43 = vpop.f32.mrb[10].mxu1  ;;  %v6515_v28 = vpop.f32.mrb[11].mxu0 }
 0x315   : > { %v6567_v30 = vpop.f32.mrb[11].mxu1 }
 0x316   : > { %v9069_v50 = vadd.f32 %v4271_v43, %v4040_v7 }
 0x319   : > { %v3994_v40 = vpop.f32.mrb[12].mxu0 }
 0x31a   : > { %v4041_v21 = vadd.f32 %v3994_v40, %v9018_v27  ;;  %v4276_v45 = vpop.f32.mrb[12].mxu1  ;;  %v6518_v39 = vpop.f32.mrb[13].mxu0 }
 0x31b   : > { %v6570_v61 = vpop.f32.mrb[13].mxu1  ;;  %v3997_v8 = vpop.f32.mrb[14].mxu0 }
 0x31c   : > { %v9072_v31 = vadd.f32 %v4276_v45, %v4041_v21  ;;  %v4042_v15 = vadd.f32 %v3997_v8, %v9021_v34  ;;  %v4279_v62 = vpop.f32.mrb[14].mxu1  ;;  %v6519_v54 = vpop.f32.mrb[15].mxu0 }
 0x31d   : > { %v6571_v0 = vpop.f32.mrb[15].mxu1 }
 0x31e   : > { %v9075_v35 = vadd.f32 %v4279_v62, %v4042_v15 }
 0x321   : > { %v4002_v63 = vpop.f32.mrb[16].mxu0 }
 0x322   : > { %v4043_v12 = vadd.f32 %v4002_v63, %v9024_v2  ;;  %v4284_v58 = vpop.f32.mrb[16].mxu1  ;;  %v6522_v11 = vpop.f32.mrb[17].mxu0 }
 0x323   : > { %v6574_v57 = vpop.f32.mrb[17].mxu1  ;;  %v4005_v27 = vpop.f32.mrb[18].mxu0 }
 0x324   : > { %v9078_v22 = vadd.f32 %v4284_v58, %v4043_v12  ;;  %v4044_v10 = vadd.f32 %v4005_v27, %v9027_v6  ;;  %v4287_v18 = vpop.f32.mrb[18].mxu1  ;;  %v6523_v46 = vpop.f32.mrb[19].mxu0  ;;  %v9106_v27 = vld [vmem:[%s9214_s2] ss:$0 sm:$0xff] }
 0x325   : > { %v6575_v23 = vpop.f32.mrb[19].mxu1 }
 0x326   : > { %v9081_v34 = vadd.f32 %v4287_v18, %v4044_v10 }
 0x329   : > { %v4010_v13 = vpop.f32.mrb[20].mxu0 }
 0x32a   : > { %v4045_v25 = vadd.f32 %v4010_v13, %v9030_v24  ;;  %v4292_v48 = vpop.f32.mrb[20].mxu1  ;;  %v6526_v51 = vpop.f32.mrb[21].mxu0 }
 0x32b   : > { %v6578_v56 = vpop.f32.mrb[21].mxu1  ;;  %v4013_v2 = vpop.f32.mrb[22].mxu0 }
 0x32c   : > { %v9084_v32 = vadd.f32 %v4292_v48, %v4045_v25  ;;  %v4046_v55 = vadd.f32 %v4013_v2, %v9033_v20  ;;  %v4295_v37 = vpop.f32.mrb[22].mxu1  ;;  %v6527_v47 = vpop.f32.mrb[23].mxu0 }
 0x32d   : > { %v6579_v33 = vpop.f32.mrb[23].mxu1 }
 0x32e   : > { %v9087_v6 = vadd.f32 %v4295_v37, %v4046_v55 }
 0x331   : > { %v4018_v49 = vpop.f32.mrb[24].mxu0 }
 0x332   : > { %v4047_v59 = vadd.f32 %v4018_v49, %v9036_v42  ;;  %v4300_v4 = vpop.f32.mrb[24].mxu1  ;;  %v6530_v41 = vpop.f32.mrb[25].mxu0 }
 0x333   : > { %v6582_v16 = vpop.f32.mrb[25].mxu1  ;;  %v4021_v24 = vpop.f32.mrb[26].mxu0 }
 0x334   : > { %v9090_v52 = vadd.f32 %v4300_v4, %v4047_v59  ;;  %v4048_v60 = vadd.f32 %v4021_v24, %v9039_v26  ;;  %v4303_v3 = vpop.f32.mrb[26].mxu1  ;;  %v6531_v19 = vpop.f32.mrb[27].mxu0 }
 0x335   : > { %v6583_v17 = vpop.f32.mrb[27].mxu1 }
 0x336   : > { %v9093_v20 = vadd.f32 %v4303_v3, %v4048_v60 }
 0x339   : > { %v4026_v7 = vpop.f32.mrb[28].mxu0 }
 0x33a   : > { %v4049_v43 = vadd.f32 %v4026_v7, %v9042_v9  ;;  %v4308_v28 = vpop.f32.mrb[28].mxu1  ;;  %v6534_v30 = vpop.f32.mrb[29].mxu0 }
 0x33b   : > { %v6586_v40 = vpop.f32.mrb[29].mxu1  ;;  %v4029_v42 = vpop.f32.mrb[30].mxu0 }
 0x33c   : > { %v9096_v21 = vadd.f32 %v4308_v28, %v4049_v43  ;;  %v4050_v45 = vadd.f32 %v4029_v42, %v9045_v5  ;;  %v4311_v39 = vpop.f32.mrb[30].mxu1  ;;  %v6535_v61 = vpop.f32.mrb[31].mxu0 }
 0x33d   : > { %v6587_v8 = vpop.f32.mrb[31].mxu1 }
 0x33e   : > { %v9099_v26 = vadd.f32 %v4311_v39, %v4050_v45 }
 0x341   : > { %v4533_v15 = vpop.f32.mrb[32].mxu0 }
 0x342   : > { %v4604_v62 = vadd.f32 %v4533_v15, %v9048_v36  ;;  %v4752_v54 = vpop.f32.mrb[32].mxu1  ;;  %v6606_v0 = vpop.f32.mrb[33].mxu0 }
 0x343   : > { %v6658_v9 = vpop.f32.mrb[33].mxu1  ;;  %v4536_v63 = vpop.f32.mrb[34].mxu0 }
 0x344   : > { %v4823_v12 = vadd.f32 %v4752_v54, %v4604_v62  ;;  %v4605_v58 = vadd.f32 %v4536_v63, %v9051_v1  ;;  %v4755_v11 = vpop.f32.mrb[34].mxu1  ;;  %v6607_v57 = vpop.f32.mrb[35].mxu0 }
 0x345   : > { %v6659_v5 = vpop.f32.mrb[35].mxu1 }
 0x346   : > { %v4841_v10 = vadd.f32 %v9106_v27, %v4823_v12  ;;  %v4824_v36 = vadd.f32 %v4755_v11, %v4605_v58 }
 0x348   : > { %v4859_v18 = vmax.f32 %v4841_v10, 0.0  ;;  %v4842_v46 = vadd.f32 %v9106_v27, %v4824_v36 }
 0x349   : > { %v4541_v23 = vpop.f32.mrb[36].mxu0 }
 0x34a   : > { %4877 = vst [vmem:[%s8638_s17 + $0x90] sm:$0xff] %v4859_v18  ;;  %v4860_v13 = vmax.f32 %v4842_v46, 0.0  ;;  %v4606_v1 = vadd.f32 %v4541_v23, %v9054_v53  ;;  %v4760_v25 = vpop.f32.mrb[36].mxu1  ;;  %v6610_v48 = vpop.f32.mrb[37].mxu0 }
 0x34b   : > { %v6662_v51 = vpop.f32.mrb[37].mxu1  ;;  %v4544_v56 = vpop.f32.mrb[38].mxu0 }
 0x34c   : > { %4878 = vst [vmem:[%s8638_s17 + $0x98] sm:$0xff] %v4860_v13  ;;  %v4825_v2 = vadd.f32 %v4760_v25, %v4606_v1  ;;  %v4607_v55 = vadd.f32 %v4544_v56, %v9057_v29  ;;  %v4763_v37 = vpop.f32.mrb[38].mxu1  ;;  %v6611_v47 = vpop.f32.mrb[39].mxu0 }
 0x34d   : > { %v6663_v33 = vpop.f32.mrb[39].mxu1 }
 0x34e   : > { %v4843_v49 = vadd.f32 %v9106_v27, %v4825_v2  ;;  %v4826_v59 = vadd.f32 %v4763_v37, %v4607_v55 }
 0x350   : > { %v4861_v4 = vmax.f32 %v4843_v49, 0.0  ;;  %v4844_v41 = vadd.f32 %v9106_v27, %v4826_v59 }
 0x351   : > { %v4549_v53 = vpop.f32.mrb[40].mxu0 }
 0x352   : > { %4879 = vst [vmem:[%s8638_s17 + $0xa0] sm:$0xff] %v4861_v4  ;;  %v4862_v16 = vmax.f32 %v4844_v41, 0.0  ;;  %v4608_v24 = vadd.f32 %v4549_v53, %v9060_v44  ;;  %v4768_v60 = vpop.f32.mrb[40].mxu1  ;;  %v6614_v3 = vpop.f32.mrb[41].mxu0 }
 0x353   : > { %v6666_v19 = vpop.f32.mrb[41].mxu1  ;;  %v4552_v29 = vpop.f32.mrb[42].mxu0 }
 0x354   : > { %4880 = vst [vmem:[%s8638_s17 + $0xa8] sm:$0xff] %v4862_v16  ;;  %v4827_v17 = vadd.f32 %v4768_v60, %v4608_v24  ;;  %v4609_v7 = vadd.f32 %v4552_v29, %v9063_v14  ;;  %v4771_v43 = vpop.f32.mrb[42].mxu1  ;;  %v6615_v28 = vpop.f32.mrb[43].mxu0 }
 0x355   : > { %v6667_v30 = vpop.f32.mrb[43].mxu1 }
 0x356   : > { %v4845_v40 = vadd.f32 %v9106_v27, %v4827_v17  ;;  %v4828_v42 = vadd.f32 %v4771_v43, %v4609_v7 }
 0x358   : > { %v4863_v45 = vmax.f32 %v4845_v40, 0.0  ;;  %v4846_v39 = vadd.f32 %v9106_v27, %v4828_v42 }
 0x359   : > { %v4557_v44 = vpop.f32.mrb[44].mxu0 }
 0x35a   : > { %4881 = vst [vmem:[%s8638_s17 + $0xb0] sm:$0xff] %v4863_v45  ;;  %v4864_v61 = vmax.f32 %v4846_v39, 0.0  ;;  %v4610_v8 = vadd.f32 %v4557_v44, %v9066_v38  ;;  %v4776_v15 = vpop.f32.mrb[44].mxu1  ;;  %v6618_v62 = vpop.f32.mrb[45].mxu0 }
 0x35b   : > { %v6670_v54 = vpop.f32.mrb[45].mxu1  ;;  %v4560_v14 = vpop.f32.mrb[46].mxu0 }
 0x35c   : > { %4882 = vst [vmem:[%s8638_s17 + $0xb8] sm:$0xff] %v4864_v61  ;;  %v4829_v0 = vadd.f32 %v4776_v15, %v4610_v8  ;;  %v4611_v9 = vadd.f32 %v4560_v14, %v9069_v50  ;;  %v4779_v63 = vpop.f32.mrb[46].mxu1  ;;  %v6619_v12 = vpop.f32.mrb[47].mxu0 }
 0x35d   : > { %v6671_v58 = vpop.f32.mrb[47].mxu1 }
 0x35e   : > { %v4847_v11 = vadd.f32 %v9106_v27, %v4829_v0  ;;  %v4830_v57 = vadd.f32 %v4779_v63, %v4611_v9 }
 0x360   : > { %v4865_v5 = vmax.f32 %v4847_v11, 0.0  ;;  %v4848_v10 = vadd.f32 %v9106_v27, %v4830_v57 }
 0x361   : > { %v4565_v38 = vpop.f32.mrb[48].mxu0 }
 0x362   : > { %4883 = vst [vmem:[%s8638_s17 + $0xc0] sm:$0xff] %v4865_v5  ;;  %v4866_v36 = vmax.f32 %v4848_v10, 0.0  ;;  %v4612_v18 = vadd.f32 %v4565_v38, %v9072_v31  ;;  %v4784_v46 = vpop.f32.mrb[48].mxu1  ;;  %v6622_v23 = vpop.f32.mrb[49].mxu0 }
 0x363   : > { %v6674_v13 = vpop.f32.mrb[49].mxu1  ;;  %v4568_v50 = vpop.f32.mrb[50].mxu0 }
 0x364   : > { %4884 = vst [vmem:[%s8638_s17 + $0xc8] sm:$0xff] %v4866_v36  ;;  %v4831_v1 = vadd.f32 %v4784_v46, %v4612_v18  ;;  %v4613_v25 = vadd.f32 %v4568_v50, %v9075_v35  ;;  %v4787_v48 = vpop.f32.mrb[50].mxu1  ;;  %v6623_v51 = vpop.f32.mrb[51].mxu0 }
 0x365   : > { %v6675_v56 = vpop.f32.mrb[51].mxu1 }
 0x366   : > { %v4849_v2 = vadd.f32 %v9106_v27, %v4831_v1  ;;  %v4832_v55 = vadd.f32 %v4787_v48, %v4613_v25 }
 0x368   : > { %v4867_v37 = vmax.f32 %v4849_v2, 0.0  ;;  %v4850_v47 = vadd.f32 %v9106_v27, %v4832_v55 }
 0x369   : > { %v4573_v31 = vpop.f32.mrb[52].mxu0 }
 0x36a   : > { %4885 = vst [vmem:[%s8638_s17 + $0xd0] sm:$0xff] %v4867_v37  ;;  %v4868_v33 = vmax.f32 %v4850_v47, 0.0  ;;  %v4614_v49 = vadd.f32 %v4573_v31, %v9078_v22  ;;  %v4792_v59 = vpop.f32.mrb[52].mxu1  ;;  %v6626_v4 = vpop.f32.mrb[53].mxu0 }
 0x36b   : > { %v6678_v41 = vpop.f32.mrb[53].mxu1  ;;  %v4576_v35 = vpop.f32.mrb[54].mxu0 }
 0x36c   : > { %4886 = vst [vmem:[%s8638_s17 + $0xd8] sm:$0xff] %v4868_v33  ;;  %v4833_v53 = vadd.f32 %v4792_v59, %v4614_v49  ;;  %v4615_v16 = vadd.f32 %v4576_v35, %v9081_v34  ;;  %v4795_v24 = vpop.f32.mrb[54].mxu1  ;;  %v6627_v60 = vpop.f32.mrb[55].mxu0 }
 0x36d   : > { %v6679_v3 = vpop.f32.mrb[55].mxu1 }
 0x36e   : > { %v4851_v19 = vadd.f32 %v9106_v27, %v4833_v53  ;;  %v4834_v29 = vadd.f32 %v4795_v24, %v4615_v16 }
 0x370   : > { %v4869_v17 = vmax.f32 %v4851_v19, 0.0  ;;  %v4852_v7 = vadd.f32 %v9106_v27, %v4834_v29 }
 0x371   : > { %v4581_v22 = vpop.f32.mrb[56].mxu0 }
 0x372   : > { %4887 = vst [vmem:[%s8638_s17 + $0xe0] sm:$0xff] %v4869_v17  ;;  %v4870_v43 = vmax.f32 %v4852_v7, 0.0  ;;  %v4616_v28 = vadd.f32 %v4581_v22, %v9084_v32  ;;  %v4800_v30 = vpop.f32.mrb[56].mxu1  ;;  %v6630_v40 = vpop.f32.mrb[57].mxu0 }
 0x373   : > { %v6682_v42 = vpop.f32.mrb[57].mxu1  ;;  %v4584_v34 = vpop.f32.mrb[58].mxu0 }
 0x374   : > { %4888 = vst [vmem:[%s8638_s17 + $0xe8] sm:$0xff] %v4870_v43  ;;  %v4835_v45 = vadd.f32 %v4800_v30, %v4616_v28  ;;  %v4617_v39 = vadd.f32 %v4584_v34, %v9087_v6  ;;  %v4803_v44 = vpop.f32.mrb[58].mxu1  ;;  %v6631_v61 = vpop.f32.mrb[59].mxu0 }
 0x375   : > { %v6683_v8 = vpop.f32.mrb[59].mxu1 }
 0x376   : > { %v4853_v15 = vadd.f32 %v9106_v27, %v4835_v45  ;;  %v4836_v62 = vadd.f32 %v4803_v44, %v4617_v39 }
 0x378   : > { %v4871_v54 = vmax.f32 %v4853_v15, 0.0  ;;  %v4854_v14 = vadd.f32 %v9106_v27, %v4836_v62 }
 0x379   : > { %v4589_v32 = vpop.f32.mrb[60].mxu0 }
 0x37a   : > { %4889 = vst [vmem:[%s8638_s17 + $0xf0] sm:$0xff] %v4871_v54  ;;  %v4872_v0 = vmax.f32 %v4854_v14, 0.0  ;;  %v4618_v9 = vadd.f32 %v4589_v32, %v9090_v52  ;;  %v4808_v63 = vpop.f32.mrb[60].mxu1  ;;  %v6634_v12 = vpop.f32.mrb[61].mxu0 }
 0x37b   : > { %v6686_v58 = vpop.f32.mrb[61].mxu1  ;;  %v4592_v6 = vpop.f32.mrb[62].mxu0 }
 0x37c   : > { %4890 = vst [vmem:[%s8638_s17 + $0xf8] sm:$0xff] %v4872_v0  ;;  %v4837_v11 = vadd.f32 %v4808_v63, %v4618_v9  ;;  %v4619_v57 = vadd.f32 %v4592_v6, %v9093_v20  ;;  %v4811_v5 = vpop.f32.mrb[62].mxu1  ;;  %v6635_v10 = vpop.f32.mrb[63].mxu0 }
 0x37d   : > { %v6687_v38 = vpop.f32.mrb[63].mxu1 }
 0x37e   : > { %v4855_v36 = vadd.f32 %v9106_v27, %v4837_v11  ;;  %v4838_v18 = vadd.f32 %v4811_v5, %v4619_v57 }
 0x380   : > { %v4873_v46 = vmax.f32 %v4855_v36, 0.0  ;;  %v4856_v52 = vadd.f32 %v9106_v27, %v4838_v18 }
 0x381   : > { %v4597_v23 = vpop.f32.mrb[64].mxu0 }
 0x382   : > { %4891 = vst [vmem:[%s8638_s17 + $0x100] sm:$0xff] %v4873_v46  ;;  %v4874_v13 = vmax.f32 %v4856_v52, 0.0  ;;  %v4620_v50 = vadd.f32 %v4597_v23, %v9096_v21  ;;  %v4816_v1 = vpop.f32.mrb[64].mxu1  ;;  %v6638_v25 = vpop.f32.mrb[65].mxu0 }
 0x383   : > { %v6690_v20 = vpop.f32.mrb[65].mxu1  ;;  %v4600_v48 = vpop.f32.mrb[66].mxu0 }
 0x384   : > { %4892 = vst [vmem:[%s8638_s17 + $0x108] sm:$0xff] %v4874_v13  ;;  %v4839_v51 = vadd.f32 %v4816_v1, %v4620_v50  ;;  %v4621_v56 = vadd.f32 %v4600_v48, %v9099_v26  ;;  %v4819_v2 = vpop.f32.mrb[66].mxu1  ;;  %v6639_v55 = vpop.f32.mrb[67].mxu0 }
 0x385   : > { %v6691_v37 = vpop.f32.mrb[67].mxu1 }
 0x386   : > { %v4857_v47 = vadd.f32 %v9106_v27, %v4839_v51  ;;  %v4840_v31 = vadd.f32 %v4819_v2, %v4621_v56 }
 0x388   : > { %v4875_v21 = vmax.f32 %v4857_v47, 0.0  ;;  %v4858_v33 = vadd.f32 %v9106_v27, %v4840_v31 }
 0x38a   : > { %4893 = vst [vmem:[%s8638_s17 + $0x110] sm:$0xff] %v4875_v21  ;;  %v4876_v26 = vmax.f32 %v4858_v33, 0.0 }
 0x38c   : > { %4894 = vst [vmem:[%s8638_s17 + $0x118] sm:$0xff] %v4876_v26 }
 0x38d   : > { %6966 = shalt.err (!%p6963_p3)
}
 0x38e   : > { %s6967_s29 = scalar_lea.hbm %s9163_s20, 4608  ;;  %s6971_s4 = scalar_lea.hbm %s9215_s3, 9216 }
 0x38f   : > { %p6968_p4 = scmp.ne.s32.totalorder %s9163_s20, %s6967_s29  ;;  %p6972_p9 = scmp.lt.u32.totalorder %s9163_s20, %s9215_s3 }
 0x390   : > { %p6973_p10 = scmp.lt.u32.totalorder %s6971_s4, %s6967_s29  ;;  %p6975_p12 = scmp.lt.u32.totalorder %s6967_s29, %s9163_s20 }
 0x391   : > { %p6969_p7 = pnand %p6968_p4, %p7080_p5 }
 0x392   : > { %p6974_p11 = por %p6973_p10, %p6972_p9 }
 0x393   : > { %p6970_p8 = pneg %p6969_p7 }
 0x394   : > { %p6976_p13 = por %p6975_p12, %p6974_p11 }
 0x396   : > { %p6977_p0 = pnand %p6976_p13, %p6970_p8 }
 0x398   : > { %6980 = shalt.err (!%p6977_p0)
}
 0x399   : > { %s7020_s7 = smov 128   ;;  %s7021_s26 = smov 8  }
 0x39a   : > { %6695 = dma.vmem_to_hbm [thread:$0]  (%p7080_p5), %s9165_s10, 4608, %s9163_s20, %s9171_s16, %s7020_s7, %s7020_s7, %s7021_s26  }
 0x39b PF: > { %p6701_p1 = scmp.ge.s32.totalorder %s7015_s15, 2  ;;  %s4924_s8 = sand.u32 1, %s7003_s12  }
 0x39c   : > { %s4925_s9 = scalar_lea.sflag [#allocation3], %s4924_s8 }
 0x39d   : > { %p6698_p2 = pnand %p6701_p1, %p7084_p6 }
 0x39f   : > { %6998 = dma.done.wait (!%p6698_p2), %s4925_s9, 4608  }
 0x3a0   : > { %7000 = vsyncadd (!%p6698_p2), %s4925_s9, 4294962688  ;;  %p13_p3 = scmp.ge.s32.totalorder %s7067_s18, 4   ;;  %s9218_s12 = smov %s7007_s13 }
 0x3a1   : > { %s9219_s13 = smov %s7011_s14  ;;  %s9220_s14 = smov %s7078_s21 }
 0x3a2   : > { %s9221_s15 = smov %s7067_s18  ;;  %15 = sbr.rel (!%p13_p3) target bundleno = 3 (0x3), region = 75 }
 0x3a9   :  { %4930 = vsyncpa [#allocation3], 1 }
 0x3aa   :  { %4932 = vsyncpa [#allocation3 + $0x1], 1 }

</bundles_post_ra>
